<compile_context>
chip_gen: v6e
topology: v6e:2x2x1
jax: 0.10.0
libtpu: 0.0.40
codegen_flags: <defaults>
</compile_context>

<pallas_src>
import jax
import jax.numpy as jnp
from jax.experimental import pallas as pl
from jax.experimental.pallas import tpu as pltpu

BN_EPS = 1e-5
LANES = 128
NCORES = 2                      # per-core partial accumulators (v7x megacore); harmless on 1-TC chips
TARGET_ROWS = 2048              # aim ~2K conv rows per grid step (amortize ~0.35us/step overhead)
MAX_FRAMES_PER_STEP = 8         # cap on static in-kernel frame unroll
VMEM_LIMIT = 48 * 1024 * 1024   # <= ~48 MiB keeps v7x (64 MiB VMEM/TC) safe; fine on v5e/v6e


def _round_up(x, m):
    return ((x + m - 1) // m) * m


def _cdiv(a, b):
    return (a + b - 1) // b


# ---- kernel 1: conv (9 shifted-tap matmuls) + fused BN stats + Y^T Y + X^T X -------------

def _conv_stats_kernel(x_ref, w_ref, b_ref, m_ref,
                       y_ref, sum_ref, cova_ref, covb_ref, acc_ref):
    # x_ref : (TB, P2, C)    bf16  halo-padded frames (rows flattened, (Wp2+1) zero rows
    #                              on each end so every conv tap is a static row shift)
    # w_ref : (9, C, Npad)   bf16  tap weights (Npad = Cout padded to 128 lanes)
    # b_ref : (1, Npad)      f32   bias
    # m_ref : (TB, P, 1)     f32   validity mask (interior pixel AND real frame)
    # y_ref : (TB, P, Npad)  bf16  conv output over padded positions (border rows junk)
    # sum_ref : (1, 1, Npad) f32   per-core channel-sum accumulator (grid-resident)
    # cova_ref: (1, Npad, Npad) f32 per-core Y^T Y accumulator
    # covb_ref: (1, C, C)    f32   per-core X^T X accumulator ("before" covariance)
    # acc_ref : (P, Npad)    f32   VMEM conv accumulator scratch (reused per frame)
    @pl.when(pl.program_id(1) == 0)
    def _():
        sum_ref[...] = jnp.zeros_like(sum_ref)
        cova_ref[...] = jnp.zeros_like(cova_ref)
        covb_ref[...] = jnp.zeros_like(covb_ref)

    tb, p2, _ = x_ref.shape
    p, npad = y_ref.shape[1], y_ref.shape[2]
    wp2 = (p2 - p - 2) // 2                              # padded frame width (static int)

    bias_full = jnp.broadcast_to(b_ref[...], (p, npad))  # hoisted out of the loops

    for f in range(tb):                                  # static unroll (tb <= 8)
        # conv: accumulate 9 row-shifted taps into the f32 VMEM scratch
        acc_ref[...] = bias_full
        for kh in range(3):
            for kw in range(3):
                off = kh * wp2 + kw
                acc_ref[...] += jnp.dot(x_ref[f, off:off + p, :], w_ref[kh * 3 + kw],
                                        preferred_element_type=jnp.float32)
        a = acc_ref[...]
        y_ref[f] = a.astype(y_ref.dtype)                 # bf16 write: halves y HBM traffic

        am = a * m_ref[f]                                # drop junk rows / padded frames
        sum_ref[0] += jnp.sum(am, axis=0, keepdims=True)
        cova_ref[0] += jax.lax.dot_general(              # Y^T Y on the MXU, f32 accum
            am, am, (((0,), (0,)), ((), ())), preferred_element_type=jnp.float32)

        xf = x_ref[f]                                    # zero pad/halo rows contribute 0
        covb_ref[0] += jax.lax.dot_general(              # fused "before" X^T X
            xf, xf, (((0,), (0,)), ((), ())), preferred_element_type=jnp.float32)


def conv_bn_stats(xflat2, w_taps, bias_row, mask3, p, nc, nb, tb):
    bt_pad, p2, c = xflat2.shape
    npad = w_taps.shape[-1]
    flops = 2 * bt_pad * (p * npad * (9 * c + npad) + p2 * c * c)
    bytes_accessed = (xflat2.size * 2 + bt_pad * p * npad * 2 + mask3.size * 4
                      + nc * (npad * npad + npad + c * c) * 4)
    return pl.pallas_call(
        _conv_stats_kernel,
        out_shape=(
            jax.ShapeDtypeStruct((bt_pad, p, npad), jnp.bfloat16),   # conv output (bf16)
            jax.ShapeDtypeStruct((nc, 1, npad), jnp.float32),        # per-core channel sums
            jax.ShapeDtypeStruct((nc, npad, npad), jnp.float32),     # per-core Y^T Y
            jax.ShapeDtypeStruct((nc, c, c), jnp.float32),           # per-core X^T X
        ),
        grid=(nc, nb),
        in_specs=[
            pl.BlockSpec((tb, p2, c), lambda ci, j: (ci * nb + j, 0, 0)),
            pl.BlockSpec((9, c, npad), lambda ci, j: (0, 0, 0)),
            pl.BlockSpec((1, npad), lambda ci, j: (0, 0)),
            pl.BlockSpec((tb, p, 1), lambda ci, j: (ci * nb + j, 0, 0)),
        ],
        out_specs=(
            pl.BlockSpec((tb, p, npad), lambda ci, j: (ci * nb + j, 0, 0)),
            pl.BlockSpec((1, 1, npad), lambda ci, j: (ci, 0, 0)),
            pl.BlockSpec((1, npad, npad), lambda ci, j: (ci, 0, 0)),
            pl.BlockSpec((1, c, c), lambda ci, j: (ci, 0, 0)),
        ),
        scratch_shapes=[pltpu.VMEM((p, npad), jnp.float32)],
        compiler_params=pltpu.CompilerParams(
            # outer axis: independent per-core partials -> safe to shard across v7x TCs;
            # inner axis: sequential accumulation over frame blocks.
            dimension_semantics=("parallel", "arbitrary"),
            vmem_limit_bytes=VMEM_LIMIT),
        cost_estimate=pl.CostEstimate(flops=flops, transcendentals=0,
                                      bytes_accessed=bytes_accessed),
    )(xflat2, w_taps, bias_row, mask3)


# ---- kernel 2: folded BatchNorm (scale/shift) + ELU over multi-frame blocks --------------

def _bn_elu_kernel(y_ref, s_ref, t_ref, o_ref):
    z = y_ref[...].astype(jnp.float32) * s_ref[...] + t_ref[...]
    o_ref[...] = jnp.where(z > 0, z, jnp.expm1(z))       # ELU(alpha=1)


def bn_elu(y_pad, scale3, shift3, tb):
    bt_pad, p, npad = y_pad.shape
    return pl.pallas_call(
        _bn_elu_kernel,
        out_shape=jax.ShapeDtypeStruct((bt_pad, p, npad), jnp.float32),
        grid=(bt_pad // tb,),
        in_specs=[
            pl.BlockSpec((tb, p, npad), lambda i: (i, 0, 0)),
            pl.BlockSpec((1, 1, npad), lambda i: (0, 0, 0)),
            pl.BlockSpec((1, 1, npad), lambda i: (0, 0, 0)),
        ],
        out_specs=pl.BlockSpec((tb, p, npad), lambda i: (i, 0, 0)),
        compiler_params=pltpu.CompilerParams(
            dimension_semantics=("parallel",),
            vmem_limit_bytes=VMEM_LIMIT),
    )(y_pad, scale3, shift3)


# ------------------------------------ module ----------------------------------------------

eigenspectra = {}


class TempConv:
    def __init__(self, in_planes, out_planes, kernel_size=(1, 3, 3),
                 stride=(1, 1, 1), padding=(0, 1, 1), layer_id=None, key=None):
        assert kernel_size == (1, 3, 3) and stride == (1, 1, 1) and padding == (0, 1, 1)
        self.in_planes = in_planes
        self.out_planes = out_planes
        self.layer_id = layer_id
        self.npad = _round_up(out_planes, LANES)

        k_w, k_b = jax.random.split(key)
        fan_in = in_planes * 9
        bound = 1.0 / (fan_in ** 0.5)
        # deterministic init mimicking nn.Conv3d default (uniform +/- 1/sqrt(fan_in))
        self.weight = jax.random.uniform(
            k_w, (out_planes, in_planes, 1, 3, 3), jnp.float32, -bound, bound)
        self.bias = jax.random.uniform(k_b, (out_planes,), jnp.float32, -bound, bound)
        # BatchNorm3d affine params (default init: weight=1, bias=0)
        self.gamma = jnp.ones((out_planes,), jnp.float32)
        self.beta = jnp.zeros((out_planes,), jnp.float32)

        # MXU-friendly parameter layout: tap-major weights, lane-dense (128-padded)
        # output channels, bf16 matmul inputs (f32 accumulation in-kernel).
        pad_n = self.npad - out_planes
        w_taps = jnp.transpose(self.weight[:, :, 0, :, :], (2, 3, 1, 0))  # (3,3,Cin,Cout)
        w_taps = w_taps.reshape(9, in_planes, out_planes)
        self.w_taps = jnp.pad(w_taps, ((0, 0), (0, 0), (0, pad_n))).astype(jnp.bfloat16)
        self.bias_row = jnp.pad(self.bias, (0, pad_n)).reshape(1, self.npad)
        self.gamma_row = jnp.pad(self.gamma, (0, pad_n),
                                 constant_values=1.0).reshape(1, self.npad)
        self.beta_row = jnp.pad(self.beta, (0, pad_n)).reshape(1, self.npad)

    def __call__(self, x):
        global eigenspectra
        b, c, t, h, w = x.shape
        bt, m = b * t, b * t * h * w
        hp2, wp2 = h + 2, w + 2
        p = hp2 * wp2
        npad = self.npad

        # frame-block tiling: TB frames per grid step, NCORES per-core partial accumulators
        tb = max(1, min(MAX_FRAMES_PER_STEP, TARGET_ROWS // p, _cdiv(bt, NCORES)))
        nb = _cdiv(bt, NCORES * tb)
        bt_pad = NCORES * nb * tb

        # channels-last + EARLY bf16 cast (halves all pad/copy HBM traffic)
        x_cl = jnp.transpose(x, (0, 2, 3, 4, 1)).astype(jnp.bfloat16)     # (B,T,H,W,C)
        xp = jnp.pad(x_cl, ((0, 0), (0, 0), (1, 1), (1, 1), (0, 0)))      # spatial zero pad
        xflat = xp.reshape(bt, p, c)
        # (Wp2+1)-row halo per frame (so all 9 taps are static row shifts) + frame padding
        xflat = jnp.pad(xflat, ((0, bt_pad - bt), (wp2 + 1, wp2 + 1), (0, 0)))

        # validity mask: interior pixel AND real (non-padded) frame
        row_ok = (jnp.arange(hp2) >= 1) & (jnp.arange(hp2) <= h)
        col_ok = (jnp.arange(wp2) >= 1) & (jnp.arange(wp2) <= w)
        pix_ok = (row_ok[:, None] & col_ok[None, :]).reshape(1, p, 1)
        frm_ok = (jnp.arange(bt_pad) < bt).reshape(bt_pad, 1, 1)
        mask3 = (pix_ok & frm_ok).astype(jnp.float32)                     # (BTpad, P, 1)

        # single fused pass over x: conv + BN stats + Y^T Y + X^T X
        y_pad, psum, pcova, pcovb = conv_bn_stats(
            xflat, self.w_taps, self.bias_row, mask3, p, NCORES, nb, tb)

        col_sum = jnp.sum(psum, axis=0)                   # (1, Npad)
        cova = jnp.sum(pcova, axis=0)                     # (Npad, Npad)
        covb = jnp.sum(pcovb, axis=0)                     # (Cin, Cin)

        # TODO(synk): torch.linalg.eigvals (general complex eig) has no TPU/Pallas path;
        # both second-moment matrices are symmetric PSD, so eigvalsh gives the same
        # spectrum (real, sorted). X^T X is accumulated from the bf16-cast input.
        key = f"{self.layer_id}_before"
        prev = eigenspectra.get(key, jnp.zeros((c,), jnp.float32))
        eigenspectra[key] = (prev + jnp.linalg.eigvalsh(covb / m)) / 2.0

        key = f"{self.layer_id}_after"
        prev = eigenspectra.get(key, jnp.zeros((self.out_planes,), jnp.float32))
        cov_a = cova[:self.out_planes, :self.out_planes] / m
        eigenspectra[key] = (prev + jnp.linalg.eigvalsh(cov_a)) / 2.0

        # BatchNorm (training/batch statistics, biased variance) folded to scale/shift.
        # Single-pass E[x^2]-mean^2 in f32 from the fused accumulators (clamped at 0).
        mean = col_sum / m
        ex2 = jnp.diagonal(cova)[None, :] / m
        var = jnp.maximum(ex2 - mean * mean, 0.0)
        scale = self.gamma_row * jax.lax.rsqrt(var + BN_EPS)
        shift = self.beta_row - mean * scale

        out_pad = bn_elu(y_pad, scale.reshape(1, 1, npad), shift.reshape(1, 1, npad), tb)

        # drop padded frames / border rows / padded lanes, back to NCTHW once
        out = out_pad[:bt].reshape(b, t, hp2, wp2, npad)[:, :, 1:1 + h, 1:1 + w,
                                                         :self.out_planes]
        return jnp.transpose(out, (0, 4, 1, 2, 3))


if __name__ == "__main__":
    key = jax.random.PRNGKey(0)
    k_x, k_p = jax.random.split(key)

    B, Cin, Cout, T, H, W = 2, 4, 8, 2, 8, 8
    x = jax.random.normal(k_x, (B, Cin, T, H, W), jnp.float32)

    layer = TempConv(Cin, Cout, layer_id=0, key=k_p)
    out = layer(x)
    out = jax.block_until_ready(out)
    jax.block_until_ready(eigenspectra["0_before"])
    jax.block_until_ready(eigenspectra["0_after"])

    assert out.shape == (B, Cout, T, H, W)
    assert eigenspectra["0_before"].shape == (Cin,)
    assert eigenspectra["0_after"].shape == (Cout,)
    assert bool(jnp.all(jnp.isfinite(out)))
    print("KERNEL_OK")
</pallas_src>

<mosaic_0001>
module attributes {stable_mosaic.version = 11 : i64} {
  func.func @_conv_stats_kernel(%arg0: i32, %arg1: i32, %arg2: memref<2x122x4xbf16, #tpu.memory_space<vmem>>, %arg3: memref<9x4x128xbf16, #tpu.memory_space<vmem>>, %arg4: memref<1x128xf32, #tpu.memory_space<vmem>>, %arg5: memref<2x100x1xf32, #tpu.memory_space<vmem>>, %arg6: memref<2x100x128xbf16, #tpu.memory_space<vmem>>, %arg7: memref<1x1x128xf32, #tpu.memory_space<vmem>>, %arg8: memref<1x128x128xf32, #tpu.memory_space<vmem>>, %arg9: memref<1x4x4xf32, #tpu.memory_space<vmem>>, %arg10: memref<100x128xf32, #tpu.memory_space<vmem>>) attributes {dimension_semantics = [#tpu.dimension_semantics<parallel>, #tpu.dimension_semantics<arbitrary>], iteration_bounds = array<i64: 2, 1>, scalar_prefetch = 0 : i64, scratch_operands = 1 : i64, tpu.core_type = #tpu.core_type<tc>, window_params = [{transform_indices = @transform_0, window_bounds = array<i64: 2, 122, 4>}, {pipeline_mode = #tpu.pipeline_mode<synchronous>, transform_indices = @transform_1, window_bounds = array<i64: 9, 4, 128>}, {pipeline_mode = #tpu.pipeline_mode<synchronous>, transform_indices = @transform_2, window_bounds = array<i64: 1, 128>}, {transform_indices = @transform_3, window_bounds = array<i64: 2, 100, 1>}, {transform_indices = @transform_4, window_bounds = array<i64: 2, 100, 128>}, {transform_indices = @transform_5, window_bounds = array<i64: 1, 1, 128>}, {transform_indices = @transform_6, window_bounds = array<i64: 1, 128, 128>}, {transform_indices = @transform_7, window_bounds = array<i64: 1, 4, 4>}]} {
    %c0_i32 = arith.constant 0 : i32
    %0 = arith.cmpi eq, %arg1, %c0_i32 : i32
    %1 = arith.extui %0 : i1 to i32
    %c0_i32_0 = arith.constant 0 : i32
    %2 = arith.cmpi ne, %1, %c0_i32_0 : i32
    scf.if %2 {
      %cst_253 = arith.constant 0.000000e+00 : f32
      %218 = vector.broadcast %cst_253 : f32 to vector<1x1x128xf32>
      %c0_254 = arith.constant 0 : index
      %c0_255 = arith.constant 0 : index
      %c0_256 = arith.constant 0 : index
      %219 = vector.load %arg7[%c0_254, %c0_255, %c0_256] : memref<1x1x128xf32, #tpu.memory_space<vmem>>, vector<1x1x128xf32>
      tpu.vector_store %arg7[%c0_254, %c0_255, %c0_256], %218 {strides = array<i32>} : memref<1x1x128xf32, #tpu.memory_space<vmem>>, vector<1x1x128xf32>,
      %cst_257 = arith.constant 0.000000e+00 : f32
      %220 = vector.broadcast %cst_257 : f32 to vector<1x128x128xf32>
      %c0_258 = arith.constant 0 : index
      %c0_259 = arith.constant 0 : index
      %c0_260 = arith.constant 0 : index
      %221 = vector.load %arg8[%c0_258, %c0_259, %c0_260] : memref<1x128x128xf32, #tpu.memory_space<vmem>>, vector<1x128x128xf32>
      tpu.vector_store %arg8[%c0_258, %c0_259, %c0_260], %220 {strides = array<i32>} : memref<1x128x128xf32, #tpu.memory_space<vmem>>, vector<1x128x128xf32>,
      %cst_261 = arith.constant 0.000000e+00 : f32
      %222 = vector.broadcast %cst_261 : f32 to vector<1x4x4xf32>
      %c0_262 = arith.constant 0 : index
      %c0_263 = arith.constant 0 : index
      %c0_264 = arith.constant 0 : index
      %223 = vector.load %arg9[%c0_262, %c0_263, %c0_264] : memref<1x4x4xf32, #tpu.memory_space<vmem>>, vector<1x4x4xf32>
      tpu.vector_store %arg9[%c0_262, %c0_263, %c0_264], %222 {strides = array<i32>} : memref<1x4x4xf32, #tpu.memory_space<vmem>>, vector<1x4x4xf32>,
    } else {
    }
    %c0 = arith.constant 0 : index
    %c0_1 = arith.constant 0 : index
    %3 = vector.load %arg4[%c0, %c0_1] : memref<1x128xf32, #tpu.memory_space<vmem>>, vector<1x128xf32>
    %4 = vector.shape_cast %3 : vector<1x128xf32> to vector<1x128xf32>
    %5 = vector.broadcast %4 : vector<1x128xf32> to vector<100x128xf32>
    %c0_2 = arith.constant 0 : index
    %c0_3 = arith.constant 0 : index
    %6 = vector.load %arg10[%c0_2, %c0_3] : memref<100x128xf32, #tpu.memory_space<vmem>>, vector<100x128xf32>
    tpu.vector_store %arg10[%c0_2, %c0_3], %5 {strides = array<i32>} : memref<100x128xf32, #tpu.memory_space<vmem>>, vector<100x128xf32>,
    %c0_4 = arith.constant 0 : index
    %c0_5 = arith.constant 0 : index
    %7 = vector.load %arg10[%c0_4, %c0_5] : memref<100x128xf32, #tpu.memory_space<vmem>>, vector<100x128xf32>
    %c0_6 = arith.constant 0 : index
    %c0_7 = arith.constant 0 : index
    %c0_8 = arith.constant 0 : index
    %8 = vector.load %arg2[%c0_6, %c0_7, %c0_8] : memref<2x122x4xbf16, #tpu.memory_space<vmem>>, vector<1x100x4xbf16>
    %9 = vector.shape_cast %8 : vector<1x100x4xbf16> to vector<100x4xbf16>
    %c0_9 = arith.constant 0 : index
    %c0_10 = arith.constant 0 : index
    %c0_11 = arith.constant 0 : index
    %10 = vector.load %arg3[%c0_9, %c0_10, %c0_11] : memref<9x4x128xbf16, #tpu.memory_space<vmem>>, vector<1x4x128xbf16>
    %11 = vector.shape_cast %10 : vector<1x4x128xbf16> to vector<4x128xbf16>
    %cst = arith.constant dense<0.000000e+00> : vector<100x128xf32>
    %12 = tpu.matmul %9, %11, %cst {dimension_numbers = #tpu.dot_dimension_numbers<[1], [0], [0], [1], [0, 0, 1, 1], [], []>} : vector<100x4xbf16>, vector<4x128xbf16>, vector<100x128xf32> -> vector<100x128xf32>
    %13 = arith.addf %7, %12 : vector<100x128xf32>
    %c0_12 = arith.constant 0 : index
    %c0_13 = arith.constant 0 : index
    %14 = vector.load %arg10[%c0_12, %c0_13] : memref<100x128xf32, #tpu.memory_space<vmem>>, vector<100x128xf32>
    tpu.vector_store %arg10[%c0_12, %c0_13], %13 {strides = array<i32>} : memref<100x128xf32, #tpu.memory_space<vmem>>, vector<100x128xf32>,
    %c0_14 = arith.constant 0 : index
    %c0_15 = arith.constant 0 : index
    %15 = vector.load %arg10[%c0_14, %c0_15] : memref<100x128xf32, #tpu.memory_space<vmem>>, vector<100x128xf32>
    %c0_16 = arith.constant 0 : index
    %c1 = arith.constant 1 : index
    %c0_17 = arith.constant 0 : index
    %16 = vector.load %arg2[%c0_16, %c1, %c0_17] : memref<2x122x4xbf16, #tpu.memory_space<vmem>>, vector<1x100x4xbf16>
    %17 = vector.shape_cast %16 : vector<1x100x4xbf16> to vector<100x4xbf16>
    %c1_18 = arith.constant 1 : index
    %c0_19 = arith.constant 0 : index
    %c0_20 = arith.constant 0 : index
    %18 = vector.load %arg3[%c1_18, %c0_19, %c0_20] : memref<9x4x128xbf16, #tpu.memory_space<vmem>>, vector<1x4x128xbf16>
    %19 = vector.shape_cast %18 : vector<1x4x128xbf16> to vector<4x128xbf16>
    %cst_21 = arith.constant dense<0.000000e+00> : vector<100x128xf32>
    %20 = tpu.matmul %17, %19, %cst_21 {dimension_numbers = #tpu.dot_dimension_numbers<[1], [0], [0], [1], [0, 0, 1, 1], [], []>} : vector<100x4xbf16>, vector<4x128xbf16>, vector<100x128xf32> -> vector<100x128xf32>
    %21 = arith.addf %15, %20 : vector<100x128xf32>
    %c0_22 = arith.constant 0 : index
    %c0_23 = arith.constant 0 : index
    %22 = vector.load %arg10[%c0_22, %c0_23] : memref<100x128xf32, #tpu.memory_space<vmem>>, vector<100x128xf32>
    tpu.vector_store %arg10[%c0_22, %c0_23], %21 {strides = array<i32>} : memref<100x128xf32, #tpu.memory_space<vmem>>, vector<100x128xf32>,
    %c0_24 = arith.constant 0 : index
    %c0_25 = arith.constant 0 : index
    %23 = vector.load %arg10[%c0_24, %c0_25] : memref<100x128xf32, #tpu.memory_space<vmem>>, vector<100x128xf32>
    %c0_26 = arith.constant 0 : index
    %c2 = arith.constant 2 : index
    %c0_27 = arith.constant 0 : index
    %24 = vector.load %arg2[%c0_26, %c2, %c0_27] : memref<2x122x4xbf16, #tpu.memory_space<vmem>>, vector<1x100x4xbf16>
    %25 = vector.shape_cast %24 : vector<1x100x4xbf16> to vector<100x4xbf16>
    %c2_28 = arith.constant 2 : index
    %c0_29 = arith.constant 0 : index
    %c0_30 = arith.constant 0 : index
    %26 = vector.load %arg3[%c2_28, %c0_29, %c0_30] : memref<9x4x128xbf16, #tpu.memory_space<vmem>>, vector<1x4x128xbf16>
    %27 = vector.shape_cast %26 : vector<1x4x128xbf16> to vector<4x128xbf16>
    %cst_31 = arith.constant dense<0.000000e+00> : vector<100x128xf32>
    %28 = tpu.matmul %25, %27, %cst_31 {dimension_numbers = #tpu.dot_dimension_numbers<[1], [0], [0], [1], [0, 0, 1, 1], [], []>} : vector<100x4xbf16>, vector<4x128xbf16>, vector<100x128xf32> -> vector<100x128xf32>
    %29 = arith.addf %23, %28 : vector<100x128xf32>
    %c0_32 = arith.constant 0 : index
    %c0_33 = arith.constant 0 : index
    %30 = vector.load %arg10[%c0_32, %c0_33] : memref<100x128xf32, #tpu.memory_space<vmem>>, vector<100x128xf32>
    tpu.vector_store %arg10[%c0_32, %c0_33], %29 {strides = array<i32>} : memref<100x128xf32, #tpu.memory_space<vmem>>, vector<100x128xf32>,
    %c0_34 = arith.constant 0 : index
    %c0_35 = arith.constant 0 : index
    %31 = vector.load %arg10[%c0_34, %c0_35] : memref<100x128xf32, #tpu.memory_space<vmem>>, vector<100x128xf32>
    %c0_36 = arith.constant 0 : index
    %c10 = arith.constant 10 : index
    %c0_37 = arith.constant 0 : index
    %32 = vector.load %arg2[%c0_36, %c10, %c0_37] : memref<2x122x4xbf16, #tpu.memory_space<vmem>>, vector<1x100x4xbf16>
    %33 = vector.shape_cast %32 : vector<1x100x4xbf16> to vector<100x4xbf16>
    %c3 = arith.constant 3 : index
    %c0_38 = arith.constant 0 : index
    %c0_39 = arith.constant 0 : index
    %34 = vector.load %arg3[%c3, %c0_38, %c0_39] : memref<9x4x128xbf16, #tpu.memory_space<vmem>>, vector<1x4x128xbf16>
    %35 = vector.shape_cast %34 : vector<1x4x128xbf16> to vector<4x128xbf16>
    %cst_40 = arith.constant dense<0.000000e+00> : vector<100x128xf32>
    %36 = tpu.matmul %33, %35, %cst_40 {dimension_numbers = #tpu.dot_dimension_numbers<[1], [0], [0], [1], [0, 0, 1, 1], [], []>} : vector<100x4xbf16>, vector<4x128xbf16>, vector<100x128xf32> -> vector<100x128xf32>
    %37 = arith.addf %31, %36 : vector<100x128xf32>
    %c0_41 = arith.constant 0 : index
    %c0_42 = arith.constant 0 : index
    %38 = vector.load %arg10[%c0_41, %c0_42] : memref<100x128xf32, #tpu.memory_space<vmem>>, vector<100x128xf32>
    tpu.vector_store %arg10[%c0_41, %c0_42], %37 {strides = array<i32>} : memref<100x128xf32, #tpu.memory_space<vmem>>, vector<100x128xf32>,
    %c0_43 = arith.constant 0 : index
    %c0_44 = arith.constant 0 : index
    %39 = vector.load %arg10[%c0_43, %c0_44] : memref<100x128xf32, #tpu.memory_space<vmem>>, vector<100x128xf32>
    %c0_45 = arith.constant 0 : index
    %c11 = arith.constant 11 : index
    %c0_46 = arith.constant 0 : index
    %40 = vector.load %arg2[%c0_45, %c11, %c0_46] : memref<2x122x4xbf16, #tpu.memory_space<vmem>>, vector<1x100x4xbf16>
    %41 = vector.shape_cast %40 : vector<1x100x4xbf16> to vector<100x4xbf16>
    %c4 = arith.constant 4 : index
    %c0_47 = arith.constant 0 : index
    %c0_48 = arith.constant 0 : index
    %42 = vector.load %arg3[%c4, %c0_47, %c0_48] : memref<9x4x128xbf16, #tpu.memory_space<vmem>>, vector<1x4x128xbf16>
    %43 = vector.shape_cast %42 : vector<1x4x128xbf16> to vector<4x128xbf16>
    %cst_49 = arith.constant dense<0.000000e+00> : vector<100x128xf32>
    %44 = tpu.matmul %41, %43, %cst_49 {dimension_numbers = #tpu.dot_dimension_numbers<[1], [0], [0], [1], [0, 0, 1, 1], [], []>} : vector<100x4xbf16>, vector<4x128xbf16>, vector<100x128xf32> -> vector<100x128xf32>
    %45 = arith.addf %39, %44 : vector<100x128xf32>
    %c0_50 = arith.constant 0 : index
    %c0_51 = arith.constant 0 : index
    %46 = vector.load %arg10[%c0_50, %c0_51] : memref<100x128xf32, #tpu.memory_space<vmem>>, vector<100x128xf32>
    tpu.vector_store %arg10[%c0_50, %c0_51], %45 {strides = array<i32>} : memref<100x128xf32, #tpu.memory_space<vmem>>, vector<100x128xf32>,
    %c0_52 = arith.constant 0 : index
    %c0_53 = arith.constant 0 : index
    %47 = vector.load %arg10[%c0_52, %c0_53] : memref<100x128xf32, #tpu.memory_space<vmem>>, vector<100x128xf32>
    %c0_54 = arith.constant 0 : index
    %c12 = arith.constant 12 : index
    %c0_55 = arith.constant 0 : index
    %48 = vector.load %arg2[%c0_54, %c12, %c0_55] : memref<2x122x4xbf16, #tpu.memory_space<vmem>>, vector<1x100x4xbf16>
    %49 = vector.shape_cast %48 : vector<1x100x4xbf16> to vector<100x4xbf16>
    %c5 = arith.constant 5 : index
    %c0_56 = arith.constant 0 : index
    %c0_57 = arith.constant 0 : index
    %50 = vector.load %arg3[%c5, %c0_56, %c0_57] : memref<9x4x128xbf16, #tpu.memory_space<vmem>>, vector<1x4x128xbf16>
    %51 = vector.shape_cast %50 : vector<1x4x128xbf16> to vector<4x128xbf16>
    %cst_58 = arith.constant dense<0.000000e+00> : vector<100x128xf32>
    %52 = tpu.matmul %49, %51, %cst_58 {dimension_numbers = #tpu.dot_dimension_numbers<[1], [0], [0], [1], [0, 0, 1, 1], [], []>} : vector<100x4xbf16>, vector<4x128xbf16>, vector<100x128xf32> -> vector<100x128xf32>
    %53 = arith.addf %47, %52 : vector<100x128xf32>
    %c0_59 = arith.constant 0 : index
    %c0_60 = arith.constant 0 : index
    %54 = vector.load %arg10[%c0_59, %c0_60] : memref<100x128xf32, #tpu.memory_space<vmem>>, vector<100x128xf32>
    tpu.vector_store %arg10[%c0_59, %c0_60], %53 {strides = array<i32>} : memref<100x128xf32, #tpu.memory_space<vmem>>, vector<100x128xf32>,
    %c0_61 = arith.constant 0 : index
    %c0_62 = arith.constant 0 : index
    %55 = vector.load %arg10[%c0_61, %c0_62] : memref<100x128xf32, #tpu.memory_space<vmem>>, vector<100x128xf32>
    %c0_63 = arith.constant 0 : index
    %c20 = arith.constant 20 : index
    %c0_64 = arith.constant 0 : index
    %56 = vector.load %arg2[%c0_63, %c20, %c0_64] : memref<2x122x4xbf16, #tpu.memory_space<vmem>>, vector<1x100x4xbf16>
    %57 = vector.shape_cast %56 : vector<1x100x4xbf16> to vector<100x4xbf16>
    %c6 = arith.constant 6 : index
    %c0_65 = arith.constant 0 : index
    %c0_66 = arith.constant 0 : index
    %58 = vector.load %arg3[%c6, %c0_65, %c0_66] : memref<9x4x128xbf16, #tpu.memory_space<vmem>>, vector<1x4x128xbf16>
    %59 = vector.shape_cast %58 : vector<1x4x128xbf16> to vector<4x128xbf16>
    %cst_67 = arith.constant dense<0.000000e+00> : vector<100x128xf32>
    %60 = tpu.matmul %57, %59, %cst_67 {dimension_numbers = #tpu.dot_dimension_numbers<[1], [0], [0], [1], [0, 0, 1, 1], [], []>} : vector<100x4xbf16>, vector<4x128xbf16>, vector<100x128xf32> -> vector<100x128xf32>
    %61 = arith.addf %55, %60 : vector<100x128xf32>
    %c0_68 = arith.constant 0 : index
    %c0_69 = arith.constant 0 : index
    %62 = vector.load %arg10[%c0_68, %c0_69] : memref<100x128xf32, #tpu.memory_space<vmem>>, vector<100x128xf32>
    tpu.vector_store %arg10[%c0_68, %c0_69], %61 {strides = array<i32>} : memref<100x128xf32, #tpu.memory_space<vmem>>, vector<100x128xf32>,
    %c0_70 = arith.constant 0 : index
    %c0_71 = arith.constant 0 : index
    %63 = vector.load %arg10[%c0_70, %c0_71] : memref<100x128xf32, #tpu.memory_space<vmem>>, vector<100x128xf32>
    %c0_72 = arith.constant 0 : index
    %c21 = arith.constant 21 : index
    %c0_73 = arith.constant 0 : index
    %64 = vector.load %arg2[%c0_72, %c21, %c0_73] : memref<2x122x4xbf16, #tpu.memory_space<vmem>>, vector<1x100x4xbf16>
    %65 = vector.shape_cast %64 : vector<1x100x4xbf16> to vector<100x4xbf16>
    %c7 = arith.constant 7 : index
    %c0_74 = arith.constant 0 : index
    %c0_75 = arith.constant 0 : index
    %66 = vector.load %arg3[%c7, %c0_74, %c0_75] : memref<9x4x128xbf16, #tpu.memory_space<vmem>>, vector<1x4x128xbf16>
    %67 = vector.shape_cast %66 : vector<1x4x128xbf16> to vector<4x128xbf16>
    %cst_76 = arith.constant dense<0.000000e+00> : vector<100x128xf32>
    %68 = tpu.matmul %65, %67, %cst_76 {dimension_numbers = #tpu.dot_dimension_numbers<[1], [0], [0], [1], [0, 0, 1, 1], [], []>} : vector<100x4xbf16>, vector<4x128xbf16>, vector<100x128xf32> -> vector<100x128xf32>
    %69 = arith.addf %63, %68 : vector<100x128xf32>
    %c0_77 = arith.constant 0 : index
    %c0_78 = arith.constant 0 : index
    %70 = vector.load %arg10[%c0_77, %c0_78] : memref<100x128xf32, #tpu.memory_space<vmem>>, vector<100x128xf32>
    tpu.vector_store %arg10[%c0_77, %c0_78], %69 {strides = array<i32>} : memref<100x128xf32, #tpu.memory_space<vmem>>, vector<100x128xf32>,
    %c0_79 = arith.constant 0 : index
    %c0_80 = arith.constant 0 : index
    %71 = vector.load %arg10[%c0_79, %c0_80] : memref<100x128xf32, #tpu.memory_space<vmem>>, vector<100x128xf32>
    %c0_81 = arith.constant 0 : index
    %c22 = arith.constant 22 : index
    %c0_82 = arith.constant 0 : index
    %72 = vector.load %arg2[%c0_81, %c22, %c0_82] : memref<2x122x4xbf16, #tpu.memory_space<vmem>>, vector<1x100x4xbf16>
    %73 = vector.shape_cast %72 : vector<1x100x4xbf16> to vector<100x4xbf16>
    %c8 = arith.constant 8 : index
    %c0_83 = arith.constant 0 : index
    %c0_84 = arith.constant 0 : index
    %74 = vector.load %arg3[%c8, %c0_83, %c0_84] : memref<9x4x128xbf16, #tpu.memory_space<vmem>>, vector<1x4x128xbf16>
    %75 = vector.shape_cast %74 : vector<1x4x128xbf16> to vector<4x128xbf16>
    %cst_85 = arith.constant dense<0.000000e+00> : vector<100x128xf32>
    %76 = tpu.matmul %73, %75, %cst_85 {dimension_numbers = #tpu.dot_dimension_numbers<[1], [0], [0], [1], [0, 0, 1, 1], [], []>} : vector<100x4xbf16>, vector<4x128xbf16>, vector<100x128xf32> -> vector<100x128xf32>
    %77 = arith.addf %71, %76 : vector<100x128xf32>
    %c0_86 = arith.constant 0 : index
    %c0_87 = arith.constant 0 : index
    %78 = vector.load %arg10[%c0_86, %c0_87] : memref<100x128xf32, #tpu.memory_space<vmem>>, vector<100x128xf32>
    tpu.vector_store %arg10[%c0_86, %c0_87], %77 {strides = array<i32>} : memref<100x128xf32, #tpu.memory_space<vmem>>, vector<100x128xf32>,
    %c0_88 = arith.constant 0 : index
    %c0_89 = arith.constant 0 : index
    %79 = vector.load %arg10[%c0_88, %c0_89] : memref<100x128xf32, #tpu.memory_space<vmem>>, vector<100x128xf32>
    %80 = arith.truncf %79 : vector<100x128xf32> to vector<100x128xbf16>
    %c0_90 = arith.constant 0 : index
    %c0_91 = arith.constant 0 : index
    %c0_92 = arith.constant 0 : index
    %81 = vector.load %arg6[%c0_90, %c0_91, %c0_92] : memref<2x100x128xbf16, #tpu.memory_space<vmem>>, vector<1x100x128xbf16>
    %82 = vector.shape_cast %81 : vector<1x100x128xbf16> to vector<100x128xbf16>
    %83 = vector.shape_cast %80 : vector<100x128xbf16> to vector<1x100x128xbf16>
    tpu.vector_store %arg6[%c0_90, %c0_91, %c0_92], %83 {strides = array<i32>} : memref<2x100x128xbf16, #tpu.memory_space<vmem>>, vector<1x100x128xbf16>,
    %c0_93 = arith.constant 0 : index
    %c0_94 = arith.constant 0 : index
    %c0_95 = arith.constant 0 : index
    %84 = vector.load %arg5[%c0_93, %c0_94, %c0_95] : memref<2x100x1xf32, #tpu.memory_space<vmem>>, vector<1x100x1xf32>
    %85 = vector.shape_cast %84 : vector<1x100x1xf32> to vector<100x1xf32>
    %86 = vector.broadcast %85 : vector<100x1xf32> to vector<100x128xf32>
    %87 = arith.mulf %79, %86 : vector<100x128xf32>
    %c0_96 = arith.constant 0 : index
    %c0_97 = arith.constant 0 : index
    %c0_98 = arith.constant 0 : index
    %88 = vector.load %arg7[%c0_96, %c0_97, %c0_98] : memref<1x1x128xf32, #tpu.memory_space<vmem>>, vector<1x1x128xf32>
    %89 = vector.shape_cast %88 : vector<1x1x128xf32> to vector<1x128xf32>
    %cst_99 = arith.constant dense<0.000000e+00> : vector<128xf32>
    %90 = vector.multi_reduction <add>, %87, %cst_99 [0] : vector<100x128xf32> to vector<128xf32>
    %91 = vector.shape_cast %90 : vector<128xf32> to vector<1x128xf32>
    %92 = arith.addf %89, %91 : vector<1x128xf32>
    %c0_100 = arith.constant 0 : index
    %c0_101 = arith.constant 0 : index
    %c0_102 = arith.constant 0 : index
    %93 = vector.load %arg7[%c0_100, %c0_101, %c0_102] : memref<1x1x128xf32, #tpu.memory_space<vmem>>, vector<1x1x128xf32>
    %94 = vector.shape_cast %93 : vector<1x1x128xf32> to vector<1x128xf32>
    %95 = vector.shape_cast %92 : vector<1x128xf32> to vector<1x1x128xf32>
    tpu.vector_store %arg7[%c0_100, %c0_101, %c0_102], %95 {strides = array<i32>} : memref<1x1x128xf32, #tpu.memory_space<vmem>>, vector<1x1x128xf32>,
    %c0_103 = arith.constant 0 : index
    %c0_104 = arith.constant 0 : index
    %c0_105 = arith.constant 0 : index
    %96 = vector.load %arg8[%c0_103, %c0_104, %c0_105] : memref<1x128x128xf32, #tpu.memory_space<vmem>>, vector<1x128x128xf32>
    %97 = vector.shape_cast %96 : vector<1x128x128xf32> to vector<128x128xf32>
    %cst_106 = arith.constant dense<0.000000e+00> : vector<128x128xf32>
    %98 = tpu.matmul %87, %87, %cst_106 {dimension_numbers = #tpu.dot_dimension_numbers<[0], [0], [1], [1], [0, 1, 1, 1], [], []>} : vector<100x128xf32>, vector<100x128xf32>, vector<128x128xf32> -> vector<128x128xf32>
    %99 = arith.addf %97, %98 : vector<128x128xf32>
    %c0_107 = arith.constant 0 : index
    %c0_108 = arith.constant 0 : index
    %c0_109 = arith.constant 0 : index
    %100 = vector.load %arg8[%c0_107, %c0_108, %c0_109] : memref<1x128x128xf32, #tpu.memory_space<vmem>>, vector<1x128x128xf32>
    %101 = vector.shape_cast %100 : vector<1x128x128xf32> to vector<128x128xf32>
    %102 = vector.shape_cast %99 : vector<128x128xf32> to vector<1x128x128xf32>
    tpu.vector_store %arg8[%c0_107, %c0_108, %c0_109], %102 {strides = array<i32>} : memref<1x128x128xf32, #tpu.memory_space<vmem>>, vector<1x128x128xf32>,
    %c0_110 = arith.constant 0 : index
    %c0_111 = arith.constant 0 : index
    %c0_112 = arith.constant 0 : index
    %103 = vector.load %arg2[%c0_110, %c0_111, %c0_112] : memref<2x122x4xbf16, #tpu.memory_space<vmem>>, vector<1x122x4xbf16>
    %104 = vector.shape_cast %103 : vector<1x122x4xbf16> to vector<122x4xbf16>
    %c0_113 = arith.constant 0 : index
    %c0_114 = arith.constant 0 : index
    %c0_115 = arith.constant 0 : index
    %105 = vector.load %arg9[%c0_113, %c0_114, %c0_115] : memref<1x4x4xf32, #tpu.memory_space<vmem>>, vector<1x4x4xf32>
    %106 = vector.shape_cast %105 : vector<1x4x4xf32> to vector<4x4xf32>
    %cst_116 = arith.constant dense<0.000000e+00> : vector<4x4xf32>
    %107 = tpu.matmul %104, %104, %cst_116 {dimension_numbers = #tpu.dot_dimension_numbers<[0], [0], [1], [1], [0, 1, 1, 1], [], []>} : vector<122x4xbf16>, vector<122x4xbf16>, vector<4x4xf32> -> vector<4x4xf32>
    %108 = arith.addf %106, %107 : vector<4x4xf32>
    %c0_117 = arith.constant 0 : index
    %c0_118 = arith.constant 0 : index
    %c0_119 = arith.constant 0 : index
    %109 = vector.load %arg9[%c0_117, %c0_118, %c0_119] : memref<1x4x4xf32, #tpu.memory_space<vmem>>, vector<1x4x4xf32>
    %110 = vector.shape_cast %109 : vector<1x4x4xf32> to vector<4x4xf32>
    %111 = vector.shape_cast %108 : vector<4x4xf32> to vector<1x4x4xf32>
    tpu.vector_store %arg9[%c0_117, %c0_118, %c0_119], %111 {strides = array<i32>} : memref<1x4x4xf32, #tpu.memory_space<vmem>>, vector<1x4x4xf32>,
    %c0_120 = arith.constant 0 : index
    %c0_121 = arith.constant 0 : index
    %112 = vector.load %arg10[%c0_120, %c0_121] : memref<100x128xf32, #tpu.memory_space<vmem>>, vector<100x128xf32>
    tpu.vector_store %arg10[%c0_120, %c0_121], %5 {strides = array<i32>} : memref<100x128xf32, #tpu.memory_space<vmem>>, vector<100x128xf32>,
    %c0_122 = arith.constant 0 : index
    %c0_123 = arith.constant 0 : index
    %113 = vector.load %arg10[%c0_122, %c0_123] : memref<100x128xf32, #tpu.memory_space<vmem>>, vector<100x128xf32>
    %c1_124 = arith.constant 1 : index
    %c0_125 = arith.constant 0 : index
    %c0_126 = arith.constant 0 : index
    %114 = vector.load %arg2[%c1_124, %c0_125, %c0_126] : memref<2x122x4xbf16, #tpu.memory_space<vmem>>, vector<1x100x4xbf16>
    %115 = vector.shape_cast %114 : vector<1x100x4xbf16> to vector<100x4xbf16>
    %c0_127 = arith.constant 0 : index
    %c0_128 = arith.constant 0 : index
    %c0_129 = arith.constant 0 : index
    %116 = vector.load %arg3[%c0_127, %c0_128, %c0_129] : memref<9x4x128xbf16, #tpu.memory_space<vmem>>, vector<1x4x128xbf16>
    %117 = vector.shape_cast %116 : vector<1x4x128xbf16> to vector<4x128xbf16>
    %cst_130 = arith.constant dense<0.000000e+00> : vector<100x128xf32>
    %118 = tpu.matmul %115, %117, %cst_130 {dimension_numbers = #tpu.dot_dimension_numbers<[1], [0], [0], [1], [0, 0, 1, 1], [], []>} : vector<100x4xbf16>, vector<4x128xbf16>, vector<100x128xf32> -> vector<100x128xf32>
    %119 = arith.addf %113, %118 : vector<100x128xf32>
    %c0_131 = arith.constant 0 : index
    %c0_132 = arith.constant 0 : index
    %120 = vector.load %arg10[%c0_131, %c0_132] : memref<100x128xf32, #tpu.memory_space<vmem>>, vector<100x128xf32>
    tpu.vector_store %arg10[%c0_131, %c0_132], %119 {strides = array<i32>} : memref<100x128xf32, #tpu.memory_space<vmem>>, vector<100x128xf32>,
    %c0_133 = arith.constant 0 : index
    %c0_134 = arith.constant 0 : index
    %121 = vector.load %arg10[%c0_133, %c0_134] : memref<100x128xf32, #tpu.memory_space<vmem>>, vector<100x128xf32>
    %c1_135 = arith.constant 1 : index
    %c1_136 = arith.constant 1 : index
    %c0_137 = arith.constant 0 : index
    %122 = vector.load %arg2[%c1_135, %c1_136, %c0_137] : memref<2x122x4xbf16, #tpu.memory_space<vmem>>, vector<1x100x4xbf16>
    %123 = vector.shape_cast %122 : vector<1x100x4xbf16> to vector<100x4xbf16>
    %c1_138 = arith.constant 1 : index
    %c0_139 = arith.constant 0 : index
    %c0_140 = arith.constant 0 : index
    %124 = vector.load %arg3[%c1_138, %c0_139, %c0_140] : memref<9x4x128xbf16, #tpu.memory_space<vmem>>, vector<1x4x128xbf16>
    %125 = vector.shape_cast %124 : vector<1x4x128xbf16> to vector<4x128xbf16>
    %cst_141 = arith.constant dense<0.000000e+00> : vector<100x128xf32>
    %126 = tpu.matmul %123, %125, %cst_141 {dimension_numbers = #tpu.dot_dimension_numbers<[1], [0], [0], [1], [0, 0, 1, 1], [], []>} : vector<100x4xbf16>, vector<4x128xbf16>, vector<100x128xf32> -> vector<100x128xf32>
    %127 = arith.addf %121, %126 : vector<100x128xf32>
    %c0_142 = arith.constant 0 : index
    %c0_143 = arith.constant 0 : index
    %128 = vector.load %arg10[%c0_142, %c0_143] : memref<100x128xf32, #tpu.memory_space<vmem>>, vector<100x128xf32>
    tpu.vector_store %arg10[%c0_142, %c0_143], %127 {strides = array<i32>} : memref<100x128xf32, #tpu.memory_space<vmem>>, vector<100x128xf32>,
    %c0_144 = arith.constant 0 : index
    %c0_145 = arith.constant 0 : index
    %129 = vector.load %arg10[%c0_144, %c0_145] : memref<100x128xf32, #tpu.memory_space<vmem>>, vector<100x128xf32>
    %c1_146 = arith.constant 1 : index
    %c2_147 = arith.constant 2 : index
    %c0_148 = arith.constant 0 : index
    %130 = vector.load %arg2[%c1_146, %c2_147, %c0_148] : memref<2x122x4xbf16, #tpu.memory_space<vmem>>, vector<1x100x4xbf16>
    %131 = vector.shape_cast %130 : vector<1x100x4xbf16> to vector<100x4xbf16>
    %c2_149 = arith.constant 2 : index
    %c0_150 = arith.constant 0 : index
    %c0_151 = arith.constant 0 : index
    %132 = vector.load %arg3[%c2_149, %c0_150, %c0_151] : memref<9x4x128xbf16, #tpu.memory_space<vmem>>, vector<1x4x128xbf16>
    %133 = vector.shape_cast %132 : vector<1x4x128xbf16> to vector<4x128xbf16>
    %cst_152 = arith.constant dense<0.000000e+00> : vector<100x128xf32>
    %134 = tpu.matmul %131, %133, %cst_152 {dimension_numbers = #tpu.dot_dimension_numbers<[1], [0], [0], [1], [0, 0, 1, 1], [], []>} : vector<100x4xbf16>, vector<4x128xbf16>, vector<100x128xf32> -> vector<100x128xf32>
    %135 = arith.addf %129, %134 : vector<100x128xf32>
    %c0_153 = arith.constant 0 : index
    %c0_154 = arith.constant 0 : index
    %136 = vector.load %arg10[%c0_153, %c0_154] : memref<100x128xf32, #tpu.memory_space<vmem>>, vector<100x128xf32>
    tpu.vector_store %arg10[%c0_153, %c0_154], %135 {strides = array<i32>} : memref<100x128xf32, #tpu.memory_space<vmem>>, vector<100x128xf32>,
    %c0_155 = arith.constant 0 : index
    %c0_156 = arith.constant 0 : index
    %137 = vector.load %arg10[%c0_155, %c0_156] : memref<100x128xf32, #tpu.memory_space<vmem>>, vector<100x128xf32>
    %c1_157 = arith.constant 1 : index
    %c10_158 = arith.constant 10 : index
    %c0_159 = arith.constant 0 : index
    %138 = vector.load %arg2[%c1_157, %c10_158, %c0_159] : memref<2x122x4xbf16, #tpu.memory_space<vmem>>, vector<1x100x4xbf16>
    %139 = vector.shape_cast %138 : vector<1x100x4xbf16> to vector<100x4xbf16>
    %c3_160 = arith.constant 3 : index
    %c0_161 = arith.constant 0 : index
    %c0_162 = arith.constant 0 : index
    %140 = vector.load %arg3[%c3_160, %c0_161, %c0_162] : memref<9x4x128xbf16, #tpu.memory_space<vmem>>, vector<1x4x128xbf16>
    %141 = vector.shape_cast %140 : vector<1x4x128xbf16> to vector<4x128xbf16>
    %cst_163 = arith.constant dense<0.000000e+00> : vector<100x128xf32>
    %142 = tpu.matmul %139, %141, %cst_163 {dimension_numbers = #tpu.dot_dimension_numbers<[1], [0], [0], [1], [0, 0, 1, 1], [], []>} : vector<100x4xbf16>, vector<4x128xbf16>, vector<100x128xf32> -> vector<100x128xf32>
    %143 = arith.addf %137, %142 : vector<100x128xf32>
    %c0_164 = arith.constant 0 : index
    %c0_165 = arith.constant 0 : index
    %144 = vector.load %arg10[%c0_164, %c0_165] : memref<100x128xf32, #tpu.memory_space<vmem>>, vector<100x128xf32>
    tpu.vector_store %arg10[%c0_164, %c0_165], %143 {strides = array<i32>} : memref<100x128xf32, #tpu.memory_space<vmem>>, vector<100x128xf32>,
    %c0_166 = arith.constant 0 : index
    %c0_167 = arith.constant 0 : index
    %145 = vector.load %arg10[%c0_166, %c0_167] : memref<100x128xf32, #tpu.memory_space<vmem>>, vector<100x128xf32>
    %c1_168 = arith.constant 1 : index
    %c11_169 = arith.constant 11 : index
    %c0_170 = arith.constant 0 : index
    %146 = vector.load %arg2[%c1_168, %c11_169, %c0_170] : memref<2x122x4xbf16, #tpu.memory_space<vmem>>, vector<1x100x4xbf16>
    %147 = vector.shape_cast %146 : vector<1x100x4xbf16> to vector<100x4xbf16>
    %c4_171 = arith.constant 4 : index
    %c0_172 = arith.constant 0 : index
    %c0_173 = arith.constant 0 : index
    %148 = vector.load %arg3[%c4_171, %c0_172, %c0_173] : memref<9x4x128xbf16, #tpu.memory_space<vmem>>, vector<1x4x128xbf16>
    %149 = vector.shape_cast %148 : vector<1x4x128xbf16> to vector<4x128xbf16>
    %cst_174 = arith.constant dense<0.000000e+00> : vector<100x128xf32>
    %150 = tpu.matmul %147, %149, %cst_174 {dimension_numbers = #tpu.dot_dimension_numbers<[1], [0], [0], [1], [0, 0, 1, 1], [], []>} : vector<100x4xbf16>, vector<4x128xbf16>, vector<100x128xf32> -> vector<100x128xf32>
    %151 = arith.addf %145, %150 : vector<100x128xf32>
    %c0_175 = arith.constant 0 : index
    %c0_176 = arith.constant 0 : index
    %152 = vector.load %arg10[%c0_175, %c0_176] : memref<100x128xf32, #tpu.memory_space<vmem>>, vector<100x128xf32>
    tpu.vector_store %arg10[%c0_175, %c0_176], %151 {strides = array<i32>} : memref<100x128xf32, #tpu.memory_space<vmem>>, vector<100x128xf32>,
    %c0_177 = arith.constant 0 : index
    %c0_178 = arith.constant 0 : index
    %153 = vector.load %arg10[%c0_177, %c0_178] : memref<100x128xf32, #tpu.memory_space<vmem>>, vector<100x128xf32>
    %c1_179 = arith.constant 1 : index
    %c12_180 = arith.constant 12 : index
    %c0_181 = arith.constant 0 : index
    %154 = vector.load %arg2[%c1_179, %c12_180, %c0_181] : memref<2x122x4xbf16, #tpu.memory_space<vmem>>, vector<1x100x4xbf16>
    %155 = vector.shape_cast %154 : vector<1x100x4xbf16> to vector<100x4xbf16>
    %c5_182 = arith.constant 5 : index
    %c0_183 = arith.constant 0 : index
    %c0_184 = arith.constant 0 : index
    %156 = vector.load %arg3[%c5_182, %c0_183, %c0_184] : memref<9x4x128xbf16, #tpu.memory_space<vmem>>, vector<1x4x128xbf16>
    %157 = vector.shape_cast %156 : vector<1x4x128xbf16> to vector<4x128xbf16>
    %cst_185 = arith.constant dense<0.000000e+00> : vector<100x128xf32>
    %158 = tpu.matmul %155, %157, %cst_185 {dimension_numbers = #tpu.dot_dimension_numbers<[1], [0], [0], [1], [0, 0, 1, 1], [], []>} : vector<100x4xbf16>, vector<4x128xbf16>, vector<100x128xf32> -> vector<100x128xf32>
    %159 = arith.addf %153, %158 : vector<100x128xf32>
    %c0_186 = arith.constant 0 : index
    %c0_187 = arith.constant 0 : index
    %160 = vector.load %arg10[%c0_186, %c0_187] : memref<100x128xf32, #tpu.memory_space<vmem>>, vector<100x128xf32>
    tpu.vector_store %arg10[%c0_186, %c0_187], %159 {strides = array<i32>} : memref<100x128xf32, #tpu.memory_space<vmem>>, vector<100x128xf32>,
    %c0_188 = arith.constant 0 : index
    %c0_189 = arith.constant 0 : index
    %161 = vector.load %arg10[%c0_188, %c0_189] : memref<100x128xf32, #tpu.memory_space<vmem>>, vector<100x128xf32>
    %c1_190 = arith.constant 1 : index
    %c20_191 = arith.constant 20 : index
    %c0_192 = arith.constant 0 : index
    %162 = vector.load %arg2[%c1_190, %c20_191, %c0_192] : memref<2x122x4xbf16, #tpu.memory_space<vmem>>, vector<1x100x4xbf16>
    %163 = vector.shape_cast %162 : vector<1x100x4xbf16> to vector<100x4xbf16>
    %c6_193 = arith.constant 6 : index
    %c0_194 = arith.constant 0 : index
    %c0_195 = arith.constant 0 : index
    %164 = vector.load %arg3[%c6_193, %c0_194, %c0_195] : memref<9x4x128xbf16, #tpu.memory_space<vmem>>, vector<1x4x128xbf16>
    %165 = vector.shape_cast %164 : vector<1x4x128xbf16> to vector<4x128xbf16>
    %cst_196 = arith.constant dense<0.000000e+00> : vector<100x128xf32>
    %166 = tpu.matmul %163, %165, %cst_196 {dimension_numbers = #tpu.dot_dimension_numbers<[1], [0], [0], [1], [0, 0, 1, 1], [], []>} : vector<100x4xbf16>, vector<4x128xbf16>, vector<100x128xf32> -> vector<100x128xf32>
    %167 = arith.addf %161, %166 : vector<100x128xf32>
    %c0_197 = arith.constant 0 : index
    %c0_198 = arith.constant 0 : index
    %168 = vector.load %arg10[%c0_197, %c0_198] : memref<100x128xf32, #tpu.memory_space<vmem>>, vector<100x128xf32>
    tpu.vector_store %arg10[%c0_197, %c0_198], %167 {strides = array<i32>} : memref<100x128xf32, #tpu.memory_space<vmem>>, vector<100x128xf32>,
    %c0_199 = arith.constant 0 : index
    %c0_200 = arith.constant 0 : index
    %169 = vector.load %arg10[%c0_199, %c0_200] : memref<100x128xf32, #tpu.memory_space<vmem>>, vector<100x128xf32>
    %c1_201 = arith.constant 1 : index
    %c21_202 = arith.constant 21 : index
    %c0_203 = arith.constant 0 : index
    %170 = vector.load %arg2[%c1_201, %c21_202, %c0_203] : memref<2x122x4xbf16, #tpu.memory_space<vmem>>, vector<1x100x4xbf16>
    %171 = vector.shape_cast %170 : vector<1x100x4xbf16> to vector<100x4xbf16>
    %c7_204 = arith.constant 7 : index
    %c0_205 = arith.constant 0 : index
    %c0_206 = arith.constant 0 : index
    %172 = vector.load %arg3[%c7_204, %c0_205, %c0_206] : memref<9x4x128xbf16, #tpu.memory_space<vmem>>, vector<1x4x128xbf16>
    %173 = vector.shape_cast %172 : vector<1x4x128xbf16> to vector<4x128xbf16>
    %cst_207 = arith.constant dense<0.000000e+00> : vector<100x128xf32>
    %174 = tpu.matmul %171, %173, %cst_207 {dimension_numbers = #tpu.dot_dimension_numbers<[1], [0], [0], [1], [0, 0, 1, 1], [], []>} : vector<100x4xbf16>, vector<4x128xbf16>, vector<100x128xf32> -> vector<100x128xf32>
    %175 = arith.addf %169, %174 : vector<100x128xf32>
    %c0_208 = arith.constant 0 : index
    %c0_209 = arith.constant 0 : index
    %176 = vector.load %arg10[%c0_208, %c0_209] : memref<100x128xf32, #tpu.memory_space<vmem>>, vector<100x128xf32>
    tpu.vector_store %arg10[%c0_208, %c0_209], %175 {strides = array<i32>} : memref<100x128xf32, #tpu.memory_space<vmem>>, vector<100x128xf32>,
    %c0_210 = arith.constant 0 : index
    %c0_211 = arith.constant 0 : index
    %177 = vector.load %arg10[%c0_210, %c0_211] : memref<100x128xf32, #tpu.memory_space<vmem>>, vector<100x128xf32>
    %c1_212 = arith.constant 1 : index
    %c22_213 = arith.constant 22 : index
    %c0_214 = arith.constant 0 : index
    %178 = vector.load %arg2[%c1_212, %c22_213, %c0_214] : memref<2x122x4xbf16, #tpu.memory_space<vmem>>, vector<1x100x4xbf16>
    %179 = vector.shape_cast %178 : vector<1x100x4xbf16> to vector<100x4xbf16>
    %c8_215 = arith.constant 8 : index
    %c0_216 = arith.constant 0 : index
    %c0_217 = arith.constant 0 : index
    %180 = vector.load %arg3[%c8_215, %c0_216, %c0_217] : memref<9x4x128xbf16, #tpu.memory_space<vmem>>, vector<1x4x128xbf16>
    %181 = vector.shape_cast %180 : vector<1x4x128xbf16> to vector<4x128xbf16>
    %cst_218 = arith.constant dense<0.000000e+00> : vector<100x128xf32>
    %182 = tpu.matmul %179, %181, %cst_218 {dimension_numbers = #tpu.dot_dimension_numbers<[1], [0], [0], [1], [0, 0, 1, 1], [], []>} : vector<100x4xbf16>, vector<4x128xbf16>, vector<100x128xf32> -> vector<100x128xf32>
    %183 = arith.addf %177, %182 : vector<100x128xf32>
    %c0_219 = arith.constant 0 : index
    %c0_220 = arith.constant 0 : index
    %184 = vector.load %arg10[%c0_219, %c0_220] : memref<100x128xf32, #tpu.memory_space<vmem>>, vector<100x128xf32>
    tpu.vector_store %arg10[%c0_219, %c0_220], %183 {strides = array<i32>} : memref<100x128xf32, #tpu.memory_space<vmem>>, vector<100x128xf32>,
    %c0_221 = arith.constant 0 : index
    %c0_222 = arith.constant 0 : index
    %185 = vector.load %arg10[%c0_221, %c0_222] : memref<100x128xf32, #tpu.memory_space<vmem>>, vector<100x128xf32>
    %186 = arith.truncf %185 : vector<100x128xf32> to vector<100x128xbf16>
    %c1_223 = arith.constant 1 : index
    %c0_224 = arith.constant 0 : index
    %c0_225 = arith.constant 0 : index
    %187 = vector.load %arg6[%c1_223, %c0_224, %c0_225] : memref<2x100x128xbf16, #tpu.memory_space<vmem>>, vector<1x100x128xbf16>
    %188 = vector.shape_cast %187 : vector<1x100x128xbf16> to vector<100x128xbf16>
    %189 = vector.shape_cast %186 : vector<100x128xbf16> to vector<1x100x128xbf16>
    tpu.vector_store %arg6[%c1_223, %c0_224, %c0_225], %189 {strides = array<i32>} : memref<2x100x128xbf16, #tpu.memory_space<vmem>>, vector<1x100x128xbf16>,
    %c1_226 = arith.constant 1 : index
    %c0_227 = arith.constant 0 : index
    %c0_228 = arith.constant 0 : index
    %190 = vector.load %arg5[%c1_226, %c0_227, %c0_228] : memref<2x100x1xf32, #tpu.memory_space<vmem>>, vector<1x100x1xf32>
    %191 = vector.shape_cast %190 : vector<1x100x1xf32> to vector<100x1xf32>
    %192 = vector.broadcast %191 : vector<100x1xf32> to vector<100x128xf32>
    %193 = arith.mulf %185, %192 : vector<100x128xf32>
    %c0_229 = arith.constant 0 : index
    %c0_230 = arith.constant 0 : index
    %c0_231 = arith.constant 0 : index
    %194 = vector.load %arg7[%c0_229, %c0_230, %c0_231] : memref<1x1x128xf32, #tpu.memory_space<vmem>>, vector<1x1x128xf32>
    %195 = vector.shape_cast %194 : vector<1x1x128xf32> to vector<1x128xf32>
    %cst_232 = arith.constant dense<0.000000e+00> : vector<128xf32>
    %196 = vector.multi_reduction <add>, %193, %cst_232 [0] : vector<100x128xf32> to vector<128xf32>
    %197 = vector.shape_cast %196 : vector<128xf32> to vector<1x128xf32>
    %198 = arith.addf %195, %197 : vector<1x128xf32>
    %c0_233 = arith.constant 0 : index
    %c0_234 = arith.constant 0 : index
    %c0_235 = arith.constant 0 : index
    %199 = vector.load %arg7[%c0_233, %c0_234, %c0_235] : memref<1x1x128xf32, #tpu.memory_space<vmem>>, vector<1x1x128xf32>
    %200 = vector.shape_cast %199 : vector<1x1x128xf32> to vector<1x128xf32>
    %201 = vector.shape_cast %198 : vector<1x128xf32> to vector<1x1x128xf32>
    tpu.vector_store %arg7[%c0_233, %c0_234, %c0_235], %201 {strides = array<i32>} : memref<1x1x128xf32, #tpu.memory_space<vmem>>, vector<1x1x128xf32>,
    %c0_236 = arith.constant 0 : index
    %c0_237 = arith.constant 0 : index
    %c0_238 = arith.constant 0 : index
    %202 = vector.load %arg8[%c0_236, %c0_237, %c0_238] : memref<1x128x128xf32, #tpu.memory_space<vmem>>, vector<1x128x128xf32>
    %203 = vector.shape_cast %202 : vector<1x128x128xf32> to vector<128x128xf32>
    %cst_239 = arith.constant dense<0.000000e+00> : vector<128x128xf32>
    %204 = tpu.matmul %193, %193, %cst_239 {dimension_numbers = #tpu.dot_dimension_numbers<[0], [0], [1], [1], [0, 1, 1, 1], [], []>} : vector<100x128xf32>, vector<100x128xf32>, vector<128x128xf32> -> vector<128x128xf32>
    %205 = arith.addf %203, %204 : vector<128x128xf32>
    %c0_240 = arith.constant 0 : index
    %c0_241 = arith.constant 0 : index
    %c0_242 = arith.constant 0 : index
    %206 = vector.load %arg8[%c0_240, %c0_241, %c0_242] : memref<1x128x128xf32, #tpu.memory_space<vmem>>, vector<1x128x128xf32>
    %207 = vector.shape_cast %206 : vector<1x128x128xf32> to vector<128x128xf32>
    %208 = vector.shape_cast %205 : vector<128x128xf32> to vector<1x128x128xf32>
    tpu.vector_store %arg8[%c0_240, %c0_241, %c0_242], %208 {strides = array<i32>} : memref<1x128x128xf32, #tpu.memory_space<vmem>>, vector<1x128x128xf32>,
    %c1_243 = arith.constant 1 : index
    %c0_244 = arith.constant 0 : index
    %c0_245 = arith.constant 0 : index
    %209 = vector.load %arg2[%c1_243, %c0_244, %c0_245] : memref<2x122x4xbf16, #tpu.memory_space<vmem>>, vector<1x122x4xbf16>
    %210 = vector.shape_cast %209 : vector<1x122x4xbf16> to vector<122x4xbf16>
    %c0_246 = arith.constant 0 : index
    %c0_247 = arith.constant 0 : index
    %c0_248 = arith.constant 0 : index
    %211 = vector.load %arg9[%c0_246, %c0_247, %c0_248] : memref<1x4x4xf32, #tpu.memory_space<vmem>>, vector<1x4x4xf32>
    %212 = vector.shape_cast %211 : vector<1x4x4xf32> to vector<4x4xf32>
    %cst_249 = arith.constant dense<0.000000e+00> : vector<4x4xf32>
    %213 = tpu.matmul %210, %210, %cst_249 {dimension_numbers = #tpu.dot_dimension_numbers<[0], [0], [1], [1], [0, 1, 1, 1], [], []>} : vector<122x4xbf16>, vector<122x4xbf16>, vector<4x4xf32> -> vector<4x4xf32>
    %214 = arith.addf %212, %213 : vector<4x4xf32>
    %c0_250 = arith.constant 0 : index
    %c0_251 = arith.constant 0 : index
    %c0_252 = arith.constant 0 : index
    %215 = vector.load %arg9[%c0_250, %c0_251, %c0_252] : memref<1x4x4xf32, #tpu.memory_space<vmem>>, vector<1x4x4xf32>
    %216 = vector.shape_cast %215 : vector<1x4x4xf32> to vector<4x4xf32>
    %217 = vector.shape_cast %214 : vector<4x4xf32> to vector<1x4x4xf32>
    tpu.vector_store %arg9[%c0_250, %c0_251, %c0_252], %217 {strides = array<i32>} : memref<1x4x4xf32, #tpu.memory_space<vmem>>, vector<1x4x4xf32>,
    return
  }
  func.func @transform_0(%arg0: i32, %arg1: i32) -> (i32, i32, i32) {
    %c1_i32 = arith.constant 1 : i32
    %0 = arith.muli %arg0, %c1_i32 : i32
    %1 = arith.addi %0, %arg1 : i32
    %c0_i32 = arith.constant 0 : i32
    %c0_i32_0 = arith.constant 0 : i32
    %c0_i32_1 = arith.constant 0 : i32
    return %1, %c0_i32, %c0_i32_0 : i32, i32, i32
  }
  func.func @transform_1(%arg0: i32, %arg1: i32) -> (i32, i32, i32) {
    %c0_i32 = arith.constant 0 : i32
    %c0_i32_0 = arith.constant 0 : i32
    %c0_i32_1 = arith.constant 0 : i32
    %c0_i32_2 = arith.constant 0 : i32
    return %c0_i32, %c0_i32_0, %c0_i32_1 : i32, i32, i32
  }
  func.func @transform_2(%arg0: i32, %arg1: i32) -> (i32, i32) {
    %c0_i32 = arith.constant 0 : i32
    %c0_i32_0 = arith.constant 0 : i32
    %c0_i32_1 = arith.constant 0 : i32
    return %c0_i32, %c0_i32_0 : i32, i32
  }
  func.func @transform_3(%arg0: i32, %arg1: i32) -> (i32, i32, i32) {
    %c1_i32 = arith.constant 1 : i32
    %0 = arith.muli %arg0, %c1_i32 : i32
    %1 = arith.addi %0, %arg1 : i32
    %c0_i32 = arith.constant 0 : i32
    %c0_i32_0 = arith.constant 0 : i32
    %c0_i32_1 = arith.constant 0 : i32
    return %1, %c0_i32, %c0_i32_0 : i32, i32, i32
  }
  func.func @transform_4(%arg0: i32, %arg1: i32) -> (i32, i32, i32) {
    %c1_i32 = arith.constant 1 : i32
    %0 = arith.muli %arg0, %c1_i32 : i32
    %1 = arith.addi %0, %arg1 : i32
    %c0_i32 = arith.constant 0 : i32
    %c0_i32_0 = arith.constant 0 : i32
    %c0_i32_1 = arith.constant 0 : i32
    return %1, %c0_i32, %c0_i32_0 : i32, i32, i32
  }
  func.func @transform_5(%arg0: i32, %arg1: i32) -> (i32, i32, i32) {
    %c0_i32 = arith.constant 0 : i32
    %c0_i32_0 = arith.constant 0 : i32
    %c0_i32_1 = arith.constant 0 : i32
    return %arg0, %c0_i32, %c0_i32_0 : i32, i32, i32
  }
  func.func @transform_6(%arg0: i32, %arg1: i32) -> (i32, i32, i32) {
    %c0_i32 = arith.constant 0 : i32
    %c0_i32_0 = arith.constant 0 : i32
    %c0_i32_1 = arith.constant 0 : i32
    return %arg0, %c0_i32, %c0_i32_0 : i32, i32, i32
  }
  func.func @transform_7(%arg0: i32, %arg1: i32) -> (i32, i32, i32) {
    %c0_i32 = arith.constant 0 : i32
    %c0_i32_0 = arith.constant 0 : i32
    %c0_i32_1 = arith.constant 0 : i32
    return %arg0, %c0_i32, %c0_i32_0 : i32, i32, i32
  }
}

</mosaic_0001>

<bundles_post_ra>
// kernel: tpu_custom_call.1
= control target key start
LH: loop header
LB: loop body
LE: loop exit
PB: predicated region body
PF: predicated region fallthrough
CT: control target
= control target key end

     0   :  { %s9558_s0 = inlined_call_operand.vmem [shape: bf16[4,122,4], index: 0, kind: input, shape index: {}]   ;;  %s9559_s1 = inlined_call_operand.vmem [shape: bf16[9,4,128], index: 1, kind: input, shape index: {}]   ;;  %s9560_s2 = inlined_call_operand.vmem [shape: f32[1,128], index: 2, kind: input, shape index: {}]   ;;  %s9561_s3 = inlined_call_operand.vmem [shape: f32[4,100,1], index: 3, kind: input, shape index: {}]   ;;  %s9562_s4 = inlined_call_operand.vmem [shape: bf16[4,100,128], index: 4, kind: output, shape index: {0}]   ;;  %s9563_s5 = inlined_call_operand.hbm [shape: f32[2,1,128], index: 5, kind: output, shape index: {1}]   ;;  %s9564_s6 = inlined_call_operand.hbm [shape: f32[2,128,128], index: 6, kind: output, shape index: {2}]   ;;  %s9565_s7 = inlined_call_operand.hbm [shape: f32[2,4,4], index: 7, kind: output, shape index: {3}]  }
   0x1   :  { %9574 = sst [smem:[#allocation21_spill]] %s9558_s0 }
   0x2   :  { %9575 = sst [smem:[#allocation22_spill]] %s9559_s1 }
   0x3   :  { %13 = vsyncpa [#allocation4], 0 }
   0x4   :  { %15 = vsyncpa [#allocation4 + $0x1], 0 }
   0x5   :  { %16 = vsyncpa [#allocation6], 0 }
   0x6   :  { %18 = vsyncpa [#allocation6 + $0x1], 0  ;;  %s7866_s24 = smov 0   ;;  %s7868_s25 = smov 0  }
   0x7   :  { %s7870_s26 = smov 0   ;;  %s7872_s27 = smov 0  }
   0x8   :  { %s7874_s28 = smov 0   ;;  %s7876_s29 = smov 0  }
   0x9 LB: > { %s9573_s30 = sadd.s32 4294967295, %s7816_s29   ;;  %s9572_s8 = sadd.s32 4294967294, %s7816_s29   ;;  %s7816_s29 = sphi %s7876_s29, %s24_s29   ;;  %s7812_s28 = sphi %s7874_s28, %s9609_s28   ;;  %s7808_s27 = sphi %s7872_s27, %s9608_s27   ;;  %s7804_s26 = sphi %s7870_s26, %s9607_s26   ;;  %s7800_s25 = sphi %s7868_s25, %s9606_s25   ;;  %s7796_s24 = sphi %s7866_s24, %s9605_s24  }
   0xa   : > { %s36_s9 = sadd.s32 1, %s7812_s28  ;;  %s169_s10 = sadd.s32 1, %s7804_s26 }
   0xb   : > { %p38_p0 = scmp.ge.s32.totalorder %s36_s9, 2  ;;  %p179_p1 = scmp.ne.s32.totalorder %s7804_s26, %s7800_s25 }
   0xc   : > { %p180_p2 = scmp.eq.s32.totalorder %s9573_s30, 1  ;;  %p185_p3 = scmp.ne.s32.totalorder %s7800_s25, %s7796_s24 }
   0xd   : > { %s9611_s9 = smov (%p38_p0, %s36_s9), 0  ;;  %p186_p5 = scmp.eq.s32.totalorder %s9572_s8, 1 }
   0xe   : > { %p7908_p4 = por %p180_p2, %p179_p1  ;;  %s166_s12 = ssub.s32 %s7812_s28, %s9611_s9 }
   0xf   : > { %p5940_p6 = scmp.ge.s32.totalorder %s7816_s29, 1  ;;  %p167_p7 = scmp.eq.s32.totalorder %s166_s12, 0 }
  0x10   : > { %p7917_p8 = por %p186_p5, %p185_p3  ;;  %p286_p9 = scmp.lt.s32.totalorder %s7816_s29, 3 }
  0x11   : > { %s7923_s14 = scalar_select %p167_p7, %s7804_s26, %s169_s10  }
  0x12   : > { %p287_p10 = pnand %p5940_p6, %p286_p9 }
  0x14   : > { %290 = sbr.rel (%p287_p10) target bundleno = 1509 (0x5e5), region = 36 }
  0x19   : > { %s9578_s1 = sld [smem:[#allocation22_spill]]  ;;  %vm496_vm0 = vcmask 1041408   ;;  %s5943_s17 = sshll.u32 %s7808_s27, 1  ;;  %v9566_v1 = vmov 0.0   ;;  %vm7819_vm1 = vmmov 0   ;;  %vm474_vm2 = vcmask 31744  }
  0x1a   : > { %6779 = vmatprep.subr.bf16.mxu0 %v9566_v1  ;;  %6781 = vmatprep.mubr.msk.bf16.mxu0 %vm7819_vm1, %v9566_v1  ;;  %p345_p11 = scmp.lt.s32.totalorder %s5943_s17, 3  ;;  %s9579_s0 = sld [smem:[#allocation21_spill]]  ;;  %vm675_vm3 = vsmask.f32 7424  ;;  %v7820_v51 = vmov 0   ;;  %vm930_vm4 = vcmask 1046528  }
  0x1b   : > { %6809 = vmatprep.subr.bf16.mxu1 %v9566_v1  ;;  %6811 = vmatprep.mubr.msk.bf16.mxu1 %vm7819_vm1, %v9566_v1  ;;  %vm1355_vm5 = vsmask.f32 6400  ;;  %vm1617_vm6 = vcmask 1045504   ;;  %vm2045_vm7 = vsmask.f32 5376  ;;  %vm2310_vm8 = vcmask 1044480  }
  0x1c   : > { %s9613_s17 = smov (!%p345_p11, %s5943_s17), 3  ;;  %7531 = vset.pattern.permute.xlu0 %v7820_v51  ;;  %7532 = vset.pattern.permute.xlu1 %v7820_v51  ;;  %s8448_s16 = sand.u32 1, %s7800_s25   ;;  %vm2644_vm9 = vcmask 1043456   ;;  %vm2703_vm10 = vcmask 818176   ;;  %vm3013_vm11 = vcmask 998400   ;;  %vm392_vm12 = vcmask 27648  }
  0x1d   : > { %s6466_s22 = sshll.u32 %s9613_s17, 6  ;;  %s7459_s18 = smul.u32 104, %s9613_s17 }
  0x1e   : > { %s7460_s19 = smul.u32 52, %s9613_s17  ;;  %s5942_s20 = sshll.u32 %s8448_s16, 2 }
  0x1f   : > { %v440_v0 = vld [vmem:[%s9578_s1] sm:$0x3]  ;;  %v5965_v3 = vld [vmem:[%s9578_s1 + $0x2] sm:$0x3]  ;;  %v5980_v5 = vld [vmem:[%s9578_s1 + $0x4] sm:$0x3]  ;;  %s8020_s21 = scalar_lea.vmem %s9561_s3, %s7459_s18 }
  0x20   : > { %v498_v2 = vsel %vm496_vm0, %v440_v0, 0  ;;  %v753_v4 = vsel %vm496_vm0, %v5965_v3, 0  ;;  %s7951_s12 = scalar_lea.vmem %s9579_s0, %s6466_s22  ;;  %v966_v7 = vsel %vm496_vm0, %v5980_v5, 0  ;;  %v5995_v17 = vld [vmem:[%s9578_s1 + $0x6] sm:$0x3]  ;;  %v2542_v63 = vld [vmem:[%s8020_s21 + $0x8] sm:$0xff]  ;;  %s8508_s23 = scalar_lea.vmem %s9562_s4, %s7460_s19 }
  0x21   : > { %6780 = vmatpush3.bf16.msra.mxu0 %v498_v2  ;;  %6810 = vmatpush3.bf16.msra.mxu1 %v753_v4  ;;  %v7533_v6 = vld [vmem:[%s7951_s12] sm:$0xff]   ;;  %v7536_v9 = vld [vmem:[%s7951_s12 + $0x8] sm:$0xff]   ;;  %v7538_v13 = vld [vmem:[%s7951_s12 + $0x10] sm:$0xff]   ;;  %v1178_v21 = vsel %vm496_vm0, %v5995_v17, 0  ;;  %s8453_s18 = scalar_lea.vmem [#allocation3], %s8448_s16  ;;  %s8808_s10 = scalar_lea.vmem [#allocation7], %s5942_s20 }
  0x22   : > { %6839 = vmatprep.subr.bf16.mxu0 %v9566_v1  ;;  %6869 = vmatprep.subr.bf16.mxu1 %v9566_v1  ;;  %v7535_v8 = vld [vmem:[%s7951_s12] sm:$0xff]   ;;  %v684_v12 = vshll.u32 %v7536_v9, 16  ;;  %v7534_v14 = vld [vmem:[%s7951_s12 + $0x8] sm:$0xff]   ;;  %v688_v19 = vshrl.u32 %v7536_v9, 16  ;;  %v692_v20 = vshll.u32 %v7538_v13, 16  ;;  %v7540_v25 = vld [vmem:[%s7951_s12 + $0x18] sm:$0xff]  }
  0x23   : > { %v677_v10 = vshrl.u32 %v7535_v8, 16  ;;  %v679_v11 = vshll.u32 %v7535_v8, 16  ;;  %v7537_v26 = vld [vmem:[%s7951_s12 + $0x10] sm:$0xff]   ;;  %v696_v28 = vshrl.u32 %v7538_v13, 16  ;;  %v700_v29 = vshll.u32 %v7540_v25, 16  ;;  %v7542_v32 = vld [vmem:[%s7951_s12 + $0x20] sm:$0xff]  }
  0x24   : > { %6782 = vmatmul.mubr.msk.bf16.vlgmr.msra.gmra.mxu0 %vm474_vm2, %v7533_v6  ;;  %v686_v16 = vrot.slane %v684_v12, 1  ;;  %v694_v24 = vrot.slane %v692_v20, 1  ;;  %v7539_v33 = vld [vmem:[%s7951_s12 + $0x18] sm:$0xff]   ;;  %v704_v35 = vshrl.u32 %v7540_v25, 16  ;;  %v708_v36 = vshll.u32 %v7542_v32, 16  ;;  %v7544_v37 = vld [vmem:[%s7951_s12 + $0x28] sm:$0xff]  }
  0x25   : > { %6840 = vmatpush3.bf16.msra.mxu0 %v966_v7  ;;  %6785 = vmatprep.mubr.msk.bf16.mxu0 %vm7819_vm1, %v9566_v1  ;;  %v681_v15 = vrot.slane %v679_v11, 1  ;;  %v702_v31 = vrot.slane %v700_v29, 1  ;;  %v7541_v40 = vld [vmem:[%s7951_s12 + $0x20] sm:$0xff]   ;;  %v716_v41 = vshll.u32 %v7544_v37, 16  ;;  %v712_v43 = vshrl.u32 %v7542_v32, 16  ;;  %v7543_v47 = vld [vmem:[%s7951_s12 + $0x28] sm:$0xff]  }
  0x26   : > { %6899 = vmatprep.subr.bf16.mxu0 %v9566_v1  ;;  %v690_v23 = vor.u32 %v688_v19, %v686_v16  ;;  %v698_v30 = vor.u32 %v696_v28, %v694_v24  ;;  %v710_v39 = vrot.slane %v708_v36, 1  ;;  %v7546_v45 = vld [vmem:[%s7951_s12 + $0x30] ss:$0 sps:$4 sm:$0x77]   ;;  %v720_v49 = vshrl.u32 %v7544_v37, 16  ;;  %v7548_v56 = vld [vmem:[%s7951_s12 + $0x8] sm:$0xff]  }
  0x27   : > { %v682_v18 = vor.u32 %v681_v15, %v677_v10  ;;  %v706_v38 = vor.u32 %v704_v35, %v702_v31  ;;  %v718_v44 = vrot.slane %v716_v41, 1  ;;  %v724_v50 = vshll.u32 %v7546_v45, 16  ;;  %v7545_v54 = vld [vmem:[%s7951_s12 + $0x30] ss:$0 sps:$4 sm:$0x33]   ;;  %v2541_v60 = vld [vmem:[%s8020_s21] sm:$0xff] }
  0x28   : > { %v695_v27 = vsel %vm675_vm3, %v690_v23, %v694_v24  ;;  %v703_v34 = vsel %vm675_vm3, %v698_v30, %v702_v31  ;;  %v714_v46 = vor.u32 %v712_v43, %v710_v39  ;;  %v7547_v55 = vld [vmem:[%s7951_s12] sm:$0xfe]   ;;  %v932_v59 = vrot.slane %v7548_v56, 1  ;;  %v6010_v61 = vld [vmem:[%s9578_s1 + $0x8] sm:$0x3]  ;;  %2556 = vperm.xlu0 %7531, %v2541_v60   ;;  %v7549_v2 = vld [vmem:[%s7951_s12 + $0x10] sm:$0xff]  }
  0x29   : > { %v687_v22 = vsel %vm675_vm3, %v682_v18, %v686_v16  ;;  %v711_v42 = vsel %vm675_vm3, %v706_v38, %v710_v39  ;;  %v722_v52 = vor.u32 %v720_v49, %v718_v44  ;;  %v726_v53 = vrot.slane %v724_v50, 1  ;;  %v7551_v5 = vld [vmem:[%s7951_s12 + $0xc] sm:$0xff]   ;;  %v7550_v6 = vld [vmem:[%s7951_s12 + $0x4] sm:$0xfe]   ;;  %v8051_v12 = vld [vmem:[%s9560_s2] ss:$0 sm:$0xff] }
  0x2a   : > { %6812 = vmatmul.mubr.msk.bf16.vlgmr.msra.gmra.mxu1 %vm474_vm2, %v687_v22  ;;  %v719_v48 = vsel %vm675_vm3, %v714_v46, %v718_v44  ;;  %v931_v58 = vrot.slane %v7547_v55, 1  ;;  %v728_v62 = vshrl.u32 %v7546_v45, 16  ;;  %v1440_v3 = vsel %vm496_vm0, %v6010_v61, 0  ;;  %v2545_v7 = vld [vmem:[%s8020_s21 + $0x20] sm:$0xff]  ;;  %v6025_v11 = vld [vmem:[%s9578_s1 + $0xa] sm:$0x3] }
  0x2b   : > { %6815 = vmatprep.mubr.msk.bf16.mxu1 %vm7819_vm1, %v9566_v1  ;;  %6870 = vmatpush3.bf16.msra.mxu1 %v1178_v21  ;;  %v727_v57 = vsel %vm675_vm3, %v722_v52, %v726_v53  ;;  %v934_v8 = vrot.slane %v7549_v2, 1  ;;  %v1143_v9 = vrot.slane %v7550_v6, 1  ;;  %v1144_v10 = vrot.slane %v7551_v5, 1  ;;  %v2547_v13 = vld [vmem:[%s8020_s21 + $0x30] sm:$0xff]  ;;  %413 = vst [vmem:[#allocation2 + $0x40] sm:$0xf] %v8051_v12 }
  0x2c   : > { %6786 = vmatmul.mubr.msk.bf16.gmra.mxu0 %vm474_vm2, %v7534_v14  ;;  %6929 = vmatprep.subr.bf16.mxu1 %v9566_v1  ;;  %v933_v0 = vsel %vm930_vm4, %v931_v58, %v932_v59  ;;  %v730_v4 = vor.u32 %v728_v62, %v726_v53  ;;  %3064 = vst [vmem:[#allocation2 + $0x30] sm:$0xff] %v8051_v12  ;;  %3065 = vst [vmem:[#allocation2] sm:$0xff] %v8051_v12  ;;  %v7552_v15 = vld [vmem:[%s7951_s12 + $0x18] sm:$0xff]   ;;  %v1653_v18 = vsel %vm496_vm0, %v6025_v11, 0  ;;  %v2549_v20 = vld [vmem:[%s8020_s21 + $0x40] sm:$0xff]  ;;  %s5941_s19 = sshll.u32 %s8448_s16, 7 }
  0x2d   : > { %6789 = vmatprep.mubr.msk.bf16.mxu0 %vm7819_vm1, %v9566_v1  ;;  %2561 = vperm.xlu0 %7531, %v2542_v63   ;;  %3066 = vst [vmem:[#allocation2 + $0x58] sm:$0xff] %v8051_v12  ;;  %3067 = vst [vmem:[#allocation2 + $0x18] sm:$0xff] %v8051_v12  ;;  %v935_v14 = vsel %vm930_vm4, %v932_v59, %v934_v8  ;;  %v7553_v16 = vld [vmem:[%s7951_s12 + $0x14] sm:$0xff]   ;;  %v1145_v17 = vsel %vm930_vm4, %v1143_v9, %v1144_v10  ;;  %v936_v19 = vrot.slane %v7552_v15, 1  ;;  %v7554_v22 = vld [vmem:[%s7951_s12 + $0x20] sm:$0xff]   ;;  %s8921_s20 = scalar_lea.vmem [#allocation5], %s5941_s19 }
  0x2e   : > { %3068 = vst [vmem:[#allocation2 + $0x50] sm:$0xff] %v8051_v12  ;;  %3069 = vst [vmem:[#allocation2 + $0x20] sm:$0xff] %v8051_v12  ;;  %v1146_v21 = vrot.slane %v7553_v16, 1  ;;  %v2551_v24 = vld [vmem:[%s8020_s21 + $0x50] sm:$0xff]  ;;  %v7555_v25 = vld [vmem:[%s7951_s12 + $0x1c] sm:$0xff]   ;;  %s5744_s19 = sshll.u32 %s8453_s18, 4  ;;  %s5745_s19 = int_to_ptr.vmem [resolvable:$true] %s5744_s19 }
  0x2f   : > { %3070 = vst [vmem:[#allocation2 + $0x8] sm:$0xff] %v8051_v12  ;;  %3071 = vst [vmem:[#allocation2 + $0x38] sm:$0xff] %v8051_v12  ;;  %v937_v23 = vsel %vm930_vm4, %v934_v8, %v936_v19  ;;  %v2553_v28 = vld [vmem:[%s8020_s21 + $0x60] sm:$0xf]  ;;  %v1148_v29 = vrot.slane %v7555_v25, 1  ;;  %v7556_v31 = vld [vmem:[%s7951_s12 + $0x28] sm:$0xff]  }
  0x30   : > { %3072 = vst [vmem:[#allocation2 + $0x28] sm:$0xff] %v8051_v12  ;;  %3073 = vst [vmem:[#allocation2 + $0x48] sm:$0xff] %v8051_v12  ;;  %v7558_v32 = vld [vmem:[%s7951_s12 + $0x30] ss:$0 sps:$4 sm:$0x77]   ;;  %v940_v36 = vrot.slane %v7556_v31, 1 }
  0x31   : > { %2576 = vperm.xlu0 %7531, %v2545_v7   ;;  %3074 = vst [vmem:[#allocation2 + $0x10] sm:$0xff] %v8051_v12  ;;  %3075 = vst [vmem:[#allocation2 + $0x60] sm:$0xff] %v8051_v12  ;;  %v7559_v35 = vld [vmem:[%s7951_s12 + $0x2c] sm:$0xff]   ;;  %v942_v39 = vrot.slane %v7558_v32, 1  ;;  %v7561_v44 = vld [vmem:[%s7951_s12 + $0x4] sm:$0xfe]  }
  0x32   : > { %6816 = vmatmul.mubr.msk.bf16.gmra.mxu1 %vm474_vm2, %v695_v27  ;;  %v938_v27 = vrot.slane %v7554_v22, 1  ;;  %v7562_v37 = vld [vmem:[%s7951_s12 + $0xc] sm:$0xff]   ;;  %v1152_v41 = vrot.slane %v7559_v35, 1  ;;  %v7560_v45 = vld [vmem:[%s7951_s12 + $0x34] ss:$0 sps:$4 sm:$0x77]  }
  0x33   : > { %6819 = vmatprep.mubr.msk.bf16.mxu1 %vm7819_vm1, %v9566_v1  ;;  %v7563_v46 = vld [vmem:[%s7951_s12 + $0x14] sm:$0xff]   ;;  %v1357_v49 = vshrl.u32 %v7561_v44, 16  ;;  %v1368_v50 = vshll.u32 %v7562_v37, 16  ;;  %v1154_v51 = vrot.slane %v7560_v45, 1  ;;  %v1360_v55 = vshll.u32 %v7561_v44, 16  ;;  %v7566_v60 = vld [vmem:[%s7951_s12 + $0x1c] sm:$0xff]  }
  0x34   : > { %6790 = vmatmul.mubr.msk.bf16.gmra.mxu0 %vm474_vm2, %v7537_v26  ;;  %v1147_v26 = vsel %vm930_vm4, %v1144_v10, %v1146_v21  ;;  %v939_v30 = vsel %vm930_vm4, %v936_v19, %v938_v27  ;;  %v1374_v53 = vshrl.u32 %v7563_v46, 16  ;;  %v1377_v61 = vshll.u32 %v7563_v46, 16  ;;  %v7589_v62 = vld [vmem:[%s7951_s12] sm:$0xff]   ;;  %v7592_v7 = vld [vmem:[%s7951_s12 + $0x8] sm:$0xff]   ;;  %v7567_v19 = vld [vmem:[%s7951_s12 + $0x14] sm:$0xff]   ;;  %375 = vst [vmem:[%s8453_s18] sm:$0x1] %v9566_v1 }
  0x35   : > { %6793 = vmatprep.mubr.msk.bf16.mxu0 %vm7819_vm1, %v9566_v1  ;;  %2586 = vperm.xlu0 %7531, %v2547_v13   ;;  %v1370_v58 = vrot.slane %v1368_v50, 2  ;;  %v1362_v59 = vrot.slane %v1360_v55, 2  ;;  %v1155_v63 = vsel %vm930_vm4, %v1152_v41, %v1154_v51  ;;  %v1383_v5 = vshrl.u32 %v7566_v60, 16  ;;  %v7569_v35 = vld [vmem:[%s7951_s12 + $0x1c] sm:$0xff]   ;;  %v7572_v46 = vld [vmem:[%s7951_s12 + $0x34] ss:$0 sps:$4 sm:$0xff]  }
  0x36   : > { %v1386_v6 = vshll.u32 %v7566_v60, 16  ;;  %v1376_v9 = vrot.slane %v1374_v53, 1  ;;  %v1379_v10 = vrot.slane %v1377_v61, 2  ;;  %v1410_v50 = vshrl.u32 %v7572_v46, 16  ;;  %v6404_v60 = vld [vmem:[%s8020_s21 + $0x70] sm:$0xff]  ;;  %s5717_s22 = scalar_lea.sflag [#allocation4], %s8448_s16 }
  0x37   : > { %v1385_v15 = vrot.slane %v1383_v5, 1  ;;  %v7575_v5 = vld [vmem:[%s7951_s12 + $0x8] sm:$0xfc]   ;;  %393 = vst.msk [vmem:[%s8808_s10] sm:$0xf] %vm392_vm12, %v9566_v1  ;;  %s7684_s17 = scalar_lea.vmem %s5745_s19, 16 }
  0x38   : > { %v1388_v16 = vrot.slane %v1386_v6, 2  ;;  %v7576_v6 = vld [vmem:[%s7951_s12 + $0x10] sm:$0xff]   ;;  %p7685_p12 = scmp.ne.s32.totalorder %s5745_s19, %s7684_s17  ;;  %s7821_s8 = smov [#allocation3]  }
  0x39   : > { %2596 = vperm.xlu0 %7531, %v2549_v20   ;;  %v6055_v20 = vld [vmem:[%s9578_s1 + $0xe] sm:$0x3]  ;;  %s7688_s30 = sshll.u32 %s7821_s8, 4  ;;  %s7689_s30 = int_to_ptr.vmem [resolvable:$false] %s7688_s30 }
  0x3a   : > { %6820 = vmatmul.mubr.msk.bf16.gmra.mxu1 %vm474_vm2, %v703_v34  ;;  %v1149_v34 = vsel %vm930_vm4, %v1146_v21, %v1148_v29  ;;  %v7595_v21 = vld [vmem:[%s7951_s12 + $0x18] sm:$0xff]   ;;  %p7686_p13 = pnand %p7685_p12, %p7908_p4  ;;  %s7690_s0 = scalar_lea.vmem %s7689_s30, 32 }
  0x3b   : > { %6823 = vmatprep.mubr.msk.bf16.mxu1 %vm7819_vm1, %v9566_v1  ;;  %p7691_p1 = scmp.lt.s32.totalorder %s5745_s19, %s7689_s30  ;;  %p7692_p2 = scmp.lt.s32.totalorder %s7690_s0, %s7684_s17 }
  0x3c   : > { %6794 = vmatmul.mubr.msk.bf16.gmra.mxu0 %vm474_vm2, %v7539_v33  ;;  %v7557_v33 = vld [vmem:[%s7951_s12 + $0x24] sm:$0xff]   ;;  %p7687_p0 = pneg %p7686_p13 }
  0x3d   : > { %6797 = vmatprep.mubr.msk.bf16.mxu0 %vm7819_vm1, %v9566_v1  ;;  %2606 = vperm.xlu0 %7531, %v2551_v24   ;;  %v1150_v38 = vrot.slane %v7557_v33, 1  ;;  %v7598_v33 = vld [vmem:[%s7951_s12 + $0x28] sm:$0xff]   ;;  %p7693_p3 = por %p7692_p2, %p7691_p1 }
  0x3f   : > { %v1151_v43 = vsel %vm930_vm4, %v1148_v29, %v1150_v38  ;;  %v7596_v29 = vld [vmem:[%s7951_s12 + $0x20] sm:$0xff]   ;;  %p7694_p5 = pnand %p7693_p3, %p7687_p0 }
  0x41   : > { %2616 = vperm.xlu0 %7531, %v2553_v28   ;;  %v2130_v28 = vsel %vm496_vm0, %v6055_v20, 0  ;;  %v2543_v20 = vld [vmem:[%s8020_s21 + $0x10] sm:$0xff] }
  0x42   : > { %6824 = vmatmul.mubr.msk.bf16.gmra.mxu1 %vm474_vm2, %v711_v42  ;;  %v1365_v42 = vshrl.u32 %v7562_v37, 16  ;;  %2566 = vperm.xlu1 %7532, %v2543_v20  }
  0x43   : > { %6827 = vmatprep.mubr.msk.bf16.mxu1 %vm7819_vm1, %v9566_v1 }
  0x44   : > { %6798 = vmatmul.mubr.msk.bf16.gmra.mxu0 %vm474_vm2, %v7541_v40  ;;  %v941_v40 = vsel %vm930_vm4, %v938_v27, %v940_v36  ;;  %v1367_v56 = vrot.slane %v1365_v42, 1  ;;  %v7570_v27 = vld [vmem:[%s7951_s12 + $0x2c] sm:$0xff]   ;;  %v7601_v42 = vld [vmem:[%s7951_s12 + $0x38] sm:$0x1f]  }
  0x45   : > { %6801 = vmatprep.mubr.msk.bf16.mxu0 %vm7819_vm1, %v9566_v1  ;;  %v1404_v37 = vshll.u32 %v7570_v27, 16 }
  0x47   : > { %v1406_v45 = vrot.slane %v1404_v37, 2 }
  0x4a   : > { %6828 = vmatmul.mubr.msk.bf16.gmra.mxu1 %vm474_vm2, %v719_v48  ;;  %v943_v48 = vsel %vm930_vm4, %v940_v36, %v942_v39  ;;  %v1401_v36 = vshrl.u32 %v7570_v27, 16 }
  0x4b   : > { %6831 = vmatprep.mubr.msk.bf16.mxu1 %vm7819_vm1, %v9566_v1 }
  0x4c   : > { %6802 = vmatmul.mubr.msk.bf16.gmra.mxu0 %vm474_vm2, %v7543_v47  ;;  %v6040_v47 = vld [vmem:[%s9578_s1 + $0xc] sm:$0x3]  ;;  %v1403_v44 = vrot.slane %v1401_v36, 1 }
  0x4d   : > { %6805 = vmatprep.mubr.msk.bf16.mxu0 %vm7819_vm1, %v9566_v1  ;;  %v1865_v52 = vsel %vm496_vm0, %v6040_v47, 0  ;;  %v6411_v36 = vld [vmem:[%s8020_s21 + $0xa8] sm:$0xff] }
  0x52   : > { %6832 = vmatmul.mubr.msk.bf16.gmra.mxu1 %vm474_vm2, %v727_v57  ;;  %v1359_v57 = vrot.slane %v1357_v49, 1  ;;  %v1407_v49 = vor.u32 %v1406_v45, %v1403_v44  ;;  %v6412_v44 = vld [vmem:[%s8020_s21 + $0xb0] sm:$0xff] }
  0x53   : > { %6835 = vmatprep.mubr.msk.bf16.mxu1 %vm7819_vm1, %v9566_v1 }
  0x54   : > { %6806 = vmatmul.mubr.msk.bf16.gmra.mxu0 %vm474_vm2, %v7545_v54  ;;  %v1153_v54 = vsel %vm930_vm4, %v1150_v38, %v1152_v41  ;;  %v1363_v2 = vor.u32 %v1362_v59, %v1359_v57  ;;  %v1623_v41 = vrot.slane %v7569_v35, 2 }
  0x55   : > { %6841 = vmatprep.mubr.msk.bf16.mxu0 %vm7819_vm1, %v9566_v1 }
  0x5a   : > { %6836 = vmatmul.mubr.msk.bf16.gmra.mxu1 %vm474_vm2, %v730_v4  ;;  %v7565_v4 = vld [vmem:[%s7951_s12 + $0xc] sm:$0xff]  }
  0x5b   : > { %6871 = vmatprep.mubr.msk.bf16.mxu1 %vm7819_vm1, %v9566_v1  ;;  %v1619_v13 = vrot.slane %v7565_v4, 2 }
  0x5c   : > { %6842 = vmatmul.mubr.msk.bf16.vlgmr.msra.gmra.mxu0 %vm474_vm2, %v933_v0  ;;  %v7564_v0 = vld [vmem:[%s7951_s12 + $0x4] sm:$0xfc]  }
  0x5d   : > { %6900 = vmatpush3.bf16.msra.mxu0 %v1440_v3  ;;  %6845 = vmatprep.mubr.msk.bf16.mxu0 %vm7819_vm1, %v9566_v1  ;;  %v1371_v3 = vor.u32 %v1370_v58, %v1367_v56  ;;  %v1618_v11 = vrot.slane %v7564_v0, 2  ;;  %v6403_v56 = vld [vmem:[%s8020_s21 + $0x68] sm:$0xff] }
  0x5e   : > { %6959 = vmatprep.subr.bf16.mxu0 %v9566_v1  ;;  %v7573_v58 = vld [vmem:[%s7951_s12 + $0x2c] sm:$0xff]  }
  0x5f   : > { %2997 = vxpose.xlu0.c.b16.start [1/8] (narrow) %v7589_v62, 16  ;;  %v1372_v8 = vsel %vm1355_vm5, %v1363_v2, %v1371_v3  ;;  %v1620_v25 = vsel %vm1617_vm6, %v1618_v11, %v1619_v13  ;;  %v1627_v61 = vrot.slane %v7573_v58, 2  ;;  %v7574_v2 = vld [vmem:[%s7951_s12 + $0x34] ss:$0 sps:$4 sm:$0xff]   ;;  %v1830_v11 = vrot.slane %v7575_v5, 2  ;;  %v6414_v58 = vld [vmem:[%s8020_s21 + $0xc0] sm:$0xff] }
  0x60   : > { %v1629_v4 = vrot.slane %v7574_v2, 2 }
  0x62   : > { %6872 = vmatmul.mubr.msk.bf16.vlgmr.msra.gmra.mxu1 %vm474_vm2, %v1145_v17  ;;  %v7568_v17 = vld [vmem:[%s7951_s12 + $0x24] sm:$0xff]  }
  0x63   : > { %6875 = vmatprep.mubr.msk.bf16.mxu1 %vm7819_vm1, %v9566_v1  ;;  %6930 = vmatpush3.bf16.msra.mxu1 %v1653_v18  ;;  %v1380_v18 = vor.u32 %v1379_v10, %v1376_v9  ;;  %v1395_v24 = vshll.u32 %v7568_v17, 16  ;;  %v1630_v9 = vsel %vm1617_vm6, %v1627_v61, %v1629_v4  ;;  %v7578_v10 = vld [vmem:[%s7951_s12 + $0x8] sm:$0xfc]  }
  0x64   : > { %6846 = vmatmul.mubr.msk.bf16.gmra.mxu0 %vm474_vm2, %v935_v14  ;;  %6989 = vmatprep.subr.bf16.mxu1 %v9566_v1  ;;  %v7593_v14 = vld [vmem:[%s7951_s12 + $0x10] sm:$0xff]  }
  0x65   : > { %6849 = vmatprep.mubr.msk.bf16.mxu0 %vm7819_vm1, %v9566_v1  ;;  %2998 = vxpose.xlu0.c.b16.cont [2/8] (narrow) %v7592_v7, 16  ;;  %v1381_v22 = vsel %vm1355_vm5, %v1371_v3, %v1380_v18  ;;  %v1397_v32 = vrot.slane %v1395_v24, 2  ;;  %v6406_v3 = vld [vmem:[%s8020_s21 + $0x80] sm:$0xff]  ;;  %v7579_v7 = vld [vmem:[%s7951_s12 + $0x10] sm:$0xff]  }
  0x69   : > { %2999 = vxpose.xlu0.c.b16.cont [3/8] (narrow) %v7593_v14, 16  ;;  %v2055_v14 = vshrl.u32 %v7579_v7, 16 }
  0x6a   : > { %6876 = vmatmul.mubr.msk.bf16.gmra.mxu1 %vm474_vm2, %v1147_v26  ;;  %v1621_v26 = vrot.slane %v7567_v19, 2  ;;  %v2058_v19 = vshll.u32 %v7579_v7, 16  ;;  %v7587_v7 = vld [vmem:[%s7951_s12 + $0x30] sm:$0xff]  }
  0x6b   : > { %6879 = vmatprep.mubr.msk.bf16.mxu1 %vm7819_vm1, %v9566_v1  ;;  %v2057_v24 = vrot.slane %v2055_v14, 2  ;;  %v2094_v14 = vshll.u32 %v7587_v7, 16 }
  0x6c   : > { %6850 = vmatmul.mubr.msk.bf16.gmra.mxu0 %vm474_vm2, %v937_v23  ;;  %v1392_v23 = vshrl.u32 %v7568_v17, 16  ;;  %v1622_v38 = vsel %vm1617_vm6, %v1619_v13, %v1621_v26  ;;  %v1624_v47 = vsel %vm1617_vm6, %v1621_v26, %v1623_v41  ;;  %v1831_v13 = vrot.slane %v7576_v6, 2 }
  0x6d   : > { %6853 = vmatprep.mubr.msk.bf16.mxu0 %vm7819_vm1, %v9566_v1  ;;  %3000 = vxpose.xlu0.c.b16.cont [4/8] (narrow) %v7595_v21, 16  ;;  %v2047_v17 = vshrl.u32 %v7578_v10, 16  ;;  %v2060_v27 = vrot.slane %v2058_v19, 3 }
  0x6e   : > { %v1394_v31 = vrot.slane %v1392_v23, 1  ;;  %v1832_v21 = vsel %vm1617_vm6, %v1830_v11, %v1831_v13 }
  0x71   : > { %3001 = vxpose.xlu0.c.b16.cont [5/8] (narrow) %v7596_v29, 16  ;;  %v6410_v29 = vld [vmem:[%s8020_s21 + $0xa0] sm:$0xff] }
  0x72   : > { %6880 = vmatmul.mubr.msk.bf16.gmra.mxu1 %vm474_vm2, %v1149_v34 }
  0x73   : > { %6883 = vmatprep.mubr.msk.bf16.mxu1 %vm7819_vm1, %v9566_v1 }
  0x74   : > { %6854 = vmatmul.mubr.msk.bf16.gmra.mxu0 %vm474_vm2, %v939_v30  ;;  %v1389_v30 = vor.u32 %v1388_v16, %v1385_v15  ;;  %v6408_v15 = vld [vmem:[%s8020_s21 + $0x90] sm:$0xff] }
  0x75   : > { %6857 = vmatprep.mubr.msk.bf16.mxu0 %vm7819_vm1, %v9566_v1  ;;  %3002 = vxpose.xlu0.c.b16.cont [6/8] (narrow) %v7598_v33, 16  ;;  %v6070_v16 = vld [vmem:[%s9578_s1 + $0x10] sm:$0x3]  ;;  %v2061_v33 = vor.u32 %v2060_v27, %v2057_v24 }
  0x76   : > { %v1390_v34 = vsel %vm1355_vm5, %v1380_v18, %v1389_v30  ;;  %v2050_v18 = vshll.u32 %v7578_v10, 16  ;;  %v2346_v23 = vsel %vm496_vm0, %v6070_v16, 0 }
  0x78   : > { %v2052_v26 = vrot.slane %v2050_v18, 3 }
  0x7a   : > { %6884 = vmatmul.mubr.msk.bf16.gmra.mxu1 %vm474_vm2, %v1151_v43 }
  0x7b   : > { %6887 = vmatprep.mubr.msk.bf16.mxu1 %vm7819_vm1, %v9566_v1 }
  0x7c   : > { %6858 = vmatmul.mubr.msk.bf16.gmra.mxu0 %vm474_vm2, %v941_v40  ;;  %v1398_v40 = vor.u32 %v1397_v32, %v1394_v31 }
  0x7d   : > { %6861 = vmatprep.mubr.msk.bf16.mxu0 %vm7819_vm1, %v9566_v1 }
  0x7e   : > { %v1399_v43 = vsel %vm1355_vm5, %v1389_v30, %v1398_v40  ;;  %v1408_v53 = vsel %vm1355_vm5, %v1398_v40, %v1407_v49  ;;  %v2544_v30 = vld [vmem:[%s8020_s21 + $0x18] sm:$0xff] }
  0x7f   : > { %2571 = vperm.xlu1 %7532, %v2544_v30  }
  0x82   : > { %6888 = vmatmul.mubr.msk.bf16.gmra.mxu1 %vm474_vm2, %v1153_v54  ;;  %v1412_v54 = vrot.slane %v1410_v50, 1  ;;  %v6413_v50 = vld [vmem:[%s8020_s21 + $0xb8] sm:$0xff] }
  0x83   : > { %6891 = vmatprep.mubr.msk.bf16.mxu1 %vm7819_vm1, %v9566_v1 }
  0x84   : > { %6862 = vmatmul.mubr.msk.bf16.gmra.mxu0 %vm474_vm2, %v943_v48  ;;  %v7571_v48 = vld [vmem:[%s7951_s12 + $0x24] sm:$0xff]  }
  0x85   : > { %6865 = vmatprep.mubr.msk.bf16.mxu0 %vm7819_vm1, %v9566_v1 }
  0x8a   : > { %6892 = vmatmul.mubr.msk.bf16.gmra.mxu1 %vm474_vm2, %v1155_v63  ;;  %v6405_v63 = vld [vmem:[%s8020_s21 + $0x78] sm:$0xff] }
  0x8b   : > { %6895 = vmatprep.mubr.msk.bf16.mxu1 %vm7819_vm1, %v9566_v1 }
  0x8c   : > { %6866 = vmatmul.mubr.msk.bf16.gmra.mxu0 %vm474_vm2, %v942_v39  ;;  %v7599_v39 = vld [vmem:[%s7951_s12 + $0x30] sm:$0xff]  }
  0x8d   : > { %6901 = vmatprep.mubr.msk.bf16.mxu0 %vm7819_vm1, %v9566_v1  ;;  %3003 = vxpose.xlu0.c.b16.cont [7/8] (narrow) %v7599_v39, 16  ;;  %v2546_v39 = vld [vmem:[%s8020_s21 + $0x28] sm:$0xff] }
  0x8e   : > { %2581 = vperm.xlu1 %7532, %v2546_v39  }
  0x91   : > { %3004 = vxpose.xlu0.c.b16.end [8/8] (narrow) %v7601_v42, 16 }
  0x92   : > { %6896 = vmatmul.mubr.msk.bf16.gmra.mxu1 %vm474_vm2, %v1154_v51  ;;  %v1413_v51 = vshll.u32 %v7572_v46, 16  ;;  %v2548_v46 = vld [vmem:[%s8020_s21 + $0x38] sm:$0xff] }
  0x93   : > { %6931 = vmatprep.mubr.msk.bf16.mxu1 %vm7819_vm1, %v9566_v1  ;;  %2591 = vperm.xlu1 %7532, %v2548_v46  }
  0x94   : > { %6902 = vmatmul.mubr.msk.bf16.vlgmr.msra.gmra.mxu0 %vm474_vm2, %v1372_v8  ;;  %v1415_v55 = vrot.slane %v1413_v51, 2  ;;  %v6407_v8 = vld [vmem:[%s8020_s21 + $0x88] sm:$0xff] }
  0x95   : > { %6960 = vmatpush3.bf16.msra.mxu0 %v1865_v52  ;;  %6905 = vmatprep.mubr.msk.bf16.mxu0 %vm7819_vm1, %v9566_v1  ;;  %v1625_v52 = vrot.slane %v7571_v48, 2 }
  0x96   : > { %7019 = vmatprep.subr.bf16.mxu0 %v9566_v1  ;;  %v1416_v59 = vor.u32 %v1415_v55, %v1412_v54 }
  0x97   : > { %v1626_v57 = vsel %vm1617_vm6, %v1623_v41, %v1625_v52  ;;  %v1628_v0 = vsel %vm1617_vm6, %v1625_v52, %v1627_v61  ;;  %v7582_v52 = vld [vmem:[%s7951_s12 + $0x28] sm:$0xff]  }
  0x98   : > { %v1417_v62 = vsel %vm1355_vm5, %v1407_v49, %v1416_v59 }
  0x9a   : > { %6932 = vmatmul.mubr.msk.bf16.vlgmr.msra.gmra.mxu1 %vm474_vm2, %v1620_v25  ;;  %5206 = vperm.xlu0 %7531, %v6403_v56   ;;  %v2049_v25 = vrot.slane %v2047_v17, 2  ;;  %v7586_v17 = vld [vmem:[%s7951_s12 + $0x38] ss:$0 sps:$4 sm:$0xff]  }
  0x9b   : > { %6935 = vmatprep.mubr.msk.bf16.mxu1 %vm7819_vm1, %v9566_v1  ;;  %6990 = vmatpush3.bf16.msra.mxu1 %v2130_v28  ;;  %v7581_v28 = vld [vmem:[%s7951_s12 + $0x18] sm:$0xff]  }
  0x9c   : > { %6906 = vmatmul.mubr.msk.bf16.gmra.mxu0 %vm474_vm2, %v1381_v22  ;;  %v7577_v22 = vld [vmem:[%s7951_s12 + $0x18] sm:$0xff]   ;;  %v2053_v32 = vor.u32 %v2052_v26, %v2049_v25  ;;  %v2067_v35 = vshll.u32 %v7581_v28, 16  ;;  %v1841_v25 = vrot.slane %v7586_v17, 2 }
  0x9d   : > { %6909 = vmatprep.mubr.msk.bf16.mxu0 %vm7819_vm1, %v9566_v1  ;;  %v1833_v31 = vrot.slane %v7577_v22, 2  ;;  %v7588_v22 = vld [vmem:[%s7951_s12 + $0x38] sm:$0x1f]  }
  0x9e   : > { %5211 = vperm.xlu0 %7531, %v6404_v60   ;;  %v2062_v40 = vsel %vm2045_vm7, %v2053_v32, %v2061_v33  ;;  %v2069_v42 = vrot.slane %v2067_v35, 3  ;;  %v2552_v60 = vld [vmem:[%s8020_s21 + $0x58] sm:$0xff]  ;;  %v2100_v30 = vshrl.u32 %v7588_v22, 16 }
  0x9f   : > { %v1834_v37 = vsel %vm1617_vm6, %v1831_v13, %v1833_v31  ;;  %v2091_v13 = vshrl.u32 %v7587_v7, 16  ;;  %v7594_v7 = vld [vmem:[%s7951_s12 + $0x18] sm:$0xff]  }
  0xa1   : > { %v2093_v20 = vrot.slane %v2091_v13, 2 }
  0xa2   : > { %6936 = vmatmul.mubr.msk.bf16.gmra.mxu1 %vm474_vm2, %v1622_v38  ;;  %5216 = vperm.xlu0 %7531, %v6405_v63   ;;  %v7580_v38 = vld [vmem:[%s7951_s12 + $0x20] sm:$0xff]  }
  0xa3   : > { %6939 = vmatprep.mubr.msk.bf16.mxu1 %vm7819_vm1, %v9566_v1  ;;  %v1835_v45 = vrot.slane %v7580_v38, 2 }
  0xa4   : > { %6910 = vmatmul.mubr.msk.bf16.gmra.mxu0 %vm474_vm2, %v1390_v34  ;;  %v2064_v34 = vshrl.u32 %v7581_v28, 16 }
  0xa5   : > { %6913 = vmatprep.mubr.msk.bf16.mxu0 %vm7819_vm1, %v9566_v1  ;;  %v1836_v51 = vsel %vm1617_vm6, %v1833_v31, %v1835_v45  ;;  %v2103_v31 = vshll.u32 %v7588_v22, 16 }
  0xa6   : > { %5221 = vperm.xlu0 %7531, %v6406_v3   ;;  %v2066_v41 = vrot.slane %v2064_v34, 2  ;;  %v7584_v3 = vld [vmem:[%s7951_s12 + $0x30] sm:$0xff]  }
  0xaa   : > { %6940 = vmatmul.mubr.msk.bf16.gmra.mxu1 %vm474_vm2, %v1624_v47  ;;  %5226 = vperm.xlu0 %7531, %v6407_v8   ;;  %v2070_v47 = vor.u32 %v2069_v42, %v2066_v41  ;;  %v2105_v41 = vrot.slane %v2103_v31, 3 }
  0xab   : > { %6943 = vmatprep.mubr.msk.bf16.mxu1 %vm7819_vm1, %v9566_v1 }
  0xac   : > { %6914 = vmatmul.mubr.msk.bf16.gmra.mxu0 %vm474_vm2, %v1399_v43  ;;  %v7583_v43 = vld [vmem:[%s7951_s12 + $0x20] sm:$0xff]   ;;  %v2071_v54 = vsel %vm2045_vm7, %v2061_v33, %v2070_v47 }
  0xad   : > { %6917 = vmatprep.mubr.msk.bf16.mxu0 %vm7819_vm1, %v9566_v1  ;;  %v2073_v48 = vshrl.u32 %v7583_v43, 16  ;;  %v2076_v49 = vshll.u32 %v7583_v43, 16 }
  0xae   : > { %5231 = vperm.xlu0 %7531, %v6408_v15  }
  0xaf   : > { %v2075_v55 = vrot.slane %v2073_v48, 2  ;;  %v2078_v56 = vrot.slane %v2076_v49, 3 }
  0xb1   : > { %v2079_v61 = vor.u32 %v2078_v56, %v2075_v55 }
  0xb2   : > { %6944 = vmatmul.mubr.msk.bf16.gmra.mxu1 %vm474_vm2, %v1626_v57  ;;  %5241 = vperm.xlu0 %7531, %v6410_v29   ;;  %v7585_v57 = vld [vmem:[%s7951_s12 + $0x28] sm:$0xff]  }
  0xb3   : > { %6947 = vmatprep.mubr.msk.bf16.mxu1 %vm7819_vm1, %v9566_v1  ;;  %v2085_v63 = vshll.u32 %v7585_v57, 16 }
  0xb4   : > { %6918 = vmatmul.mubr.msk.bf16.gmra.mxu0 %vm474_vm2, %v1408_v53  ;;  %v2550_v53 = vld [vmem:[%s8020_s21 + $0x48] sm:$0xff] }
  0xb5   : > { %6921 = vmatprep.mubr.msk.bf16.mxu0 %vm7819_vm1, %v9566_v1  ;;  %2601 = vperm.xlu1 %7532, %v2550_v53   ;;  %v2087_v6 = vrot.slane %v2085_v63, 3  ;;  %v7591_v53 = vld [vmem:[%s7951_s12 + $0x10] sm:$0xff]  }
  0xb6   : > { %5246 = vperm.xlu0 %7531, %v6411_v36  }
  0xb9   : > { %2611 = vperm.xlu1 %7532, %v2552_v60  }
  0xba   : > { %6948 = vmatmul.mubr.msk.bf16.gmra.mxu1 %vm474_vm2, %v1628_v0  ;;  %5251 = vperm.xlu0 %7531, %v6412_v44   ;;  %v6415_v0 = vld [vmem:[%s8020_s21 + $0xc8] sm:$0xf]  ;;  %v8298_v44 = vld [vmem:[#allocation2 + $0x30] sm:$0xff] }
  0xbb   : > { %6951 = vmatprep.mubr.msk.bf16.mxu1 %vm7819_vm1, %v9566_v1 }
  0xbc   : > { %6922 = vmatmul.mubr.msk.bf16.gmra.mxu0 %vm474_vm2, %v1417_v62  ;;  %v2082_v62 = vshrl.u32 %v7585_v57, 16 }
  0xbd   : > { %6925 = vmatprep.mubr.msk.bf16.mxu0 %vm7819_vm1, %v9566_v1 }
  0xbe   : > { %5256 = vperm.xlu0 %7531, %v6413_v50   ;;  %v2084_v5 = vrot.slane %v2082_v62, 2  ;;  %v2312_v62 = vrot.slane %v7591_v53, 3 }
  0xc0   : > { %v2088_v11 = vor.u32 %v2087_v6, %v2084_v5 }
  0xc2   : > { %6952 = vmatmul.mubr.msk.bf16.gmra.mxu1 %vm474_vm2, %v1630_v9  ;;  %5261 = vperm.xlu0 %7531, %v6414_v58   ;;  %v1839_v9 = vrot.slane %v7584_v3, 2  ;;  %v2089_v19 = vsel %vm2045_vm7, %v2079_v61, %v2088_v11 }
  0xc3   : > { %6955 = vmatprep.mubr.msk.bf16.mxu1 %vm7819_vm1, %v9566_v1 }
  0xc4   : > { %6926 = vmatmul.mubr.msk.bf16.gmra.mxu0 %vm474_vm2, %v1416_v59  ;;  %v1837_v59 = vrot.slane %v7582_v52, 2  ;;  %v1842_v35 = vsel %vm1617_vm6, %v1839_v9, %v1841_v25  ;;  %v7590_v52 = vld [vmem:[%s7951_s12 + $0x8] sm:$0xf8]  }
  0xc5   : > { %6961 = vmatprep.mubr.msk.bf16.mxu0 %vm7819_vm1, %v9566_v1 }
  0xc6   : > { %v1838_v2 = vsel %vm1617_vm6, %v1835_v45, %v1837_v59  ;;  %5266 = vperm.xlu0 %7531, %v6415_v0   ;;  %v1840_v16 = vsel %vm1617_vm6, %v1837_v59, %v1839_v9 }
  0xca   : > { %6956 = vmatmul.mubr.msk.bf16.gmra.mxu1 %vm474_vm2, %v1629_v4  ;;  %v2080_v4 = vsel %vm2045_vm7, %v2070_v47, %v2079_v61  ;;  %v2311_v61 = vrot.slane %v7590_v52, 3 }
  0xcb   : > { %6991 = vmatprep.mubr.msk.bf16.mxu1 %vm7819_vm1, %v9566_v1 }
  0xcc   : > { %6962 = vmatmul.mubr.msk.bf16.vlgmr.msra.gmra.mxu0 %vm474_vm2, %v1832_v21  ;;  %v2096_v21 = vrot.slane %v2094_v14, 3  ;;  %v2313_v6 = vsel %vm2310_vm8, %v2311_v61, %v2312_v62 }
  0xcd   : > { %7020 = vmatpush3.bf16.msra.mxu0 %v2346_v23  ;;  %6965 = vmatprep.mubr.msk.bf16.mxu0 %vm7819_vm1, %v9566_v1 }
  0xce   : > { %7149 = vmatprep.subr.bf16.mxu0 %v9566_v1  ;;  %v2097_v29 = vor.u32 %v2096_v21, %v2093_v20 }
  0xd0   : > { %v2098_v39 = vsel %vm2045_vm7, %v2088_v11, %v2097_v29 }
  0xd2   : > { %6992 = vmatmul.mubr.msk.bf16.vlgmr.msra.gmra.mxu1 %vm474_vm2, %v2062_v40  ;;  %v2102_v40 = vrot.slane %v2100_v30, 2 }
  0xd3   : > { %6995 = vmatprep.mubr.msk.bf16.mxu1 %vm7819_vm1, %v9566_v1 }
  0xd4   : > { %6966 = vmatmul.mubr.msk.bf16.gmra.mxu0 %vm474_vm2, %v1834_v37  ;;  %v2106_v48 = vor.u32 %v2105_v41, %v2102_v40  ;;  %v7600_v40 = vld [vmem:[%s7951_s12 + $0x28] sm:$0xff]  }
  0xd5   : > { %6969 = vmatprep.mubr.msk.bf16.mxu0 %vm7819_vm1, %v9566_v1 }
  0xd6   : > { %v2107_v57 = vsel %vm2045_vm7, %v2097_v29, %v2106_v48 }
  0xda   : > { %6996 = vmatmul.mubr.msk.bf16.gmra.mxu1 %vm474_vm2, %v2071_v54 }
  0xdb   : > { %6999 = vmatprep.mubr.msk.bf16.mxu1 %vm7819_vm1, %v9566_v1 }
  0xdc   : > { %6970 = vmatmul.mubr.msk.bf16.gmra.mxu0 %vm474_vm2, %v1836_v51 }
  0xdd   : > { %6973 = vmatprep.mubr.msk.bf16.mxu0 %vm7819_vm1, %v9566_v1 }
  0xe2   : > { %7000 = vmatmul.mubr.msk.bf16.gmra.mxu1 %vm474_vm2, %v2080_v4 }
  0xe3   : > { %7003 = vmatprep.mubr.msk.bf16.mxu1 %vm7819_vm1, %v9566_v1 }
  0xe4   : > { %v534_v8 = vpop.f32.mrf.mxu0  ;;  %6974 = vmatmul.mubr.msk.bf16.gmra.mxu0 %vm474_vm2, %v1838_v2 }
  0xe5   : > { %6977 = vmatprep.mubr.msk.bf16.mxu0 %vm7819_vm1, %v9566_v1  ;;  %v588_v24 = vadd.f32 %v8051_v12, %v534_v8 }
  0xe6   : > { %v6783_v10 = vpop.f32.mrf.mxu0 }
  0xe8   : > { %v537_v15 = vpop.f32.mrf.mxu0 }
  0xe9   : > { %v589_v34 = vadd.f32 %v8051_v12, %v537_v15  ;;  %v2314_v15 = vrot.slane %v7594_v7, 3 }
  0xea   : > { %v6784_v18 = vpop.f32.mrf.mxu0  ;;  %v789_v27 = vpop.f32.mrf.mxu1  ;;  %7004 = vmatmul.mubr.msk.bf16.gmra.mxu1 %vm474_vm2, %v2089_v19 }
  0xeb   : > { %v8288_v28 = vadd.f32 %v789_v27, %v588_v24  ;;  %7007 = vmatprep.mubr.msk.bf16.mxu1 %vm7819_vm1, %v9566_v1  ;;  %v2315_v22 = vsel %vm2310_vm8, %v2312_v62, %v2314_v15 }
  0xec   : > { %v542_v23 = vpop.f32.mrf.mxu0  ;;  %6978 = vmatmul.mubr.msk.bf16.gmra.mxu0 %vm474_vm2, %v1840_v16  ;;  %v6813_v33 = vpop.f32.mrf.mxu1 }
  0xed   : > { %6981 = vmatprep.mubr.msk.bf16.mxu0 %vm7819_vm1, %v9566_v1  ;;  %v590_v12 = vadd.f32 %v8298_v44, %v542_v23  ;;  %v7597_v23 = vld [vmem:[%s7951_s12 + $0x20] sm:$0xff]  }
  0xee   : > { %v6787_v26 = vpop.f32.mrf.mxu0  ;;  %v792_v37 = vpop.f32.mrf.mxu1  ;;  %v2316_v31 = vrot.slane %v7597_v23, 3 }
  0xef   : > { %v8294_v38 = vadd.f32 %v792_v37, %v589_v34 }
  0xf0   : > { %v545_v32 = vpop.f32.mrf.mxu0  ;;  %v6814_v43 = vpop.f32.mrf.mxu1 }
  0xf1   : > { %v591_v51 = vadd.f32 %v8298_v44, %v545_v32  ;;  %v426_v43 = vld [vmem:[#allocation2 + $0x40] sm:$0xf] }
  0xf2   : > { %v6788_v36 = vpop.f32.mrf.mxu0  ;;  %v797_v46 = vpop.f32.mrf.mxu1  ;;  %7008 = vmatmul.mubr.msk.bf16.gmra.mxu1 %vm474_vm2, %v2098_v39  ;;  %v2317_v39 = vsel %vm2310_vm8, %v2314_v15, %v2316_v31  ;;  %v7603_v15 = vld [vmem:[%s7951_s12 + $0x38] sm:$0x1f]  }
  0xf3   : > { %v8304_v47 = vadd.f32 %v797_v46, %v590_v12  ;;  %7011 = vmatprep.mubr.msk.bf16.mxu1 %vm7819_vm1, %v9566_v1 }
  0xf4   : > { %v550_v42 = vpop.f32.mrf.mxu0  ;;  %6982 = vmatmul.mubr.msk.bf16.gmra.mxu0 %vm474_vm2, %v1842_v35  ;;  %v6817_v50 = vpop.f32.mrf.mxu1 }
  0xf5   : > { %6985 = vmatprep.mubr.msk.bf16.mxu0 %vm7819_vm1, %v9566_v1  ;;  %v592_v60 = vadd.f32 %v8298_v44, %v550_v42  ;;  %v2318_v50 = vrot.slane %v7600_v40, 3 }
  0xf6   : > { %v6791_v45 = vpop.f32.mrf.mxu0  ;;  %v800_v55 = vpop.f32.mrf.mxu1 }
  0xf7   : > { %v8311_v56 = vadd.f32 %v800_v55, %v591_v51 }
  0xf8   : > { %v553_v49 = vpop.f32.mrf.mxu0  ;;  %v6818_v59 = vpop.f32.mrf.mxu1 }
  0xf9   : > { %v593_v5 = vadd.f32 %v8298_v44, %v553_v49  ;;  %v7602_v59 = vld [vmem:[%s7951_s12 + $0x30] sm:$0xff]  }
  0xfa   : > { %v6792_v54 = vpop.f32.mrf.mxu0  ;;  %v805_v0 = vpop.f32.mrf.mxu1  ;;  %7012 = vmatmul.mubr.msk.bf16.gmra.mxu1 %vm474_vm2, %v2107_v57 }
  0xfb   : > { %v8319_v2 = vadd.f32 %v805_v0, %v592_v60  ;;  %7015 = vmatprep.mubr.msk.bf16.mxu1 %vm7819_vm1, %v9566_v1 }
  0xfc   : > { %v558_v58 = vpop.f32.mrf.mxu0  ;;  %6986 = vmatmul.mubr.msk.bf16.gmra.mxu0 %vm474_vm2, %v1841_v25  ;;  %v6821_v4 = vpop.f32.mrf.mxu1 }
  0xfd   : > { %7021 = vmatprep.mubr.msk.bf16.mxu0 %vm7819_vm1, %v9566_v1  ;;  %v594_v14 = vadd.f32 %v8298_v44, %v558_v58  ;;  %v2319_v58 = vsel %vm2310_vm8, %v2316_v31, %v2318_v50  ;;  %v2320_v4 = vrot.slane %v7602_v59, 3 }
  0xfe   : > { %v6795_v63 = vpop.f32.mrf.mxu0  ;;  %v808_v9 = vpop.f32.mrf.mxu1 }
  0xff   : > { %v8326_v10 = vadd.f32 %v808_v9, %v593_v5 }
 0x100   : > { %v561_v3 = vpop.f32.mrf.mxu0  ;;  %v6822_v13 = vpop.f32.mrf.mxu1 }
 0x101   : > { %v595_v21 = vadd.f32 %v8298_v44, %v561_v3 }
 0x102   : > { %v6796_v8 = vpop.f32.mrf.mxu0  ;;  %v813_v17 = vpop.f32.mrf.mxu1  ;;  %7016 = vmatmul.mubr.msk.bf16.gmra.mxu1 %vm474_vm2, %v2106_v48 }
 0x103   : > { %v8333_v18 = vadd.f32 %v813_v17, %v594_v14  ;;  %v2321_v14 = vsel %vm2310_vm8, %v2318_v50, %v2320_v4 }
 0x104   : > { %v566_v11 = vpop.f32.mrf.mxu0  ;;  %7022 = vmatmul.mubr.msk.bf16.vlgmr.msra.gmra.mxu0 %vm474_vm2, %v2313_v6  ;;  %v6825_v20 = vpop.f32.mrf.mxu1 }
 0x105   : > { %7025 = vmatprep.mubr.msk.bf16.mxu0 %vm7819_vm1, %v9566_v1  ;;  %v596_v30 = vadd.f32 %v8298_v44, %v566_v11 }
 0x106   : > { %v6799_v16 = vpop.f32.mrf.mxu0  ;;  %v816_v25 = vpop.f32.mrf.mxu1 }
 0x107   : > { %v8338_v26 = vadd.f32 %v816_v25, %v595_v21  ;;  %v2322_v21 = vrot.slane %v7603_v15, 3 }
 0x108   : > { %v569_v19 = vpop.f32.mrf.mxu0  ;;  %v6826_v29 = vpop.f32.mrf.mxu1 }
 0x109   : > { %v597_v37 = vadd.f32 %v8298_v44, %v569_v19  ;;  %v2323_v29 = vsel %vm2310_vm8, %v2320_v4, %v2322_v21 }
 0x10a   : > { %v6800_v24 = vpop.f32.mrf.mxu0  ;;  %v821_v33 = vpop.f32.mrf.mxu1 }
 0x10b   : > { %v8344_v34 = vadd.f32 %v821_v33, %v596_v30 }
 0x10c   : > { %v574_v27 = vpop.f32.mrf.mxu0  ;;  %7026 = vmatmul.mubr.msk.bf16.gmra.mxu0 %vm474_vm2, %v2315_v22  ;;  %v6829_v36 = vpop.f32.mrf.mxu1 }
 0x10d   : > { %7029 = vmatprep.mubr.msk.bf16.mxu0 %vm7819_vm1, %v9566_v1  ;;  %v598_v48 = vadd.f32 %v8298_v44, %v574_v27 }
 0x10e   : > { %v6803_v32 = vpop.f32.mrf.mxu0  ;;  %v824_v42 = vpop.f32.mrf.mxu1 }
 0x10f   : > { %v8349_v12 = vadd.f32 %v824_v42, %v597_v37 }
 0x110   : > { %v577_v35 = vpop.f32.mrf.mxu0  ;;  %v6830_v46 = vpop.f32.mrf.mxu1 }
 0x111   : > { %v599_v57 = vadd.f32 %v8298_v44, %v577_v35 }
 0x112   : > { %v6804_v41 = vpop.f32.mrf.mxu0  ;;  %v829_v52 = vpop.f32.mrf.mxu1 }
 0x113   : > { %v8355_v53 = vadd.f32 %v829_v52, %v598_v48 }
 0x114   : > { %v582_v45 = vpop.f32.mrf.mxu0  ;;  %7030 = vmatmul.mubr.msk.bf16.gmra.mxu0 %vm474_vm2, %v2317_v39  ;;  %v6833_v55 = vpop.f32.mrf.mxu1 }
 0x115   : > { %v600_v49 = vadd.f32 %v582_v45, %v426_v43  ;;  %7033 = vmatprep.mubr.msk.bf16.mxu0 %vm7819_vm1, %v9566_v1 }
 0x116   : > { %v6807_v51 = vpop.f32.mrf.mxu0  ;;  %v832_v61 = vpop.f32.mrf.mxu1 }
 0x117   : > { %613 = vst [vmem:[#allocation2 + $0x40] sm:$0xf] %v600_v49  ;;  %v8360_v62 = vadd.f32 %v832_v61, %v599_v57 }
 0x118   : > { %v585_v54 = vpop.f32.mrf.mxu0  ;;  %v6834_v63 = vpop.f32.mrf.mxu1 }
 0x11a   : > { %v6808_v60 = vpop.f32.mrf.mxu0  ;;  %v837_v6 = vpop.f32.mrf.mxu1 }
 0x11c   : > { %v1002_v0 = vpop.f32.mrf.mxu0  ;;  %7034 = vmatmul.mubr.msk.bf16.gmra.mxu0 %vm474_vm2, %v2319_v58  ;;  %v6837_v9 = vpop.f32.mrf.mxu1 }
 0x11d   : > { %v1056_v3 = vadd.f32 %v1002_v0, %v8288_v28  ;;  %7037 = vmatprep.mubr.msk.bf16.mxu0 %vm7819_vm1, %v9566_v1 }
 0x11e   : > { %v626_v5 = vld [vmem:[#allocation2 + $0x40] sm:$0xf]  ;;  %v6843_v7 = vpop.f32.mrf.mxu0  ;;  %v840_v16 = vpop.f32.mrf.mxu1 }
 0x11f   : > { %v855_v8 = vadd.f32 %v837_v6, %v626_v5 }
 0x120   : > { %v1005_v11 = vpop.f32.mrf.mxu0  ;;  %v6838_v19 = vpop.f32.mrf.mxu1 }
 0x121   : > { %868 = vst [vmem:[#allocation2 + $0x40] sm:$0xf] %v855_v8  ;;  %v1057_v13 = vadd.f32 %v1005_v11, %v8294_v38 }
 0x122   : > { %v6844_v17 = vpop.f32.mrf.mxu0  ;;  %v1214_v23 = vpop.f32.mrf.mxu1 }
 0x123   : > { %v8373_v24 = vadd.f32 %v1214_v23, %v1056_v3 }
 0x124   : > { %v1010_v28 = vpop.f32.mrf.mxu0  ;;  %7038 = vmatmul.mubr.msk.bf16.gmra.mxu0 %vm474_vm2, %v2321_v14  ;;  %v6873_v25 = vpop.f32.mrf.mxu1 }
 0x125   : > { %v1058_v20 = vadd.f32 %v1010_v28, %v8304_v47  ;;  %7041 = vmatprep.mubr.msk.bf16.mxu0 %vm7819_vm1, %v9566_v1 }
 0x126   : > { %v6847_v22 = vpop.f32.mrf.mxu0  ;;  %v1217_v31 = vpop.f32.mrf.mxu1 }
 0x127   : > { %v8377_v32 = vadd.f32 %v1217_v31, %v1057_v13 }
 0x128   : > { %v1013_v38 = vpop.f32.mrf.mxu0  ;;  %v6874_v47 = vpop.f32.mrf.mxu1 }
 0x129   : > { %v1059_v27 = vadd.f32 %v1013_v38, %v8311_v56 }
 0x12a   : > { %v6848_v30 = vpop.f32.mrf.mxu0  ;;  %v1222_v37 = vpop.f32.mrf.mxu1 }
 0x12b   : > { %v8383_v39 = vadd.f32 %v1222_v37, %v1058_v20 }
 0x12c   : > { %v1018_v33 = vpop.f32.mrf.mxu0  ;;  %7042 = vmatmul.mubr.msk.bf16.gmra.mxu0 %vm474_vm2, %v2323_v29  ;;  %v6877_v40 = vpop.f32.mrf.mxu1 }
 0x12d   : > { %v1060_v35 = vadd.f32 %v1018_v33, %v8319_v2  ;;  %7045 = vmatprep.mubr.msk.bf16.mxu0 %vm7819_vm1, %v9566_v1 }
 0x12e   : > { %v6851_v36 = vpop.f32.mrf.mxu0  ;;  %v1225_v43 = vpop.f32.mrf.mxu1 }
 0x12f   : > { %v8386_v45 = vadd.f32 %v1225_v43, %v1059_v27 }
 0x130   : > { %v1021_v56 = vpop.f32.mrf.mxu0  ;;  %v6878_v48 = vpop.f32.mrf.mxu1 }
 0x131   : > { %v1061_v41 = vadd.f32 %v1021_v56, %v8326_v10 }
 0x132   : > { %v6852_v42 = vpop.f32.mrf.mxu0  ;;  %v1230_v50 = vpop.f32.mrf.mxu1 }
 0x133   : > { %v8392_v51 = vadd.f32 %v1230_v50, %v1060_v35 }
 0x134   : > { %v1026_v46 = vpop.f32.mrf.mxu0  ;;  %7046 = vmatmul.mubr.msk.bf16.gmra.mxu0 %vm474_vm2, %v2322_v21  ;;  %v6881_v54 = vpop.f32.mrf.mxu1 }
 0x135   : > { %v1062_v2 = vadd.f32 %v1026_v46, %v8333_v18  ;;  %7151 = vmatprep.mubr.msk.bf16.mxu0 %vm7819_vm1, %v9566_v1 }
 0x136   : > { %v6855_v49 = vpop.f32.mrf.mxu0  ;;  %v1233_v57 = vpop.f32.mrf.mxu1 }
 0x137   : > { %v8395_v58 = vadd.f32 %v1233_v57, %v1061_v41 }
 0x138   : > { %v1029_v52 = vpop.f32.mrf.mxu0  ;;  %v6882_v60 = vpop.f32.mrf.mxu1 }
 0x139   : > { %v1063_v10 = vadd.f32 %v1029_v52, %v8338_v26 }
 0x13a   : > { %v6856_v55 = vpop.f32.mrf.mxu0  ;;  %v1238_v63 = vpop.f32.mrf.mxu1 }
 0x13b   : > { %v8398_v0 = vadd.f32 %v1238_v63, %v1062_v2 }
 0x13c   : > { %v1034_v59 = vpop.f32.mrf.mxu0  ;;  %v6885_v4 = vpop.f32.mrf.mxu1 }
 0x13d   : > { %v1064_v61 = vadd.f32 %v1034_v59, %v8344_v34 }
 0x13e   : > { %v6859_v18 = vpop.f32.mrf.mxu0  ;;  %v1241_v7 = vpop.f32.mrf.mxu1 }
 0x13f   : > { %v8401_v8 = vadd.f32 %v1241_v7, %v1063_v10 }
 0x140   : > { %v1037_v3 = vpop.f32.mrf.mxu0  ;;  %v6886_v9 = vpop.f32.mrf.mxu1 }
 0x141   : > { %v1065_v5 = vadd.f32 %v1037_v3, %v8349_v12  ;;  %v881_v12 = vld [vmem:[#allocation2 + $0x40] sm:$0xf] }
 0x142   : > { %v6860_v6 = vpop.f32.mrf.mxu0  ;;  %v1246_v14 = vpop.f32.mrf.mxu1 }
 0x143   : > { %v8404_v15 = vadd.f32 %v1246_v14, %v1064_v61 }
 0x144   : > { %v1042_v26 = vpop.f32.mrf.mxu0  ;;  %v6889_v16 = vpop.f32.mrf.mxu1 }
 0x145   : > { %v1066_v11 = vadd.f32 %v1042_v26, %v8355_v53 }
 0x146   : > { %v6863_v13 = vpop.f32.mrf.mxu0  ;;  %v1249_v28 = vpop.f32.mrf.mxu1 }
 0x147   : > { %v8407_v20 = vadd.f32 %v1249_v28, %v1065_v5 }
 0x148   : > { %v1045_v34 = vpop.f32.mrf.mxu0  ;;  %v6890_v22 = vpop.f32.mrf.mxu1 }
 0x149   : > { %v1067_v17 = vadd.f32 %v1045_v34, %v8360_v62 }
 0x14a   : > { %v6864_v19 = vpop.f32.mrf.mxu0  ;;  %v1254_v25 = vpop.f32.mrf.mxu1 }
 0x14b   : > { %v8409_v53 = vadd.f32 %v1254_v25, %v1066_v11 }
 0x14c   : > { %v1050_v21 = vpop.f32.mrf.mxu0  ;;  %v6893_v29 = vpop.f32.mrf.mxu1 }
 0x14d   : > { %v1068_v23 = vadd.f32 %v1050_v21, %v881_v12 }
 0x14e   : > { %v6867_v38 = vpop.f32.mrf.mxu0  ;;  %v1257_v31 = vpop.f32.mrf.mxu1 }
 0x14f   : > { %1081 = vst [vmem:[#allocation2 + $0x40] sm:$0xf] %v1068_v23  ;;  %v8411_v33 = vadd.f32 %v1257_v31, %v1067_v17 }
 0x150   : > { %v1053_v27 = vpop.f32.mrf.mxu0  ;;  %v6894_v62 = vpop.f32.mrf.mxu1 }
 0x152   : > { %v6868_v30 = vpop.f32.mrf.mxu0  ;;  %v1262_v37 = vpop.f32.mrf.mxu1 }
 0x154   : > { %v1476_v47 = vpop.f32.mrf.mxu0  ;;  %v6897_v41 = vpop.f32.mrf.mxu1 }
 0x155   : > { %v1530_v35 = vadd.f32 %v1476_v47, %v8373_v24 }
 0x156   : > { %v1094_v36 = vld [vmem:[#allocation2 + $0x40] sm:$0xf]  ;;  %v6903_v56 = vpop.f32.mrf.mxu0  ;;  %v1265_v46 = vpop.f32.mrf.mxu1 }
 0x157   : > { %v1280_v40 = vadd.f32 %v1262_v37, %v1094_v36 }
 0x158   : > { %v1479_v42 = vpop.f32.mrf.mxu0  ;;  %v6898_v2 = vpop.f32.mrf.mxu1 }
 0x159   : > { %1293 = vst [vmem:[#allocation2 + $0x40] sm:$0xf] %v1280_v40  ;;  %v1531_v43 = vadd.f32 %v1479_v42, %v8377_v32 }
 0x15a   : > { %v6904_v48 = vpop.f32.mrf.mxu0  ;;  %v1689_v54 = vpop.f32.mrf.mxu1 }
 0x15b   : > { %v8416_v10 = vadd.f32 %v1689_v54, %v1530_v35 }
 0x15c   : > { %v1484_v49 = vpop.f32.mrf.mxu0  ;;  %v6933_v55 = vpop.f32.mrf.mxu1 }
 0x15d   : > { %v1532_v50 = vadd.f32 %v1484_v49, %v8383_v39 }
 0x15e   : > { %v6907_v52 = vpop.f32.mrf.mxu0  ;;  %v1692_v60 = vpop.f32.mrf.mxu1 }
 0x15f   : > { %v8419_v61 = vadd.f32 %v1692_v60, %v1531_v43 }
 0x160   : > { %v1487_v24 = vpop.f32.mrf.mxu0  ;;  %v6934_v32 = vpop.f32.mrf.mxu1  ;;  %v1306_v2 = vld [vmem:[#allocation2 + $0x40] sm:$0xf] }
 0x161   : > { %v1533_v57 = vadd.f32 %v1487_v24, %v8386_v45 }
 0x162   : > { %v6908_v59 = vpop.f32.mrf.mxu0  ;;  %v1697_v4 = vpop.f32.mrf.mxu1 }
 0x163   : > { %v8422_v5 = vadd.f32 %v1697_v4, %v1532_v50 }
 0x164   : > { %v1492_v18 = vpop.f32.mrf.mxu0  ;;  %v6937_v6 = vpop.f32.mrf.mxu1 }
 0x165   : > { %v1534_v63 = vadd.f32 %v1492_v18, %v8392_v51 }
 0x166   : > { %v6911_v3 = vpop.f32.mrf.mxu0  ;;  %v1700_v9 = vpop.f32.mrf.mxu1 }
 0x167   : > { %v8425_v11 = vadd.f32 %v1700_v9, %v1533_v57 }
 0x168   : > { %v1495_v39 = vpop.f32.mrf.mxu0  ;;  %v6938_v13 = vpop.f32.mrf.mxu1 }
 0x169   : > { %v1535_v7 = vadd.f32 %v1495_v39, %v8395_v58 }
 0x16a   : > { %v6912_v26 = vpop.f32.mrf.mxu0  ;;  %v1705_v16 = vpop.f32.mrf.mxu1 }
 0x16b   : > { %v8428_v17 = vadd.f32 %v1705_v16, %v1534_v63 }
 0x16c   : > { %v1500_v45 = vpop.f32.mrf.mxu0  ;;  %v6941_v19 = vpop.f32.mrf.mxu1 }
 0x16d   : > { %v1536_v14 = vadd.f32 %v1500_v45, %v8398_v0 }
 0x16e   : > { %v6915_v34 = vpop.f32.mrf.mxu0  ;;  %v1708_v21 = vpop.f32.mrf.mxu1 }
 0x16f   : > { %v8431_v22 = vadd.f32 %v1708_v21, %v1535_v7 }
 0x170   : > { %v1503_v51 = vpop.f32.mrf.mxu0  ;;  %v6942_v23 = vpop.f32.mrf.mxu1 }
 0x171   : > { %v1537_v28 = vadd.f32 %v1503_v51, %v8401_v8 }
 0x172   : > { %v6916_v12 = vpop.f32.mrf.mxu0  ;;  %v1713_v27 = vpop.f32.mrf.mxu1 }
 0x173   : > { %v8434_v29 = vadd.f32 %v1713_v27, %v1536_v14 }
 0x174   : > { %v1508_v58 = vpop.f32.mrf.mxu0  ;;  %v6945_v30 = vpop.f32.mrf.mxu1 }
 0x175   : > { %v1538_v38 = vadd.f32 %v1508_v58, %v8404_v15 }
 0x176   : > { %v6919_v25 = vpop.f32.mrf.mxu0  ;;  %v1716_v47 = vpop.f32.mrf.mxu1 }
 0x177   : > { %v8437_v35 = vadd.f32 %v1716_v47, %v1537_v28 }
 0x178   : > { %v1511_v0 = vpop.f32.mrf.mxu0  ;;  %v6946_v36 = vpop.f32.mrf.mxu1 }
 0x179   : > { %v1539_v31 = vadd.f32 %v1511_v0, %v8407_v20 }
 0x17a   : > { %v6920_v62 = vpop.f32.mrf.mxu0  ;;  %v1721_v40 = vpop.f32.mrf.mxu1 }
 0x17b   : > { %v8440_v41 = vadd.f32 %v1721_v40, %v1538_v38 }
 0x17c   : > { %v1516_v8 = vpop.f32.mrf.mxu0  ;;  %v6949_v42 = vpop.f32.mrf.mxu1 }
 0x17d   : > { %v1540_v37 = vadd.f32 %v1516_v8, %v8409_v53 }
 0x17e   : > { %v6923_v56 = vpop.f32.mrf.mxu0  ;;  %v1724_v48 = vpop.f32.mrf.mxu1 }
 0x17f   : > { %v8443_v20 = vadd.f32 %v1724_v48, %v1539_v31 }
 0x180   : > { %v1519_v15 = vpop.f32.mrf.mxu0  ;;  %v6950_v50 = vpop.f32.mrf.mxu1 }
 0x181   : > { %v1541_v43 = vadd.f32 %v1519_v15, %v8411_v33 }
 0x182   : > { %v6924_v46 = vpop.f32.mrf.mxu0  ;;  %v1729_v24 = vpop.f32.mrf.mxu1 }
 0x183   : > { %v8445_v53 = vadd.f32 %v1729_v24, %v1540_v37 }
 0x184   : > { %v1524_v49 = vpop.f32.mrf.mxu0  ;;  %v6953_v57 = vpop.f32.mrf.mxu1 }
 0x185   : > { %v1542_v52 = vadd.f32 %v1524_v49, %v1306_v2 }
 0x186   : > { %v6927_v54 = vpop.f32.mrf.mxu0  ;;  %v1732_v33 = vpop.f32.mrf.mxu1 }
 0x187   : > { %1555 = vst [vmem:[#allocation2 + $0x40] sm:$0xf] %v1542_v52  ;;  %v8450_v60 = vadd.f32 %v1732_v33, %v1541_v43 }
 0x188   : > { %v1527_v55 = vpop.f32.mrf.mxu0  ;;  %v6954_v18 = vpop.f32.mrf.mxu1 }
 0x18a   : > { %v6928_v59 = vpop.f32.mrf.mxu0  ;;  %v1737_v3 = vpop.f32.mrf.mxu1 }
 0x18c   : > { %v1901_v32 = vpop.f32.mrf.mxu0  ;;  %v6957_v6 = vpop.f32.mrf.mxu1 }
 0x18e   : > { %v1568_v63 = vld [vmem:[#allocation2 + $0x40] sm:$0xf]  ;;  %v6963_v4 = vpop.f32.mrf.mxu0  ;;  %v1740_v26 = vpop.f32.mrf.mxu1 }
 0x18f   : > { %v1755_v39 = vadd.f32 %v1737_v3, %v1568_v63 }
 0x190   : > { %v1904_v7 = vpop.f32.mrf.mxu0  ;;  %v6958_v45 = vpop.f32.mrf.mxu1 }
 0x191   : > { %1768 = vst [vmem:[#allocation2 + $0x40] sm:$0xf] %v1755_v39  ;;  %v1955_v45 = vadd.f32 %v1901_v32, %v8416_v10 }
 0x192   : > { %v6964_v9 = vpop.f32.mrf.mxu0  ;;  %v2166_v34 = vpop.f32.mrf.mxu1 }
 0x194   : > { %v8457_v13 = vpop.f32.mrf.mxu0  ;;  %v6993_v51 = vpop.f32.mrf.mxu1 }
 0x196   : > { %v6967_v14 = vpop.f32.mrf.mxu0  ;;  %v2169_v28 = vpop.f32.mrf.mxu1 }
 0x198   : > { %v8459_v16 = vpop.f32.mrf.mxu0  ;;  %v6994_v21 = vpop.f32.mrf.mxu1  ;;  %v1781_v18 = vld [vmem:[#allocation2 + $0x40] sm:$0xf] }
 0x199   : > { %v2220_v21 = vadd.f32 %v2166_v34, %v1955_v45 }
 0x19a   : > { %v6968_v19 = vpop.f32.mrf.mxu0  ;;  %v8463_v23 = vpop.f32.mrf.mxu1 }
 0x19b   : > { %v2557_v19 = vpop.permute.xlu0 %2556 }
 0x19c   : > { %v8461_v12 = vpop.f32.mrf.mxu0  ;;  %v6997_v25 = vpop.f32.mrf.mxu1 }
 0x19e   : > { %v6971_v58 = vpop.f32.mrf.mxu0  ;;  %v8467_v0 = vpop.f32.mrf.mxu1 }
 0x19f   : > { %v2562_v32 = vpop.permute.xlu0 %2561 }
 0x1a0   : > { %v8465_v38 = vpop.f32.mrf.mxu0  ;;  %v6998_v31 = vpop.f32.mrf.mxu1 }
 0x1a2   : > { %v6972_v27 = vpop.f32.mrf.mxu0  ;;  %v8471_v47 = vpop.f32.mrf.mxu1 }
 0x1a3   : > { %v1956_v27 = vadd.f32 %v1904_v7, %v8419_v61 }
 0x1a4   : > { %v8469_v30 = vpop.f32.mrf.mxu0  ;;  %v7001_v36 = vpop.f32.mrf.mxu1 }
 0x1a6   : > { %v6975_v62 = vpop.f32.mrf.mxu0  ;;  %v8475_v56 = vpop.f32.mrf.mxu1 }
 0x1a8   : > { %v8473_v8 = vpop.f32.mrf.mxu0  ;;  %v7002_v15 = vpop.f32.mrf.mxu1 }
 0x1a9   : > { %v2221_v15 = vadd.f32 %v2169_v28, %v1956_v27 }
 0x1aa   : > { %v6976_v37 = vpop.f32.mrf.mxu0  ;;  %v8479_v43 = vpop.f32.mrf.mxu1 }
 0x1ac   : > { %v8477_v40 = vpop.f32.mrf.mxu0  ;;  %v7005_v48 = vpop.f32.mrf.mxu1 }
 0x1ae   : > { %v6979_v42 = vpop.f32.mrf.mxu0  ;;  %v8483_v49 = vpop.f32.mrf.mxu1 }
 0x1b0   : > { %v8481_v46 = vpop.f32.mrf.mxu0  ;;  %v7006_v52 = vpop.f32.mrf.mxu1 }
 0x1b1   : > { %v1957_v52 = vadd.f32 %v8457_v13, %v8422_v5  ;;  %v1958_v13 = vadd.f32 %v8459_v16, %v8425_v11 }
 0x1b2   : > { %v6980_v2 = vpop.f32.mrf.mxu0  ;;  %v8487_v24 = vpop.f32.mrf.mxu1 }
 0x1b3   : > { %v2222_v28 = vadd.f32 %v8463_v23, %v1957_v52  ;;  %v1962_v52 = vadd.f32 %v8473_v8, %v8437_v35 }
 0x1b4   : > { %v8485_v50 = vpop.f32.mrf.mxu0  ;;  %v7009_v57 = vpop.f32.mrf.mxu1 }
 0x1b6   : > { %v6983_v54 = vpop.f32.mrf.mxu0  ;;  %v8491_v33 = vpop.f32.mrf.mxu1 }
 0x1b7   : > { %v2567_v54 = vpop.permute.xlu1 %2566 }
 0x1b8   : > { %v8489_v55 = vpop.f32.mrf.mxu0  ;;  %v7010_v3 = vpop.f32.mrf.mxu1 }
 0x1ba   : > { %v6984_v59 = vpop.f32.mrf.mxu0  ;;  %v8493_v6 = vpop.f32.mrf.mxu1 }
 0x1bb   : > { %v2572_v45 = vpop.permute.xlu1 %2571 }
 0x1bc   : > { %v1949_v63 = vpop.f32.mrf.mxu0  ;;  %v7013_v9 = vpop.f32.mrf.mxu1 }
 0x1bd   : > { %v1967_v4 = vadd.f32 %v1949_v63, %v1781_v18 }
 0x1be   : > { %v6987_v39 = vpop.f32.mrf.mxu0  ;;  %v8496_v51 = vpop.f32.mrf.mxu1 }
 0x1bf   : > { %1980 = vst [vmem:[#allocation2 + $0x40] sm:$0xf] %v1967_v4  ;;  %v2223_v4 = vadd.f32 %v8467_v0, %v1958_v13 }
 0x1c0   : > { %v1952_v26 = vpop.f32.mrf.mxu0  ;;  %v7014_v58 = vpop.f32.mrf.mxu1 }
 0x1c1   : > { %v1959_v26 = vadd.f32 %v8461_v12, %v8428_v17  ;;  %v1960_v58 = vadd.f32 %v8465_v38, %v8431_v22  ;;  %v2577_v12 = vpop.permute.xlu0 %2576 }
 0x1c2   : > { %v6988_v14 = vpop.f32.mrf.mxu0  ;;  %v2214_v36 = vpop.f32.mrf.mxu1 }
 0x1c3   : > { %v2224_v11 = vadd.f32 %v8471_v47, %v1959_v26  ;;  %v2225_v47 = vadd.f32 %v8475_v56, %v1960_v58 }
 0x1c4   : > { %v2382_v25 = vpop.f32.mrf.mxu0  ;;  %v7017_v10 = vpop.f32.mrf.mxu1 }
 0x1c5   : > { %v2436_v31 = vadd.f32 %v2382_v25, %v2220_v21 }
 0x1c6   : > { %v1993_v62 = vld [vmem:[#allocation2 + $0x40] sm:$0xf]  ;;  %v7023_v37 = vpop.f32.mrf.mxu0  ;;  %v2217_v7 = vpop.f32.mrf.mxu1 }
 0x1c7   : > { %v2232_v42 = vadd.f32 %v2214_v36, %v1993_v62  ;;  %v8500_v48 = vmul.f32 %v2557_v19, %v2436_v31  ;;  %v1961_v37 = vadd.f32 %v8469_v30, %v8434_v29  ;;  %v2587_v30 = vpop.permute.xlu0 %2586  ;;  %v2227_v7 = vadd.f32 %v8483_v49, %v1962_v52 }
 0x1c8   : > { %v2385_v2 = vpop.f32.mrf.mxu0  ;;  %v7018_v5 = vpop.f32.mrf.mxu1 }
 0x1c9   : > { %2245 = vst [vmem:[#allocation2 + $0x40] sm:$0xf] %v2232_v42  ;;  %v2437_v34 = vadd.f32 %v2385_v2, %v2221_v15  ;;  %2671 = vxpose.xlu1.b32.start [1/13] (short) %v8500_v48, 128  ;;  %v2582_v15 = vpop.permute.xlu1 %2581  ;;  %v2226_v2 = vadd.f32 %v8479_v43, %v1961_v37 }
 0x1ca   : > { %v7024_v61 = vpop.f32.mrf.mxu0 }
 0x1cb   : > { %v8511_v57 = vmul.f32 %v2562_v32, %v2437_v34  ;;  %v6497_v59 = vpack.c.bf16 %v2437_v34, %v2436_v31 }
 0x1cc   : > { %v2390_v18 = vpop.f32.mrf.mxu0 }
 0x1cd   : > { %v2438_v63 = vadd.f32 %v2390_v18, %v2222_v28  ;;  %2672 = vxpose.xlu1.b32.cont [2/13] (short) %v8511_v57, 128  ;;  %6498 = vst [vmem:[%s8508_s23] sm:$0xff] %v6497_v59   ;;  %v2633_v16 = vadd.f32 %v8511_v57, %v8500_v48  ;;  %v2592_v8 = vpop.permute.xlu1 %2591 }
 0x1ce   : > { %v7027_v3 = vpop.f32.mrf.mxu0 }
 0x1cf   : > { %v8518_v39 = vmul.f32 %v2567_v54, %v2438_v63  ;;  %v1963_v54 = vadd.f32 %v8477_v40, %v8440_v41  ;;  %v1964_v3 = vadd.f32 %v8481_v46, %v8443_v20  ;;  %v2597_v40 = vpop.permute.xlu0 %2596 }
 0x1d0   : > { %v2393_v23 = vpop.f32.mrf.mxu0 }
 0x1d1   : > { %v2439_v9 = vadd.f32 %v2393_v23, %v2223_v4  ;;  %2673 = vxpose.xlu1.b32.cont [3/13] (short) %v8518_v39, 128  ;;  %v2634_v17 = vadd.f32 %v2633_v16, %v8518_v39  ;;  %v2228_v5 = vadd.f32 %v8487_v24, %v1963_v54  ;;  %v2229_v26 = vadd.f32 %v8491_v33, %v1964_v3  ;;  %v2602_v20 = vpop.permute.xlu1 %2601  ;;  %v6164_v54 = vld [vmem:[%s9578_s1 + $0x2] sm:$0x3] }
 0x1d2   : > { %v7028_v14 = vpop.f32.mrf.mxu0 }
 0x1d3   : > { %v8526_v19 = vmul.f32 %v2572_v45, %v2439_v9  ;;  %v6502_v0 = vpack.c.bf16 %v2439_v9, %v2438_v63  ;;  %v1965_v45 = vadd.f32 %v8485_v50, %v8445_v53 }
 0x1d4   : > { %v2398_v21 = vpop.f32.mrf.mxu0 }
 0x1d5   : > { %v2440_v25 = vadd.f32 %v2398_v21, %v2224_v11  ;;  %2674 = vxpose.xlu1.b32.cont [4/13] (short) %v8526_v19, 128  ;;  %6549 = vst [vmem:[%s8508_s23 + $0x8] sm:$0xff] %v6502_v0   ;;  %v2635_v31 = vadd.f32 %v2634_v17, %v8526_v19  ;;  %v2230_v16 = vadd.f32 %v8493_v6, %v1965_v45 }
 0x1d6   : > { %v7031_v27 = vpop.f32.mrf.mxu0 }
 0x1d7   : > { %v8535_v62 = vmul.f32 %v2577_v12, %v2440_v25  ;;  %v2607_v12 = vpop.permute.xlu0 %2606 }
 0x1d8   : > { %v2401_v36 = vpop.f32.mrf.mxu0 }
 0x1d9   : > { %v2441_v22 = vadd.f32 %v2401_v36, %v2225_v47  ;;  %2675 = vxpose.xlu1.b32.cont [5/13] (short) %v8535_v62, 128  ;;  %v2636_v38 = vadd.f32 %v2635_v31, %v8535_v62  ;;  %v2612_v36 = vpop.permute.xlu1 %2611 }
 0x1da   : > { %v7032_v42 = vpop.f32.mrf.mxu0 }
 0x1db   : > { %v8542_v10 = vmul.f32 %v2582_v15, %v2441_v22  ;;  %v6507_v56 = vpack.c.bf16 %v2441_v22, %v2440_v25  ;;  %v1966_v25 = vadd.f32 %v8489_v55, %v8450_v60  ;;  %v2258_v15 = vld [vmem:[#allocation2 + $0x40] sm:$0xf] }
 0x1dc   : > { %v2406_v32 = vpop.f32.mrf.mxu0 }
 0x1dd   : > { %v2442_v34 = vadd.f32 %v2406_v32, %v2226_v2  ;;  %2676 = vxpose.xlu1.b32.cont [6/13] (short) %v8542_v10, 128  ;;  %6550 = vst [vmem:[%s8508_s23 + $0x10] sm:$0xff] %v6507_v56   ;;  %v2637_v29 = vadd.f32 %v2636_v38, %v8542_v10  ;;  %v2231_v50 = vadd.f32 %v8496_v51, %v1966_v25  ;;  %v2617_v32 = vpop.permute.xlu0 %2616 }
 0x1de   : > { %v7035_v61 = vpop.f32.mrf.mxu0 }
 0x1df   : > { %v8550_v28 = vmul.f32 %v2587_v30, %v2442_v34 }
 0x1e0   : > { %v2409_v43 = vpop.f32.mrf.mxu0 }
 0x1e1   : > { %v2443_v59 = vadd.f32 %v2409_v43, %v2227_v7  ;;  %2677 = vxpose.xlu1.b32.cont [7/13] (short) %v8550_v28, 128  ;;  %v2638_v35 = vadd.f32 %v2637_v29, %v8550_v28 }
 0x1e2   : > { %v7036_v18 = vpop.f32.mrf.mxu0 }
 0x1e3   : > { %v8557_v13 = vmul.f32 %v2592_v8, %v2443_v59  ;;  %v6512_v63 = vpack.c.bf16 %v2443_v59, %v2442_v34  ;;  %v2632_v18 = vld [vmem:[%s8453_s18] sm:$0x1] }
 0x1e4   : > { %v2414_v49 = vpop.f32.mrf.mxu0 }
 0x1e5   : > { %v2444_v4 = vadd.f32 %v2414_v49, %v2228_v5  ;;  %2678 = vxpose.xlu1.b32.cont [8/13] (short) %v8557_v13, 128  ;;  %6551 = vst [vmem:[%s8508_s23 + $0x18] sm:$0xff] %v6512_v63   ;;  %v2639_v41 = vadd.f32 %v2638_v35, %v8557_v13  ;;  %v3413_v35 = vsel %vm496_vm0, %v6164_v54, 0  ;;  %v7607_v49 = vld [vmem:[%s7951_s12 + $0x48] sm:$0xff]  }
 0x1e6   : > { %v7039_v23 = vpop.f32.mrf.mxu0  ;;  %7150 = vmatpush3.bf16.msra.mxu0 %v3413_v35 }
 0x1e7   : > { %v2627_v9 = vmul.f32 %v2597_v40, %v2444_v4  ;;  %7209 = vmatprep.subr.bf16.mxu0 %v9566_v1  ;;  %v3348_v40 = vshrl.u32 %v7607_v49, 16 }
 0x1e8   : > { %v2417_v24 = vpop.f32.mrf.mxu0 }
 0x1e9   : > { %v2445_v14 = vadd.f32 %v2417_v24, %v2229_v26  ;;  %2679 = vxpose.xlu1.b32.cont [9/13] (short) %v2627_v9, 128  ;;  %v2640_v11 = vadd.f32 %v2639_v41, %v2627_v9 }
 0x1ea   : > { %v7040_v46 = vpop.f32.mrf.mxu0 }
 0x1eb   : > { %v2628_v0 = vmul.f32 %v2602_v20, %v2445_v14  ;;  %v6517_v21 = vpack.c.bf16 %v2445_v14, %v2444_v4  ;;  %v3344_v4 = vshll.u32 %v7607_v49, 16  ;;  %v6409_v14 = vld [vmem:[%s8020_s21 + $0x98] sm:$0xff] }
 0x1ec   : > { %v2422_v58 = vpop.f32.mrf.mxu0 }
 0x1ed   : > { %v2446_v33 = vadd.f32 %v2422_v58, %v2230_v16  ;;  %2680 = vxpose.xlu1.b32.cont [10/13] (short) %v2628_v0, 128  ;;  %6552 = vst [vmem:[%s8508_s23 + $0x20] sm:$0xff] %v6517_v21   ;;  %v2641_v17 = vadd.f32 %v2640_v11, %v2628_v0  ;;  %v3346_v41 = vrot.slane %v3344_v4, 1  ;;  %v7613_v16 = vld [vmem:[%s7951_s12 + $0x60] sm:$0xff]  }
 0x1ee   : > { %v7043_v53 = vpop.f32.mrf.mxu0  ;;  %v3368_v21 = vshll.u32 %v7613_v16, 16  ;;  %v7628_v4 = vld [vmem:[%s7951_s12 + $0x64] sm:$0xff]  }
 0x1ef   : > { %v2629_v27 = vmul.f32 %v2607_v12, %v2446_v33  ;;  %v3350_v23 = vor.u32 %v3348_v40, %v3346_v41  ;;  %v3372_v12 = vshrl.u32 %v7613_v16, 16  ;;  %v7682_v40 = vld [vmem:[%s7951_s12 + $0x8] sm:$0xff]  }
 0x1f0   : > { %v2425_v47 = vpop.f32.mrf.mxu0  ;;  %v3370_v25 = vrot.slane %v3368_v21, 1 }
 0x1f1   : > { %v2447_v31 = vadd.f32 %v2425_v47, %v2231_v50  ;;  %2681 = vxpose.xlu1.b32.cont [11/13] (short) %v2629_v27, 128  ;;  %v2642_v6 = vadd.f32 %v2641_v17, %v2629_v27  ;;  %v7615_v17 = vld [vmem:[%s7951_s12 + $0x68] sm:$0xff]  }
 0x1f2   : > { %v7044_v37 = vpop.f32.mrf.mxu0  ;;  %v3376_v53 = vshll.u32 %v7615_v17, 16  ;;  %v3374_v50 = vor.u32 %v3372_v12, %v3370_v25 }
 0x1f3   : > { %v2630_v22 = vmul.f32 %v2612_v36, %v2447_v31  ;;  %v6522_v38 = vpack.c.bf16 %v2447_v31, %v2446_v33  ;;  %v7617_v31 = vld [vmem:[%s7951_s12 + $0x70] ss:$0 sps:$4 sm:$0x77]   ;;  %v3380_v36 = vshrl.u32 %v7615_v17, 16 }
 0x1f4   : > { %v2430_v60 = vpop.f32.mrf.mxu0  ;;  %v3384_v37 = vshll.u32 %v7617_v31, 16  ;;  %v7636_v17 = vld [vmem:[%s7951_s12 + $0x4c] sm:$0xff]  }
 0x1f5   : > { %v2448_v55 = vadd.f32 %v2430_v60, %v2258_v15  ;;  %2682 = vxpose.xlu1.b32.cont [12/13] (short) %v2630_v22, 128  ;;  %6553 = vst [vmem:[%s8508_s23 + $0x28] sm:$0xff] %v6522_v38   ;;  %v2643_v42 = vadd.f32 %v2642_v6, %v2630_v22  ;;  %v6220_v6 = vld [vmem:[%s9578_s1 + $0x6] sm:$0x3] }
 0x1f6   : > { %v7047_v2 = vpop.f32.mrf.mxu0  ;;  %v3386_v15 = vrot.slane %v3384_v37, 1 }
 0x1f7   : > { %2461 = vst [vmem:[#allocation2 + $0x40] sm:$0xf] %v2448_v55  ;;  %v3388_v55 = vshrl.u32 %v7617_v31, 16 }
 0x1f8   : > { %v2433_v56 = vpop.f32.mrf.mxu0 }
 0x1f9   : > { %v7621_v56 = vld [vmem:[%s7951_s12 + $0x44] sm:$0xfe]  }
 0x1fa   : > { %v7048_v51 = vpop.f32.mrf.mxu0 }
 0x1fb   : > { %v7622_v51 = vld [vmem:[%s7951_s12 + $0x4c] sm:$0xff]  }
 0x1fe   : > { %v2474_v52 = vld [vmem:[#allocation2 + $0x40] sm:$0xf] }
 0x1ff   : > { %3076 = vst [vmem:[#allocation2 + $0x40] sm:$0xf] %v8298_v44  ;;  %v2631_v34 = vmul.f32 %v2617_v32, %v2474_v52  ;;  %v6479_v29 = vpack.c.bf16 %v2474_v52, %v2474_v52  ;;  %v7676_v32 = vld [vmem:[%s7951_s12 + $0x38] sm:$0x1f]  }
 0x200   : > { %v3019_v52 = vsel %vm2310_vm8, %v7676_v32, 0 }
 0x201   : > { %2683 = vxpose.xlu1.b32.end [13/13] (short) %v2631_v34, 128  ;;  %v2645_v30 = vsel %vm2644_vm9, %v2631_v34, 0.0  ;;  %7049 = vmatprep.subr.msk.mxu1 %vm2644_vm9, %v2631_v34  ;;  %2540 = vst [vmem:[%s8508_s23 + $0x30] sm:$0x3] %v6479_v29  ;;  %v3801_v29 = vrot.slane %v7622_v51, 1  ;;  %v7642_v51 = vld [vmem:[%s7951_s12 + $0x64] sm:$0xff]  }
 0x202   : > { %v2646_v61 = vadd.f32 %v2645_v30, %v2643_v42  ;;  %7050 = vmatpush3.msk.msra.mxu1 %vm2644_vm9, %v2631_v34  ;;  %v3390_v42 = vor.u32 %v3388_v55, %v3386_v15  ;;  %v3800_v34 = vrot.slane %v7621_v56, 1  ;;  %v7640_v55 = vld [vmem:[%s7951_s12 + $0x5c] sm:$0xff]   ;;  %v4278_v32 = vrot.slane %v7642_v51, 2 }
 0x203   : > { %7051 = vmatprep.subr.mxu1 %v2630_v22 }
 0x204   : > { %7052 = vmatpush3.msra.mxu1 %v2630_v22  ;;  %v2647_v7 = vrot.slane %v2646_v61, 4  ;;  %v3835_v22 = vsel %vm496_vm0, %v6220_v6, 0  ;;  %v3005_v6 = vpop.trf.xlu0 }
 0x205   : > { %7053 = vmatprep.subr.mxu1 %v2629_v27 }
 0x206   : > { %7054 = vmatpush3.msra.mxu1 %v2629_v27  ;;  %v2648_v43 = vadd.f32 %v2647_v7, %v2646_v61  ;;  %v3378_v27 = vrot.slane %v3376_v53, 1  ;;  %v3802_v61 = vsel %vm930_vm4, %v3800_v34, %v3801_v29  ;;  %v4272_v53 = vrot.slane %v7636_v17, 2 }
 0x207   : > { %7055 = vmatprep.subr.mxu1 %v2628_v0 }
 0x208   : > { %7056 = vmatpush3.msra.mxu1 %v2628_v0  ;;  %v2649_v44 = vrot.slane %v2648_v43, 2  ;;  %v3379_v47 = vsel %vm675_vm3, %v3374_v50, %v3378_v27  ;;  %v3382_v38 = vor.u32 %v3380_v36, %v3378_v27  ;;  %v3104_v27 = vld [vmem:[%s9578_s1] sm:$0x3]  ;;  %v7638_v36 = vld [vmem:[%s7951_s12 + $0x54] sm:$0xff]  }
 0x209   : > { %7057 = vmatprep.subr.mxu1 %v2627_v9  ;;  %v3160_v31 = vsel %vm496_vm0, %v3104_v27, 0  ;;  %v4274_v37 = vrot.slane %v7638_v36, 2 }
 0x20a   : > { %7058 = vmatpush3.msra.mxu1 %v2627_v9  ;;  %v2650_v59 = vadd.f32 %v2649_v44, %v2648_v43  ;;  %v3387_v60 = vsel %vm675_vm3, %v3382_v38, %v3386_v15  ;;  %v7624_v43 = vld [vmem:[%s7951_s12 + $0x54] sm:$0xff]   ;;  %v7604_v38 = vld [vmem:[%s7951_s12 + $0x40] sm:$0xff]  }
 0x20b   : > { %7059 = vmatprep.subr.mxu1 %v8557_v13  ;;  %v7677_v44 = vld [vmem:[%s7951_s12 + $0x30] sm:$0xff]   ;;  %v3803_v54 = vrot.slane %v7624_v43, 1  ;;  %v4275_v15 = vsel %vm1617_vm6, %v4272_v53, %v4274_v37 }
 0x20c   : > { %7060 = vmatpush3.msra.mxu1 %v8557_v13  ;;  %v2651_v8 = vrot.slane %v2650_v59, 1  ;;  %v7606_v13 = vld [vmem:[%s7951_s12 + $0x40] sm:$0xff]   ;;  %v7645_v43 = vld [vmem:[%s7951_s12 + $0x74] ss:$0 sps:$4 sm:$0xff]  }
 0x20d   : > { %7061 = vmatprep.subr.mxu1 %v8550_v28  ;;  %v3339_v3 = vshll.u32 %v7606_v13, 16  ;;  %v3804_v35 = vsel %vm930_vm4, %v3801_v29, %v3803_v54  ;;  %v7644_v29 = vld [vmem:[%s7951_s12 + $0x6c] sm:$0xff]  }
 0x20e   : > { %7062 = vmatpush3.msra.mxu1 %v8550_v28  ;;  %v2652_v5 = vadd.f32 %v2651_v8, %v2650_v59  ;;  %v3337_v28 = vshrl.u32 %v7606_v13, 16  ;;  %v7678_v8 = vld [vmem:[%s7951_s12 + $0x28] sm:$0xff]  }
 0x20f   : > { %7063 = vmatprep.subr.mxu1 %v8542_v10 }
 0x210   : > { %7064 = vmatpush3.msra.mxu1 %v8542_v10  ;;  %v2653_v63 = vadd.f32 %v2652_v5, %v2632_v18  ;;  %v3341_v10 = vrot.slane %v3339_v3, 1  ;;  %v7626_v5 = vld [vmem:[%s7951_s12 + $0x5c] sm:$0xff]  }
 0x211   : > { %7065 = vmatprep.subr.mxu1 %v8535_v62  ;;  %v3805_v13 = vrot.slane %v7626_v5, 1  ;;  %v7649_v5 = vld [vmem:[%s7951_s12 + $0x48] sm:$0xfc]  }
 0x212   : > { %7066 = vmatpush3.msra.mxu1 %v8535_v62  ;;  %2654 = vst [vmem:[%s8453_s18] sm:$0x1] %v2653_v63  ;;  %v3342_v62 = vor.u32 %v3341_v10, %v3337_v28  ;;  %v7679_v63 = vld [vmem:[%s7951_s12 + $0x20] sm:$0xff]   ;;  %v7680_v28 = vld [vmem:[%s7951_s12 + $0x18] sm:$0xff]  }
 0x213   : > { %7067 = vmatprep.subr.mxu1 %v8526_v19  ;;  %v3806_v3 = vsel %vm930_vm4, %v3803_v54, %v3805_v13  ;;  %v7612_v54 = vld [vmem:[%s7951_s12 + $0x60] sm:$0xff]  }
 0x214   : > { %7068 = vmatpush3.msra.mxu1 %v8526_v19  ;;  %v3347_v19 = vsel %vm675_vm3, %v3342_v62, %v3346_v41  ;;  %v7681_v62 = vld [vmem:[%s7951_s12 + $0x10] sm:$0xff]   ;;  %v3807_v41 = vrot.slane %v7628_v4, 1 }
 0x215   : > { %7069 = vmatprep.subr.mxu1 %v8518_v39  ;;  %7152 = vmatmul.mubr.msk.bf16.vlgmr.msra.gmra.mxu0 %vm474_vm2, %v3347_v19 }
 0x216   : > { %7070 = vmatpush3.msra.mxu1 %v8518_v39  ;;  %7155 = vmatprep.mubr.msk.bf16.mxu0 %vm7819_vm1, %v9566_v1  ;;  %v7609_v39 = vld [vmem:[%s7951_s12 + $0x50] sm:$0xff]  }
 0x217   : > { %7071 = vmatprep.subr.mxu1 %v8511_v57  ;;  %v3356_v24 = vshrl.u32 %v7609_v39, 16  ;;  %7210 = vmatpush3.bf16.msra.mxu0 %v3835_v22  ;;  %v6192_v22 = vld [vmem:[%s9578_s1 + $0x4] sm:$0x3] }
 0x218   : > { %7072 = vmatpush3.msra.mxu1 %v8511_v57  ;;  %v3352_v57 = vshll.u32 %v7609_v39, 16  ;;  %7269 = vmatprep.subr.bf16.mxu0 %v9566_v1  ;;  %v3808_v39 = vsel %vm930_vm4, %v3805_v13, %v3807_v41  ;;  %v4697_v13 = vshrl.u32 %v7649_v5, 16 }
 0x219   : > { %7073 = vmatprep.subr.mxu1 %v8500_v48 }
 0x21a   : > { %7074 = vmatpush3.msra.mxu1 %v8500_v48  ;;  %v3354_v26 = vrot.slane %v3352_v57, 1  ;;  %v7611_v48 = vld [vmem:[%s7951_s12 + $0x58] sm:$0xff]  }
 0x21b   : > { %7099 = vmatprep.subr.bf16.mxu1 %v9566_v1  ;;  %v3360_v45 = vshll.u32 %v7611_v48, 16  ;;  %v3364_v0 = vshrl.u32 %v7611_v48, 16 }
 0x21c   : > { %v3355_v9 = vsel %vm675_vm3, %v3350_v23, %v3354_v26  ;;  %v3358_v11 = vor.u32 %v3356_v24, %v3354_v26  ;;  %v7630_v23 = vld [vmem:[%s7951_s12 + $0x6c] sm:$0xff]   ;;  %v7683_v26 = vld [vmem:[%s7951_s12] sm:$0xff]  }
 0x21d   : > { %7156 = vmatmul.mubr.msk.bf16.gmra.mxu0 %vm474_vm2, %v3355_v9  ;;  %v3362_v20 = vrot.slane %v3360_v45, 1  ;;  %v3809_v9 = vrot.slane %v7630_v23, 1  ;;  %v7618_v23 = vld [vmem:[%s7951_s12 + $0x40] sm:$0xfe]  }
 0x21e   : > { %7159 = vmatprep.mubr.msk.bf16.mxu0 %vm7819_vm1, %v9566_v1 }
 0x21f   : > { %v3363_v46 = vsel %vm675_vm3, %v3358_v11, %v3362_v20  ;;  %v3366_v58 = vor.u32 %v3364_v0, %v3362_v20  ;;  %v3810_v24 = vsel %vm930_vm4, %v3807_v41, %v3809_v9  ;;  %v7631_v11 = vld [vmem:[%s7951_s12 + $0x74] ss:$0 sps:$4 sm:$0x77]  }
 0x221   : > { %v3371_v33 = vsel %vm675_vm3, %v3366_v58, %v3370_v25 }
 0x225   : > { %7160 = vmatmul.mubr.msk.bf16.gmra.mxu0 %vm474_vm2, %v3363_v46  ;;  %v3811_v46 = vrot.slane %v7631_v11, 1  ;;  %v3589_v11 = vrot.slane %v7618_v23, 1 }
 0x226   : > { %7163 = vmatprep.mubr.msk.bf16.mxu0 %vm7819_vm1, %v9566_v1 }
 0x227   : > { %v3812_v0 = vsel %vm930_vm4, %v3809_v9, %v3811_v46 }
 0x22b   : > { %5236 = vperm.xlu1 %7532, %v6409_v14   ;;  %v6276_v14 = vld [vmem:[%s9578_s1 + $0xa] sm:$0x3] }
 0x22c   : > { %v4306_v20 = vsel %vm496_vm0, %v6276_v14, 0 }
 0x22d   : > { %7164 = vmatmul.mubr.msk.bf16.gmra.mxu0 %vm474_vm2, %v3371_v33  ;;  %v7635_v33 = vld [vmem:[%s7951_s12 + $0x44] sm:$0xfc]  }
 0x22e   : > { %7167 = vmatprep.mubr.msk.bf16.mxu0 %vm7819_vm1, %v9566_v1  ;;  %v4271_v12 = vrot.slane %v7635_v33, 2 }
 0x235   : > { %7168 = vmatmul.mubr.msk.bf16.gmra.mxu0 %vm474_vm2, %v3379_v47  ;;  %v4273_v47 = vsel %vm1617_vm6, %v4271_v12, %v4272_v53 }
 0x236   : > { %7171 = vmatprep.mubr.msk.bf16.mxu0 %vm7819_vm1, %v9566_v1 }
 0x23d   : > { %7172 = vmatmul.mubr.msk.bf16.gmra.mxu0 %vm474_vm2, %v3387_v60  ;;  %v3624_v60 = vsel %vm496_vm0, %v6192_v22, 0 }
 0x23e   : > { %7175 = vmatprep.mubr.msk.bf16.mxu0 %vm7819_vm1, %v9566_v1 }
 0x245   : > { %7176 = vmatmul.mubr.msk.bf16.gmra.mxu0 %vm474_vm2, %v3390_v42  ;;  %v4276_v42 = vrot.slane %v7640_v55, 2 }
 0x246   : > { %7211 = vmatprep.mubr.msk.bf16.mxu0 %vm7819_vm1, %v9566_v1 }
 0x247   : > { %v4277_v56 = vsel %vm1617_vm6, %v4274_v37, %v4276_v42  ;;  %v4279_v34 = vsel %vm1617_vm6, %v4276_v42, %v4278_v32  ;;  %v7623_v37 = vld [vmem:[%s7951_s12 + $0x58] sm:$0xff]  }
 0x248   : > { %v3594_v55 = vrot.slane %v7623_v37, 1 }
 0x24d   : > { %v2687_v2 = vpop.trf.xlu1  ;;  %7212 = vmatmul.mubr.msk.bf16.vlgmr.msra.gmra.mxu0 %vm474_vm2, %v3802_v61  ;;  %v7610_v61 = vld [vmem:[%s7951_s12 + $0x58] sm:$0xff]  }
 0x24e   : > { %7075 = vmatprep.mubr.msk.f32.mxu1 %vm2703_vm10, %v2687_v2  ;;  %7215 = vmatprep.mubr.msk.bf16.mxu0 %vm7819_vm1, %v9566_v1  ;;  %v7605_v2 = vld [vmem:[%s7951_s12 + $0x48] sm:$0xff]  }
 0x24f   : > { %7270 = vmatpush3.bf16.msra.mxu0 %v4306_v20 }
 0x250   : > { %7329 = vmatprep.subr.bf16.mxu0 %v9566_v1 }
 0x251   : > { %v2688_v30 = vpop.trf.xlu1 }
 0x252   : > { %7076 = vmatmul.mubr.msk.f32.vlgmr.msra.gmra.mxu1 %vm2703_vm10, %v2688_v30  ;;  %v4280_v30 = vrot.slane %v7644_v29, 2 }
 0x253   : > { %7100 = vmatpush3.bf16.msra.mxu1 %v3019_v52  ;;  %v7608_v52 = vld [vmem:[%s7951_s12 + $0x50] sm:$0xff]  }
 0x254   : > { %7101 = vmatprep.subr.bf16.mxu1 %v9566_v1 }
 0x255   : > { %v2689_v7 = vpop.trf.xlu1  ;;  %7216 = vmatmul.mubr.msk.bf16.gmra.mxu0 %vm474_vm2, %v3804_v35  ;;  %v6333_v35 = vld [vmem:[%s9578_s1 + $0xe] sm:$0x3] }
 0x256   : > { %7078 = vmatprep.mubr.msk.f32.mxu1 %vm2703_vm10, %v2689_v7  ;;  %7219 = vmatprep.mubr.msk.bf16.mxu0 %vm7819_vm1, %v9566_v1  ;;  %v4281_v7 = vsel %vm1617_vm6, %v4278_v32, %v4280_v30  ;;  %v7625_v32 = vld [vmem:[%s7951_s12 + $0x60] sm:$0xff]  }
 0x257   : > { %7102 = vmatpush3.bf16.msra.mxu1 %v7677_v44  ;;  %v4282_v44 = vrot.slane %v7645_v43, 2  ;;  %v3596_v43 = vrot.slane %v7625_v32, 1 }
 0x258   : > { %7103 = vmatprep.subr.bf16.mxu1 %v9566_v1 }
 0x259   : > { %v2690_v59 = vpop.trf.xlu1 }
 0x25a   : > { %7079 = vmatmul.mubr.msk.f32.gmra.mxu1 %vm2703_vm10, %v2690_v59  ;;  %v4283_v59 = vsel %vm1617_vm6, %v4280_v30, %v4282_v44 }
 0x25b   : > { %7104 = vmatpush3.bf16.msra.mxu1 %v7678_v8  ;;  %v4780_v8 = vsel %vm496_vm0, %v6333_v35, 0 }
 0x25c   : > { %7105 = vmatprep.subr.bf16.mxu1 %v9566_v1 }
 0x25d   : > { %v2691_v18 = vpop.trf.xlu1  ;;  %7220 = vmatmul.mubr.msk.bf16.gmra.mxu0 %vm474_vm2, %v3806_v3 }
 0x25e   : > { %7081 = vmatprep.mubr.msk.f32.mxu1 %vm2703_vm10, %v2691_v18  ;;  %7223 = vmatprep.mubr.msk.bf16.mxu0 %vm7819_vm1, %v9566_v1  ;;  %v7614_v18 = vld [vmem:[%s7951_s12 + $0x68] sm:$0xff]  }
 0x25f   : > { %7106 = vmatpush3.bf16.msra.mxu1 %v7679_v63  ;;  %v7650_v63 = vld [vmem:[%s7951_s12 + $0x50] sm:$0xff]  }
 0x260   : > { %7107 = vmatprep.subr.bf16.mxu1 %v9566_v1  ;;  %v4705_v3 = vshrl.u32 %v7650_v63, 16 }
 0x261   : > { %v2692_v49 = vpop.trf.xlu1 }
 0x262   : > { %7082 = vmatmul.mubr.msk.f32.gmra.mxu1 %vm2703_vm10, %v2692_v49  ;;  %v4700_v49 = vshll.u32 %v7649_v5, 16  ;;  %v7627_v5 = vld [vmem:[%s7951_s12 + $0x68] sm:$0xff]  }
 0x263   : > { %7108 = vmatpush3.bf16.msra.mxu1 %v7680_v28  ;;  %v4708_v28 = vshll.u32 %v7650_v63, 16 }
 0x264   : > { %7109 = vmatprep.subr.bf16.mxu1 %v9566_v1  ;;  %v4702_v4 = vrot.slane %v4700_v49, 3 }
 0x265   : > { %v2693_v10 = vpop.trf.xlu1  ;;  %7224 = vmatmul.mubr.msk.bf16.gmra.mxu0 %vm474_vm2, %v3808_v39  ;;  %v4710_v41 = vrot.slane %v4708_v28, 3 }
 0x266   : > { %7084 = vmatprep.mubr.msk.f32.mxu1 %vm2703_vm10, %v2693_v10  ;;  %7227 = vmatprep.mubr.msk.bf16.mxu0 %vm7819_vm1, %v9566_v1  ;;  %v4699_v10 = vrot.slane %v4697_v13, 2 }
 0x267   : > { %7110 = vmatpush3.bf16.msra.mxu1 %v7681_v62  ;;  %v4707_v62 = vrot.slane %v4705_v3, 2 }
 0x268   : > { %7111 = vmatprep.subr.bf16.mxu1 %v9566_v1 }
 0x269   : > { %v2694_v19 = vpop.trf.xlu1  ;;  %v4711_v39 = vor.u32 %v4710_v41, %v4707_v62 }
 0x26a   : > { %7085 = vmatmul.mubr.msk.f32.gmra.mxu1 %vm2703_vm10, %v2694_v19  ;;  %v4703_v19 = vor.u32 %v4702_v4, %v4699_v10  ;;  %v3598_v4 = vrot.slane %v7627_v5, 1 }
 0x26b   : > { %7112 = vmatpush3.bf16.msra.mxu1 %v7682_v40  ;;  %v7616_v40 = vld [vmem:[%s7951_s12 + $0x70] ss:$0 sps:$4 sm:$0x33]  }
 0x26c   : > { %7113 = vmatprep.subr.bf16.mxu1 %v9566_v1  ;;  %v4712_v9 = vsel %vm2045_vm7, %v4703_v19, %v4711_v39 }
 0x26d   : > { %v2695_v57 = vpop.trf.xlu1  ;;  %7228 = vmatmul.mubr.msk.bf16.gmra.mxu0 %vm474_vm2, %v3810_v24 }
 0x26e   : > { %7087 = vmatprep.mubr.msk.f32.mxu1 %vm2703_vm10, %v2695_v57  ;;  %7231 = vmatprep.mubr.msk.bf16.mxu0 %vm7819_vm1, %v9566_v1  ;;  %v7652_v57 = vld [vmem:[%s7951_s12 + $0x58] sm:$0xff]  }
 0x26f   : > { %7114 = vmatpush3.bf16.msra.mxu1 %v7683_v26  ;;  %v7619_v26 = vld [vmem:[%s7951_s12 + $0x48] sm:$0xff]   ;;  %v4717_v24 = vshll.u32 %v7652_v57, 16 }
 0x270   : > { %7119 = vmatprep.subr.bf16.mxu1 %v9566_v1  ;;  %v3590_v20 = vrot.slane %v7619_v26, 1 }
 0x271   : > { %v2696_v48 = vpop.trf.xlu1  ;;  %v4719_v14 = vrot.slane %v4717_v24, 3 }
 0x272   : > { %7088 = vmatmul.mubr.msk.f32.gmra.mxu1 %vm2703_vm10, %v2696_v48  ;;  %v4714_v48 = vshrl.u32 %v7652_v57, 16  ;;  %v7629_v57 = vld [vmem:[%s7951_s12 + $0x70] ss:$0 sps:$4 sm:$0x77]  }
 0x275   : > { %v2697_v45 = vpop.trf.xlu1  ;;  %7232 = vmatmul.mubr.msk.bf16.gmra.mxu0 %vm474_vm2, %v3812_v0 }
 0x276   : > { %7090 = vmatprep.mubr.msk.f32.mxu1 %vm2703_vm10, %v2697_v45  ;;  %7235 = vmatprep.mubr.msk.bf16.mxu0 %vm7819_vm1, %v9566_v1  ;;  %v4716_v45 = vrot.slane %v4714_v48, 2 }
 0x279   : > { %v2698_v16 = vpop.trf.xlu1 }
 0x27a   : > { %7091 = vmatmul.mubr.msk.f32.gmra.mxu1 %vm2703_vm10, %v2698_v16  ;;  %v6248_v16 = vld [vmem:[%s9578_s1 + $0x8] sm:$0x3] }
 0x27b   : > { %v4095_v33 = vsel %vm496_vm0, %v6248_v16, 0 }
 0x27d   : > { %v2699_v21 = vpop.trf.xlu1  ;;  %7236 = vmatmul.mubr.msk.bf16.gmra.mxu0 %vm474_vm2, %v3811_v46  ;;  %v4720_v46 = vor.u32 %v4719_v14, %v4716_v45  ;;  %v7632_v14 = vld [vmem:[%s7951_s12 + $0x44] sm:$0xfe]  }
 0x27e   : > { %7093 = vmatprep.mubr.msk.f32.mxu1 %vm2703_vm10, %v2699_v21  ;;  %7271 = vmatprep.mubr.msk.bf16.mxu0 %vm7819_vm1, %v9566_v1  ;;  %v7654_v21 = vld [vmem:[%s7951_s12 + $0x60] sm:$0xff]   ;;  %v4012_v16 = vshrl.u32 %v7632_v14, 16 }
 0x27f   : > { %v4721_v0 = vsel %vm2045_vm7, %v4711_v39, %v4720_v46  ;;  %v4723_v17 = vshrl.u32 %v7654_v21, 16  ;;  %v4726_v12 = vshll.u32 %v7654_v21, 16 }
 0x281   : > { %v2700_v58 = vpop.trf.xlu1  ;;  %v4725_v53 = vrot.slane %v4723_v17, 2  ;;  %v4014_v17 = vrot.slane %v4012_v16, 1 }
 0x282   : > { %7094 = vmatmul.mubr.msk.f32.gmra.mxu1 %vm2703_vm10, %v2700_v58  ;;  %v3591_v58 = vsel %vm930_vm4, %v3589_v11, %v3590_v20  ;;  %v7633_v11 = vld [vmem:[%s7951_s12 + $0x4c] sm:$0xff]  }
 0x283   : > { %v4020_v21 = vshrl.u32 %v7633_v11, 16 }
 0x285   : > { %v2701_v25 = vpop.trf.xlu1  ;;  %7272 = vmatmul.mubr.msk.bf16.vlgmr.msra.gmra.mxu0 %vm474_vm2, %v4273_v47 }
 0x286   : > { %7096 = vmatprep.mubr.msk.f32.mxu1 %vm2703_vm10, %v2701_v25  ;;  %7275 = vmatprep.mubr.msk.bf16.mxu0 %vm7819_vm1, %v9566_v1  ;;  %v7620_v25 = vld [vmem:[%s7951_s12 + $0x50] sm:$0xff]  }
 0x287   : > { %7330 = vmatpush3.bf16.msra.mxu0 %v4780_v8  ;;  %v3592_v27 = vrot.slane %v7620_v25, 1  ;;  %v7659_v8 = vld [vmem:[%s7951_s12 + $0x78] sm:$0x1f]  }
 0x288   : > { %v4750_v13 = vshrl.u32 %v7659_v8, 16  ;;  %v4753_v49 = vshll.u32 %v7659_v8, 16  ;;  %v7639_v8 = vld [vmem:[%s7951_s12 + $0x64] sm:$0xff]  }
 0x289   : > { %v2702_v50 = vpop.trf.xlu1  ;;  %v3593_v36 = vsel %vm930_vm4, %v3590_v20, %v3592_v27  ;;  %v3595_v51 = vsel %vm930_vm4, %v3592_v27, %v3594_v55  ;;  %v7634_v27 = vld [vmem:[%s7951_s12 + $0x54] sm:$0xff]  }
 0x28a   : > { %7097 = vmatmul.mubr.msk.f32.gmra.mxu1 %vm2703_vm10, %v2702_v50  ;;  %v4728_v50 = vrot.slane %v4726_v12, 3  ;;  %v4752_v28 = vrot.slane %v4750_v13, 2  ;;  %v4755_v10 = vrot.slane %v4753_v49, 3  ;;  %v4029_v37 = vshrl.u32 %v7634_v27, 16 }
 0x28b   : > { %7115 = vmatprep.mubr.msk.bf16.mxu1 %vm7819_vm1, %v9566_v1  ;;  %v4047_v49 = vshrl.u32 %v7639_v8, 16 }
 0x28c   : > { %v4729_v47 = vor.u32 %v4728_v50, %v4725_v53  ;;  %v4756_v41 = vor.u32 %v4755_v10, %v4752_v28  ;;  %v4022_v53 = vrot.slane %v4020_v21, 1 }
 0x28d   : > { %7276 = vmatmul.mubr.msk.bf16.gmra.mxu0 %vm474_vm2, %v4275_v15 }
 0x28e   : > { %7116 = vmatmul.mubr.msk.bf16.vlgmr.msra.gmra.mxu1 %vm3013_vm11, %v3005_v6  ;;  %7279 = vmatprep.mubr.msk.bf16.mxu0 %vm7819_vm1, %v9566_v1  ;;  %v7656_v6 = vld [vmem:[%s7951_s12 + $0x68] sm:$0xff]  }
 0x28f   : > { %7120 = vmatpush3.bf16.msra.mxu1 %v3160_v31  ;;  %7121 = vmatprep.mubr.msk.bf16.mxu1 %vm7819_vm1, %v9566_v1  ;;  %v4730_v31 = vsel %vm2045_vm7, %v4720_v46, %v4729_v47  ;;  %v4732_v22 = vshrl.u32 %v7656_v6, 16 }
 0x290   : > { %7179 = vmatprep.subr.bf16.mxu1 %v9566_v1 }
 0x291   : > { %v4734_v15 = vrot.slane %v4732_v22, 2  ;;  %v4032_v22 = vshll.u32 %v7634_v27, 16 }
 0x295   : > { %7280 = vmatmul.mubr.msk.bf16.gmra.mxu0 %vm474_vm2, %v4277_v56  ;;  %v7658_v56 = vld [vmem:[%s7951_s12 + $0x70] sm:$0xff]  }
 0x296   : > { %7122 = vmatmul.mubr.msk.bf16.vlgmr.msra.gmra.mxu1 %vm474_vm2, %v7604_v38  ;;  %7283 = vmatprep.mubr.msk.bf16.mxu0 %vm7819_vm1, %v9566_v1  ;;  %v4735_v38 = vshll.u32 %v7656_v6, 16  ;;  %v4744_v29 = vshll.u32 %v7658_v56, 16 }
 0x297   : > { %7180 = vmatpush3.bf16.msra.mxu1 %v3624_v60  ;;  %7125 = vmatprep.mubr.msk.bf16.mxu1 %vm7819_vm1, %v9566_v1 }
 0x298   : > { %7239 = vmatprep.subr.bf16.mxu1 %v9566_v1  ;;  %v4737_v60 = vrot.slane %v4735_v38, 3 }
 0x29a   : > { %v4738_v42 = vor.u32 %v4737_v60, %v4734_v15  ;;  %v6304_v15 = vld [vmem:[%s9578_s1 + $0xc] sm:$0x3] }
 0x29b   : > { %v4517_v32 = vsel %vm496_vm0, %v6304_v15, 0 }
 0x29d   : > { %7284 = vmatmul.mubr.msk.bf16.gmra.mxu0 %vm474_vm2, %v4279_v34  ;;  %v4741_v34 = vshrl.u32 %v7658_v56, 16  ;;  %v7637_v56 = vld [vmem:[%s7951_s12 + $0x5c] sm:$0xff]  }
 0x29e   : > { %7126 = vmatmul.mubr.msk.bf16.gmra.mxu1 %vm474_vm2, %v7605_v2  ;;  %7287 = vmatprep.mubr.msk.bf16.mxu0 %vm7819_vm1, %v9566_v1  ;;  %v4739_v2 = vsel %vm2045_vm7, %v4729_v47, %v4738_v42 }
 0x29f   : > { %7129 = vmatprep.mubr.msk.bf16.mxu1 %vm7819_vm1, %v9566_v1 }
 0x2a5   : > { %7288 = vmatmul.mubr.msk.bf16.gmra.mxu0 %vm474_vm2, %v4281_v7  ;;  %v4746_v7 = vrot.slane %v4744_v29, 3 }
 0x2a6   : > { %7130 = vmatmul.mubr.msk.bf16.gmra.mxu1 %vm474_vm2, %v7608_v52  ;;  %7291 = vmatprep.mubr.msk.bf16.mxu0 %vm7819_vm1, %v9566_v1 }
 0x2a7   : > { %7133 = vmatprep.mubr.msk.bf16.mxu1 %vm7819_vm1, %v9566_v1 }
 0x2ad   : > { %7292 = vmatmul.mubr.msk.bf16.gmra.mxu0 %vm474_vm2, %v4283_v59 }
 0x2ae   : > { %7134 = vmatmul.mubr.msk.bf16.gmra.mxu1 %vm474_vm2, %v7610_v61  ;;  %7295 = vmatprep.mubr.msk.bf16.mxu0 %vm7819_vm1, %v9566_v1  ;;  %v4743_v61 = vrot.slane %v4741_v34, 2 }
 0x2af   : > { %7137 = vmatprep.mubr.msk.bf16.mxu1 %vm7819_vm1, %v9566_v1 }
 0x2b5   : > { %7296 = vmatmul.mubr.msk.bf16.gmra.mxu0 %vm474_vm2, %v4282_v44 }
 0x2b6   : > { %7138 = vmatmul.mubr.msk.bf16.gmra.mxu1 %vm474_vm2, %v7612_v54  ;;  %7331 = vmatprep.mubr.msk.bf16.mxu0 %vm7819_vm1, %v9566_v1  ;;  %v4747_v54 = vor.u32 %v4746_v7, %v4743_v61  ;;  %v4041_v61 = vshll.u32 %v7637_v56, 16 }
 0x2b7   : > { %7141 = vmatprep.mubr.msk.bf16.mxu1 %vm7819_vm1, %v9566_v1 }
 0x2b8   : > { %v4748_v35 = vsel %vm2045_vm7, %v4738_v42, %v4747_v54  ;;  %v4757_v39 = vsel %vm2045_vm7, %v4747_v54, %v4756_v41  ;;  %v4031_v42 = vrot.slane %v4029_v37, 1 }
 0x2bd   : > { %7332 = vmatmul.mubr.msk.bf16.vlgmr.msra.gmra.mxu0 %vm474_vm2, %v4712_v9  ;;  %v3600_v9 = vrot.slane %v7629_v57, 1 }
 0x2be   : > { %7142 = vmatmul.mubr.msk.bf16.gmra.mxu1 %vm474_vm2, %v7614_v18  ;;  %7335 = vmatprep.mubr.msk.bf16.mxu0 %vm7819_vm1, %v9566_v1  ;;  %v3597_v18 = vsel %vm930_vm4, %v3594_v55, %v3596_v43 }
 0x2bf   : > { %7145 = vmatprep.mubr.msk.bf16.mxu1 %vm7819_vm1, %v9566_v1  ;;  %v3601_v45 = vsel %vm930_vm4, %v3598_v4, %v3600_v9 }
 0x2c5   : > { %7336 = vmatmul.mubr.msk.bf16.gmra.mxu0 %vm474_vm2, %v4721_v0  ;;  %v4015_v0 = vshll.u32 %v7632_v14, 16 }
 0x2c6   : > { %7146 = vmatmul.mubr.msk.bf16.gmra.mxu1 %vm474_vm2, %v7616_v40  ;;  %7339 = vmatprep.mubr.msk.bf16.mxu0 %vm7819_vm1, %v9566_v1  ;;  %v3599_v40 = vsel %vm930_vm4, %v3596_v43, %v3598_v4 }
 0x2c7   : > { %7181 = vmatprep.mubr.msk.bf16.mxu1 %vm7819_vm1, %v9566_v1  ;;  %v4017_v12 = vrot.slane %v4015_v0, 2 }
 0x2c9   : > { %v4018_v6 = vor.u32 %v4017_v12, %v4014_v17 }
 0x2cd   : > { %7340 = vmatmul.mubr.msk.bf16.gmra.mxu0 %vm474_vm2, %v4730_v31 }
 0x2ce   : > { %7182 = vmatmul.mubr.msk.bf16.vlgmr.msra.gmra.mxu1 %vm474_vm2, %v3591_v58  ;;  %7343 = vmatprep.mubr.msk.bf16.mxu0 %vm7819_vm1, %v9566_v1  ;;  %v4023_v58 = vshll.u32 %v7633_v11, 16 }
 0x2cf   : > { %7240 = vmatpush3.bf16.msra.mxu1 %v4095_v33  ;;  %7185 = vmatprep.mubr.msk.bf16.mxu1 %vm7819_vm1, %v9566_v1 }
 0x2d0   : > { %7299 = vmatprep.subr.bf16.mxu1 %v9566_v1  ;;  %v4025_v50 = vrot.slane %v4023_v58, 2 }
 0x2d5   : > { %v8839_v52 = vpop.f32.mrf.mxu0  ;;  %7344 = vmatmul.mubr.msk.bf16.gmra.mxu0 %vm474_vm2, %v4739_v2  ;;  %v4034_v2 = vrot.slane %v4032_v22, 2 }
 0x2d6   : > { %7186 = vmatmul.mubr.msk.bf16.gmra.mxu1 %vm474_vm2, %v3593_v36  ;;  %7347 = vmatprep.mubr.msk.bf16.mxu0 %vm7819_vm1, %v9566_v1  ;;  %v4026_v36 = vor.u32 %v4025_v50, %v4022_v53 }
 0x2d7   : > { %7189 = vmatprep.mubr.msk.bf16.mxu1 %vm7819_vm1, %v9566_v1  ;;  %v7153_v30 = vpop.f32.mrf.mxu0  ;;  %v4035_v29 = vor.u32 %v4034_v2, %v4031_v42 }
 0x2d8   : > { %v4027_v55 = vsel %vm1355_vm5, %v4018_v6, %v4026_v36  ;;  %v4038_v30 = vshrl.u32 %v7637_v56, 16 }
 0x2d9   : > { %v8847_v44 = vpop.f32.mrf.mxu0  ;;  %v4036_v54 = vsel %vm1355_vm5, %v4026_v36, %v4035_v29 }
 0x2db   : > { %v7154_v59 = vpop.f32.mrf.mxu0 }
 0x2dc   : > { %v4040_v59 = vrot.slane %v4038_v30, 1 }
 0x2dd   : > { %v8853_v63 = vpop.f32.mrf.mxu0  ;;  %7348 = vmatmul.mubr.msk.bf16.gmra.mxu0 %vm474_vm2, %v4748_v35  ;;  %v4043_v35 = vrot.slane %v4041_v61, 2 }
 0x2de   : > { %7190 = vmatmul.mubr.msk.bf16.gmra.mxu1 %vm474_vm2, %v3595_v51  ;;  %7351 = vmatprep.mubr.msk.bf16.mxu0 %vm7819_vm1, %v9566_v1 }
 0x2df   : > { %7193 = vmatprep.mubr.msk.bf16.mxu1 %vm7819_vm1, %v9566_v1  ;;  %v7157_v3 = vpop.f32.mrf.mxu0  ;;  %v4044_v13 = vor.u32 %v4043_v35, %v4040_v59 }
 0x2e0   : > { %v4050_v3 = vshll.u32 %v7639_v8, 16 }
 0x2e1   : > { %v8861_v62 = vpop.f32.mrf.mxu0 }
 0x2e3   : > { %v7158_v19 = vpop.f32.mrf.mxu0 }
 0x2e4   : > { %v4049_v19 = vrot.slane %v4047_v49, 1 }
 0x2e5   : > { %v8866_v23 = vpop.f32.mrf.mxu0  ;;  %7352 = vmatmul.mubr.msk.bf16.gmra.mxu0 %vm474_vm2, %v4757_v39  ;;  %v4052_v39 = vrot.slane %v4050_v3, 2 }
 0x2e6   : > { %7194 = vmatmul.mubr.msk.bf16.gmra.mxu1 %vm474_vm2, %v3597_v18  ;;  %7355 = vmatprep.mubr.msk.bf16.mxu0 %vm7819_vm1, %v9566_v1 }
 0x2e7   : > { %7197 = vmatprep.mubr.msk.bf16.mxu1 %vm7819_vm1, %v9566_v1  ;;  %v7161_v26 = vpop.f32.mrf.mxu0 }
 0x2e9   : > { %v8874_v48 = vpop.f32.mrf.mxu0 }
 0x2eb   : > { %v7162_v24 = vpop.f32.mrf.mxu0 }
 0x2ec   : > { %v4053_v24 = vor.u32 %v4052_v39, %v4049_v19  ;;  %v6362_v19 = vld [vmem:[%s9578_s1 + $0x10] sm:$0x3] }
 0x2ed   : > { %v8879_v20 = vpop.f32.mrf.mxu0  ;;  %7356 = vmatmul.mubr.msk.bf16.gmra.mxu0 %vm474_vm2, %v4756_v41  ;;  %v4045_v41 = vsel %vm1355_vm5, %v4035_v29, %v4044_v13 }
 0x2ee   : > { %7198 = vmatmul.mubr.msk.bf16.gmra.mxu1 %vm474_vm2, %v3599_v40  ;;  %v7641_v40 = vld [vmem:[%s7951_s12 + $0x6c] sm:$0xff]   ;;  %v4054_v0 = vsel %vm1355_vm5, %v4044_v13, %v4053_v24 }
 0x2ef   : > { %7201 = vmatprep.mubr.msk.bf16.mxu1 %vm7819_vm1, %v9566_v1  ;;  %v7165_v46 = vpop.f32.mrf.mxu0  ;;  %v4059_v14 = vshll.u32 %v7641_v40, 16  ;;  %v7647_v13 = vld [vmem:[%s7951_s12 + $0x50] sm:$0xff]  }
 0x2f1   : > { %v8885_v25 = vpop.f32.mrf.mxu0  ;;  %v4061_v58 = vrot.slane %v4059_v14, 2  ;;  %v4994_v14 = vsel %vm496_vm0, %v6362_v19, 0 }
 0x2f3   : > { %v7166_v33 = vpop.f32.mrf.mxu0 }
 0x2f4   : > { %v7643_v33 = vld [vmem:[%s7951_s12 + $0x74] ss:$0 sps:$4 sm:$0xff]  }
 0x2f5   : > { %v8888_v47 = vpop.f32.mrf.mxu0  ;;  %v4065_v27 = vshrl.u32 %v7643_v33, 16 }
 0x2f6   : > { %7202 = vmatmul.mubr.msk.bf16.gmra.mxu1 %vm474_vm2, %v3601_v45  ;;  %v4056_v45 = vshrl.u32 %v7641_v40, 16 }
 0x2f7   : > { %7205 = vmatprep.mubr.msk.bf16.mxu1 %vm7819_vm1, %v9566_v1  ;;  %v7169_v31 = vpop.f32.mrf.mxu0  ;;  %v4067_v15 = vrot.slane %v4065_v27, 1 }
 0x2f8   : > { %v4058_v21 = vrot.slane %v4056_v45, 1  ;;  %v4068_v31 = vshll.u32 %v7643_v33, 16 }
 0x2f9   : > { %v8893_v38 = vpop.f32.mrf.mxu0 }
 0x2fa   : > { %v4062_v50 = vor.u32 %v4061_v58, %v4058_v21 }
 0x2fb   : > { %v7170_v60 = vpop.f32.mrf.mxu0 }
 0x2fc   : > { %v4063_v22 = vsel %vm1355_vm5, %v4053_v24, %v4062_v50  ;;  %v4070_v60 = vrot.slane %v4068_v31, 2 }
 0x2fd   : > { %v8900_v51 = vpop.f32.mrf.mxu0 }
 0x2fe   : > { %7206 = vmatmul.mubr.msk.bf16.gmra.mxu1 %vm474_vm2, %v3600_v9  ;;  %v4071_v56 = vor.u32 %v4070_v60, %v4067_v15  ;;  %v7653_v60 = vld [vmem:[%s7951_s12 + $0x68] sm:$0xff]  }
 0x2ff   : > { %7241 = vmatprep.mubr.msk.bf16.mxu1 %vm7819_vm1, %v9566_v1  ;;  %v7173_v34 = vpop.f32.mrf.mxu0 }
 0x300   : > { %v4072_v30 = vsel %vm1355_vm5, %v4062_v50, %v4071_v56 }
 0x301   : > { %v8906_v7 = vpop.f32.mrf.mxu0 }
 0x303   : > { %v7174_v43 = vpop.f32.mrf.mxu0 }
 0x305   : > { %v8911_v18 = vpop.f32.mrf.mxu0 }
 0x306   : > { %7242 = vmatmul.mubr.msk.bf16.vlgmr.msra.gmra.mxu1 %vm474_vm2, %v4027_v55 }
 0x307   : > { %7300 = vmatpush3.bf16.msra.mxu1 %v4517_v32  ;;  %7245 = vmatprep.mubr.msk.bf16.mxu1 %vm7819_vm1, %v9566_v1  ;;  %v7177_v5 = vpop.f32.mrf.mxu0 }
 0x308   : > { %7359 = vmatprep.subr.bf16.mxu1 %v9566_v1  ;;  %v7646_v5 = vld [vmem:[%s7951_s12 + $0x48] sm:$0xfc]  }
 0x309   : > { %v3500_v28 = vpop.f32.mrf.mxu0 }
 0x30b   : > { %v7178_v10 = vpop.f32.mrf.mxu0 }
 0x30c   : > { %v4482_v10 = vrot.slane %v7646_v5, 2 }
 0x30d   : > { %v8919_v57 = vpop.f32.mrf.mxu0 }
 0x30e   : > { %7246 = vmatmul.mubr.msk.bf16.gmra.mxu1 %vm474_vm2, %v4036_v54 }
 0x30f   : > { %7249 = vmatprep.mubr.msk.bf16.mxu1 %vm7819_vm1, %v9566_v1  ;;  %v7213_v9 = vpop.f32.mrf.mxu0 }
 0x310   : > { %v7648_v9 = vld [vmem:[%s7951_s12 + $0x58] sm:$0xff]  }
 0x311   : > { %v8928_v11 = vpop.f32.mrf.mxu0 }
 0x312   : > { %v7077_v4 = vpop.f32.mrf.mxu1 }
 0x313   : > { %2917 = vst [vmem:[%s8921_s20 + $0x8] sm:$0xff] %v7077_v4  ;;  %v7214_v46 = vpop.f32.mrf.mxu0  ;;  %v4483_v4 = vrot.slane %v7647_v13, 2 }
 0x314   : > { %v2821_v26 = vpop.f32.mrf.mxu1 }
 0x315   : > { %2916 = vst [vmem:[%s8921_s20] sm:$0xff] %v2821_v26  ;;  %v8932_v17 = vpop.f32.mrf.mxu0  ;;  %v4484_v26 = vsel %vm1617_vm6, %v4482_v10, %v4483_v4 }
 0x316   : > { %7250 = vmatmul.mubr.msk.bf16.gmra.mxu1 %vm474_vm2, %v4045_v41 }
 0x317   : > { %7253 = vmatprep.mubr.msk.bf16.mxu1 %vm7819_vm1, %v9566_v1  ;;  %v7217_v53 = vpop.f32.mrf.mxu0 }
 0x319   : > { %v8939_v6 = vpop.f32.mrf.mxu0 }
 0x31a   : > { %v7080_v16 = vpop.f32.mrf.mxu1 }
 0x31b   : > { %2919 = vst [vmem:[%s8921_s20 + $0x18] sm:$0xff] %v7080_v16  ;;  %v7218_v36 = vpop.f32.mrf.mxu0  ;;  %v4485_v16 = vrot.slane %v7648_v9, 2 }
 0x31c   : > { %v2831_v12 = vpop.f32.mrf.mxu1 }
 0x31d   : > { %2918 = vst [vmem:[%s8921_s20 + $0x10] sm:$0xff] %v2831_v12  ;;  %v8942_v55 = vpop.f32.mrf.mxu0  ;;  %v4486_v33 = vsel %vm1617_vm6, %v4483_v4, %v4485_v16  ;;  %v7651_v12 = vld [vmem:[%s7951_s12 + $0x60] sm:$0xff]  }
 0x31e   : > { %7254 = vmatmul.mubr.msk.bf16.gmra.mxu1 %vm474_vm2, %v4054_v0  ;;  %v4487_v31 = vrot.slane %v7651_v12, 2 }
 0x31f   : > { %7257 = vmatprep.mubr.msk.bf16.mxu1 %vm7819_vm1, %v9566_v1  ;;  %v7221_v2 = vpop.f32.mrf.mxu0 }
 0x320   : > { %v4488_v15 = vsel %vm1617_vm6, %v4485_v16, %v4487_v31 }
 0x321   : > { %v8949_v32 = vpop.f32.mrf.mxu0 }
 0x322   : > { %v7083_v37 = vpop.f32.mrf.mxu1 }
 0x323   : > { %2921 = vst [vmem:[%s8921_s20 + $0x28] sm:$0xff] %v7083_v37  ;;  %v7222_v34 = vpop.f32.mrf.mxu0 }
 0x324   : > { %v2841_v42 = vpop.f32.mrf.mxu1 }
 0x325   : > { %2920 = vst [vmem:[%s8921_s20 + $0x20] sm:$0xff] %v2841_v42  ;;  %v8952_v61 = vpop.f32.mrf.mxu0 }
 0x326   : > { %7258 = vmatmul.mubr.msk.bf16.gmra.mxu1 %vm474_vm2, %v4063_v22 }
 0x327   : > { %7261 = vmatprep.mubr.msk.bf16.mxu1 %vm7819_vm1, %v9566_v1  ;;  %v7225_v54 = vpop.f32.mrf.mxu0 }
 0x329   : > { %v8959_v59 = vpop.f32.mrf.mxu0 }
 0x32a   : > { %v7086_v29 = vpop.f32.mrf.mxu1 }
 0x32b   : > { %2923 = vst [vmem:[%s8921_s20 + $0x38] sm:$0xff] %v7086_v29  ;;  %v7226_v35 = vpop.f32.mrf.mxu0 }
 0x32c   : > { %v2851_v43 = vpop.f32.mrf.mxu1 }
 0x32d   : > { %2922 = vst [vmem:[%s8921_s20 + $0x30] sm:$0xff] %v2851_v43  ;;  %v8963_v49 = vpop.f32.mrf.mxu0  ;;  %v4489_v43 = vrot.slane %v7653_v60, 2 }
 0x32e   : > { %7262 = vmatmul.mubr.msk.bf16.gmra.mxu1 %vm474_vm2, %v4072_v30 }
 0x32f   : > { %7265 = vmatprep.mubr.msk.bf16.mxu1 %vm7819_vm1, %v9566_v1  ;;  %v7229_v28 = vpop.f32.mrf.mxu0  ;;  %v4490_v13 = vsel %vm1617_vm6, %v4487_v31, %v4489_v43 }
 0x331   : > { %v8970_v41 = vpop.f32.mrf.mxu0 }
 0x332   : > { %v7089_v8 = vpop.f32.mrf.mxu1 }
 0x333   : > { %2925 = vst [vmem:[%s8921_s20 + $0x48] sm:$0xff] %v7089_v8  ;;  %v7230_v39 = vpop.f32.mrf.mxu0 }
 0x334   : > { %v2861_v3 = vpop.f32.mrf.mxu1 }
 0x335   : > { %2924 = vst [vmem:[%s8921_s20 + $0x40] sm:$0xff] %v2861_v3  ;;  %v8977_v24 = vpop.f32.mrf.mxu0  ;;  %v7655_v3 = vld [vmem:[%s7951_s12 + $0x70] sm:$0xff]  }
 0x336   : > { %7266 = vmatmul.mubr.msk.bf16.gmra.mxu1 %vm474_vm2, %v4071_v56  ;;  %v2948_v56 = vld [vmem:[%s8808_s10] sm:$0xf]  ;;  %v4491_v39 = vrot.slane %v7655_v3, 2 }
 0x337   : > { %7301 = vmatprep.mubr.msk.bf16.mxu1 %vm7819_vm1, %v9566_v1  ;;  %v7233_v46 = vpop.f32.mrf.mxu0 }
 0x338   : > { %v7657_v46 = vld [vmem:[%s7951_s12 + $0x78] ss:$0 sps:$4 sm:$0xff]  }
 0x339   : > { %v8985_v0 = vpop.f32.mrf.mxu0  ;;  %v4493_v12 = vrot.slane %v7657_v46, 2 }
 0x33a   : > { %v7092_v40 = vpop.f32.mrf.mxu1 }
 0x33b   : > { %2927 = vst [vmem:[%s8921_s20 + $0x58] sm:$0xff] %v7092_v40  ;;  %v7234_v21 = vpop.f32.mrf.mxu0 }
 0x33c   : > { %v2871_v45 = vpop.f32.mrf.mxu1 }
 0x33d   : > { %2926 = vst [vmem:[%s8921_s20 + $0x50] sm:$0xff] %v2871_v45  ;;  %v8989_v53 = vpop.f32.mrf.mxu0 }
 0x33e   : > { %7302 = vmatmul.mubr.msk.bf16.vlgmr.msra.gmra.mxu1 %vm474_vm2, %v4484_v26 }
 0x33f   : > { %7360 = vmatpush3.bf16.msra.mxu1 %v4994_v14  ;;  %7305 = vmatprep.mubr.msk.bf16.mxu1 %vm7819_vm1, %v9566_v1  ;;  %v7237_v27 = vpop.f32.mrf.mxu0  ;;  %v4492_v14 = vsel %vm1617_vm6, %v4489_v43, %v4491_v39  ;;  %v7660_v43 = vld [vmem:[%s7951_s12 + $0x48] sm:$0xf8]  }
 0x341   : > { %v3922_v36 = vpop.f32.mrf.mxu0 }
 0x342   : > { %v7095_v58 = vpop.f32.mrf.mxu1 }
 0x343   : > { %2929 = vst [vmem:[%s8921_s20 + $0x68] sm:$0xff] %v7095_v58  ;;  %v7238_v37 = vpop.f32.mrf.mxu0 }
 0x344   : > { %v2881_v50 = vpop.f32.mrf.mxu1  ;;  %v4494_v37 = vsel %vm1617_vm6, %v4491_v39, %v4493_v12 }
 0x345   : > { %2928 = vst [vmem:[%s8921_s20 + $0x60] sm:$0xff] %v2881_v50  ;;  %v8998_v42 = vpop.f32.mrf.mxu0 }
 0x346   : > { %7306 = vmatmul.mubr.msk.bf16.gmra.mxu1 %vm474_vm2, %v4486_v33 }
 0x347   : > { %7309 = vmatprep.mubr.msk.bf16.mxu1 %vm7819_vm1, %v9566_v1  ;;  %v7273_v34 = vpop.f32.mrf.mxu0 }
 0x349   : > { %v9006_v54 = vpop.f32.mrf.mxu0 }
 0x34a   : > { %v7098_v22 = vpop.f32.mrf.mxu1 }
 0x34b   : > { %2931 = vst [vmem:[%s8921_s20 + $0x78] sm:$0xff] %v7098_v22  ;;  %v7274_v8 = vpop.f32.mrf.mxu0 }
 0x34c   : > { %v2891_v2 = vpop.f32.mrf.mxu1 }
 0x34d   : > { %2930 = vst [vmem:[%s8921_s20 + $0x70] sm:$0xff] %v2891_v2  ;;  %v9012_v28 = vpop.f32.mrf.mxu0 }
 0x34e   : > { %v3055_v29 = vpop.f32.mrf.mxu1  ;;  %7310 = vmatmul.mubr.msk.bf16.gmra.mxu1 %vm474_vm2, %v4488_v15 }
 0x34f   : > { %v3061_v30 = vadd.f32 %v3055_v29, %v2948_v56  ;;  %7313 = vmatprep.mubr.msk.bf16.mxu1 %vm7819_vm1, %v9566_v1  ;;  %v7277_v4 = vpop.f32.mrf.mxu0 }
 0x350   : > { %v7117_v35 = vpop.f32.mrf.mxu1 }
 0x351   : > { %3063 = vst.msk [vmem:[%s8808_s10] sm:$0xf] %vm392_vm12, %v3061_v30  ;;  %v9019_v40 = vpop.f32.mrf.mxu0  ;;  %v7661_v35 = vld [vmem:[%s7951_s12 + $0x50] sm:$0xff]  }
 0x352   : > { %v3058_v5 = vpop.f32.mrf.mxu1  ;;  %v4960_v4 = vrot.slane %v7661_v35, 3  ;;  %v7663_v35 = vld [vmem:[%s7951_s12 + $0x60] sm:$0xff]  }
 0x353   : > { %v7278_v9 = vpop.f32.mrf.mxu0 }
 0x354   : > { %v7118_v10 = vpop.f32.mrf.mxu1 }
 0x355   : > { %v9025_v16 = vpop.f32.mrf.mxu0  ;;  %v4959_v10 = vrot.slane %v7660_v43, 3 }
 0x356   : > { %v9014_v19 = vpop.f32.mrf.mxu1  ;;  %7314 = vmatmul.mubr.msk.bf16.gmra.mxu1 %vm474_vm2, %v4490_v13 }
 0x357   : > { %7317 = vmatprep.mubr.msk.bf16.mxu1 %vm7819_vm1, %v9566_v1  ;;  %v7281_v58 = vpop.f32.mrf.mxu0  ;;  %v4961_v46 = vsel %vm2310_vm8, %v4959_v10, %v4960_v4 }
 0x358   : > { %v7123_v26 = vpop.f32.mrf.mxu1 }
 0x359   : > { %v9032_v50 = vpop.f32.mrf.mxu0 }
 0x35a   : > { %v9021_v45 = vpop.f32.mrf.mxu1  ;;  %9580 = vst [vmem:[#allocation10_spill] sm:$0xff] %v9032_v50 }
 0x35b   : > { %v7282_v31 = vpop.f32.mrf.mxu0 }
 0x35c   : > { %v7124_v21 = vpop.f32.mrf.mxu1 }
 0x35d   : > { %v9037_v22 = vpop.f32.mrf.mxu0  ;;  %v7662_v21 = vld [vmem:[%s7951_s12 + $0x58] sm:$0xff]  }
 0x35e   : > { %v9027_v33 = vpop.f32.mrf.mxu1  ;;  %7318 = vmatmul.mubr.msk.bf16.gmra.mxu1 %vm474_vm2, %v4492_v14  ;;  %9581 = vst [vmem:[#allocation11_spill] sm:$0xff] %v9037_v22  ;;  %v7665_v22 = vld [vmem:[%s7951_s12 + $0x70] sm:$0xff]  }
 0x35f   : > { %7321 = vmatprep.mubr.msk.bf16.mxu1 %vm7819_vm1, %v9566_v1  ;;  %v7285_v60 = vpop.f32.mrf.mxu0 }
 0x360   : > { %v7127_v27 = vpop.f32.mrf.mxu1 }
 0x361   : > { %v9044_v56 = vpop.f32.mrf.mxu0 }
 0x362   : > { %v9034_v36 = vpop.f32.mrf.mxu1  ;;  %9582 = vst [vmem:[#allocation12_spill] sm:$0xff] %v9044_v56 }
 0x363   : > { %v7286_v29 = vpop.f32.mrf.mxu0 }
 0x364   : > { %v7128_v15 = vpop.f32.mrf.mxu1 }
 0x365   : > { %v9050_v8 = vpop.f32.mrf.mxu0 }
 0x366   : > { %v9039_v2 = vpop.f32.mrf.mxu1  ;;  %7322 = vmatmul.mubr.msk.bf16.gmra.mxu1 %vm474_vm2, %v4494_v37  ;;  %9583 = vst [vmem:[#allocation13_spill] sm:$0xff] %v9050_v8  ;;  %v4962_v37 = vrot.slane %v7662_v21, 3 }
 0x367   : > { %7325 = vmatprep.mubr.msk.bf16.mxu1 %vm7819_vm1, %v9566_v1  ;;  %v7289_v13 = vpop.f32.mrf.mxu0 }
 0x368   : > { %v7131_v34 = vpop.f32.mrf.mxu1  ;;  %v4963_v43 = vsel %vm2310_vm8, %v4960_v4, %v4962_v37 }
 0x369   : > { %v9057_v39 = vpop.f32.mrf.mxu0 }
 0x36a   : > { %v9046_v30 = vpop.f32.mrf.mxu1  ;;  %9584 = vst [vmem:[#allocation14_spill] sm:$0xff] %v9057_v39 }
 0x36b   : > { %v7290_v9 = vpop.f32.mrf.mxu0 }
 0x36c   : > { %v7132_v5 = vpop.f32.mrf.mxu1  ;;  %v4964_v9 = vrot.slane %v7663_v35, 3  ;;  %v9587_v35 = vmov 0.0  }
 0x36d   : > { %v9063_v58 = vpop.f32.mrf.mxu0 }
 0x36e   : > { %v9052_v3 = vpop.f32.mrf.mxu1  ;;  %7326 = vmatmul.mubr.msk.bf16.gmra.mxu1 %vm474_vm2, %v4493_v12  ;;  %9585 = vst [vmem:[#allocation15_spill] sm:$0xff] %v9063_v58  ;;  %v4965_v4 = vsel %vm2310_vm8, %v4962_v37, %v4964_v9 }
 0x36f   : > { %7361 = vmatprep.mubr.msk.bf16.mxu1 %vm7819_vm1, %v9566_v1  ;;  %v7293_v31 = vpop.f32.mrf.mxu0 }
 0x370   : > { %v7135_v26 = vpop.f32.mrf.mxu1 }
 0x371   : > { %v9070_v15 = vpop.f32.mrf.mxu0 }
 0x372   : > { %v9059_v14 = vpop.f32.mrf.mxu1  ;;  %9586 = vst [vmem:[#allocation16_spill] sm:$0xff] %v9070_v15  ;;  %v3089_v15 = vld [vmem:[#allocation2 + $0x40] sm:$0xf] }
 0x373   : > { %v7294_v34 = vpop.f32.mrf.mxu0 }
 0x374   : > { %v7136_v27 = vpop.f32.mrf.mxu1 }
 0x375   : > { %v9076_v5 = vpop.f32.mrf.mxu0 }
 0x376   : > { %v9065_v12 = vpop.f32.mrf.mxu1  ;;  %7362 = vmatmul.mubr.msk.bf16.vlgmr.msra.gmra.mxu1 %vm474_vm2, %v4961_v46 }
 0x377   : > { %7365 = vmatprep.mubr.msk.bf16.mxu1 %vm7819_vm1, %v9566_v1  ;;  %v7297_v10 = vpop.f32.mrf.mxu0 }
 0x378   : > { %v7139_v60 = vpop.f32.mrf.mxu1  ;;  %v3077_v10 = vld [vmem:[#allocation2 + $0x30] sm:$0xff] }
 0x379   : > { %v4393_v46 = vpop.f32.mrf.mxu0  ;;  %v7664_v60 = vld [vmem:[%s7951_s12 + $0x68] sm:$0xff]   ;;  %v3250_v37 = vadd.f32 %v9014_v19, %v3077_v10  ;;  %v4968_v19 = vrot.slane %v7665_v22, 3  ;;  %v3080_v10 = vld [vmem:[#allocation2 + $0x18] sm:$0xff] }
 0x37a   : > { %v9072_v29 = vpop.f32.mrf.mxu1  ;;  %v4966_v46 = vrot.slane %v7664_v60, 3  ;;  %v3079_v60 = vld [vmem:[#allocation2 + $0x58] sm:$0xff] }
 0x37b   : > { %v7298_v27 = vpop.f32.mrf.mxu0 }
 0x37c   : > { %v7140_v13 = vpop.f32.mrf.mxu1  ;;  %v4967_v56 = vsel %vm2310_vm8, %v4964_v9, %v4966_v46 }
 0x37d   : > { %v9087_v13 = vpop.f32.mrf.mxu0 }
 0x37e   : > { %v9078_v26 = vpop.f32.mrf.mxu1  ;;  %7366 = vmatmul.mubr.msk.bf16.gmra.mxu1 %vm474_vm2, %v4963_v43 }
 0x37f   : > { %7369 = vmatprep.mubr.msk.bf16.mxu1 %vm7819_vm1, %v9566_v1  ;;  %v7333_v43 = vpop.f32.mrf.mxu0 }
 0x380   : > { %v7143_v21 = vpop.f32.mrf.mxu1 }
 0x381   : > { %v9092_v27 = vpop.f32.mrf.mxu0 }
 0x382   : > { %v9083_v31 = vpop.f32.mrf.mxu1 }
 0x383   : > { %v7334_v8 = vpop.f32.mrf.mxu0 }
 0x384   : > { %v7144_v34 = vpop.f32.mrf.mxu1 }
 0x385   : > { %v3078_v34 = vld [vmem:[#allocation2] sm:$0xff] }
 0x386   : > { %v3244_v58 = vpop.f32.mrf.mxu1  ;;  %7370 = vmatmul.mubr.msk.bf16.gmra.mxu1 %vm474_vm2, %v4965_v4  ;;  %v9097_v4 = vpop.f32.mrf.mxu0 }
 0x387   : > { %v3262_v1 = vadd.f32 %v3244_v58, %v3089_v15  ;;  %7373 = vmatprep.mubr.msk.bf16.mxu1 %vm7819_vm1, %v9587_v35  ;;  %v3251_v58 = vadd.f32 %v9021_v45, %v3078_v34  ;;  %v3503_v15 = vadd.f32 %v8839_v52, %v3250_v37  ;;  %v3252_v45 = vadd.f32 %v9027_v33, %v3079_v60  ;;  %v3081_v60 = vld [vmem:[#allocation2 + $0x50] sm:$0xff] }
 0x388   : > { %v7147_v21 = vpop.f32.mrf.mxu1 }
 0x389   : > { %3275 = vst [vmem:[#allocation2 + $0x40] sm:$0xf] %v3262_v1  ;;  %v7337_v21 = vpop.f32.mrf.mxu0  ;;  %v3504_v52 = vadd.f32 %v8847_v44, %v3251_v58  ;;  %v3505_v33 = vadd.f32 %v8853_v63, %v3252_v45 }
 0x38a   : > { %v3247_v39 = vpop.f32.mrf.mxu1 }
 0x38b   : > { %v9106_v39 = vpop.f32.mrf.mxu0 }
 0x38c   : > { %v7148_v50 = vpop.f32.mrf.mxu1 }
 0x38d   : > { %v7338_v37 = vpop.f32.mrf.mxu0 }
 0x38e   : > { %v3660_v43 = vpop.f32.mrf.mxu1  ;;  %7374 = vmatmul.mubr.msk.bf16.gmra.mxu1 %vm474_vm2, %v4967_v56 }
 0x38f   : > { %v9102_v1 = vadd.f32 %v3660_v43, %v3503_v15  ;;  %7377 = vmatprep.mubr.msk.bf16.mxu1 %vm7819_vm1, %v9587_v35  ;;  %v4969_v15 = vsel %vm2310_vm8, %v4966_v46, %v4968_v19  ;;  %v7666_v43 = vld [vmem:[%s7951_s12 + $0x78] sm:$0x1f]   ;;  %v9115_v21 = vpop.f32.mrf.mxu0 }
 0x390   : > { %v3288_v8 = vld [vmem:[#allocation2 + $0x40] sm:$0xf]  ;;  %v7183_v50 = vpop.f32.mrf.mxu1 }
 0x391   : > { %v3515_v9 = vadd.f32 %v8911_v18, %v3288_v8  ;;  %v3253_v50 = vadd.f32 %v9034_v36, %v3080_v10  ;;  %v7341_v18 = vpop.f32.mrf.mxu0  ;;  %v4970_v8 = vrot.slane %v7666_v43, 3  ;;  %v3082_v10 = vld [vmem:[#allocation2 + $0x20] sm:$0xff] }
 0x392   : > { %v3663_v56 = vpop.f32.mrf.mxu1 }
 0x393   : > { %3528 = vst [vmem:[#allocation2 + $0x40] sm:$0xf] %v3515_v9  ;;  %v9111_v34 = vadd.f32 %v3663_v56, %v3504_v52  ;;  %v9124_v52 = vpop.f32.mrf.mxu0  ;;  %v3254_v9 = vadd.f32 %v9039_v2, %v3081_v60  ;;  %v3506_v36 = vadd.f32 %v8861_v62, %v3253_v50  ;;  %v4971_v37 = vsel %vm2310_vm8, %v4968_v19, %v4970_v8 }
 0x394   : > { %v7184_v22 = vpop.f32.mrf.mxu1 }
 0x395   : > { %v7342_v45 = vpop.f32.mrf.mxu0  ;;  %v3507_v43 = vadd.f32 %v8866_v23, %v3254_v9 }
 0x396   : > { %v3668_v44 = vpop.f32.mrf.mxu1  ;;  %7378 = vmatmul.mubr.msk.bf16.gmra.mxu1 %vm474_vm2, %v4969_v15 }
 0x397   : > { %v9120_v58 = vadd.f32 %v3668_v44, %v3505_v33  ;;  %7381 = vmatprep.mubr.msk.bf16.mxu1 %vm7819_vm1, %v9587_v35  ;;  %v9131_v22 = vpop.f32.mrf.mxu0  ;;  %v3255_v33 = vadd.f32 %v9046_v30, %v3082_v10  ;;  %v3083_v44 = vld [vmem:[#allocation2 + $0x8] sm:$0xff]  ;;  %v3084_v30 = vld [vmem:[#allocation2 + $0x38] sm:$0xff] }
 0x398   : > { %v7187_v46 = vpop.f32.mrf.mxu1  ;;  %v3256_v19 = vadd.f32 %v9052_v3, %v3083_v44  ;;  %v3257_v45 = vadd.f32 %v9059_v14, %v3084_v30 }
 0x399   : > { %v7345_v2 = vpop.f32.mrf.mxu0  ;;  %v3508_v46 = vadd.f32 %v8874_v48, %v3255_v33 }
 0x39a   : > { %v3671_v63 = vpop.f32.mrf.mxu1  ;;  %v3510_v2 = vadd.f32 %v8885_v25, %v3257_v45 }
 0x39b   : > { %v9128_v56 = vadd.f32 %v3671_v63, %v3506_v36  ;;  %v9140_v60 = vpop.f32.mrf.mxu0 }
 0x39c   : > { %v7188_v15 = vpop.f32.mrf.mxu1 }
 0x39d   : > { %v7346_v23 = vpop.f32.mrf.mxu0  ;;  %v3085_v15 = vld [vmem:[#allocation2 + $0x28] sm:$0xff] }
 0x39e   : > { %v3676_v18 = vpop.f32.mrf.mxu1  ;;  %7382 = vmatmul.mubr.msk.bf16.gmra.mxu1 %vm474_vm2, %v4971_v37  ;;  %v3509_v37 = vadd.f32 %v8879_v20, %v3256_v19  ;;  %v3258_v44 = vadd.f32 %v9065_v12, %v3085_v15  ;;  %v3087_v23 = vld [vmem:[#allocation2 + $0x10] sm:$0xff] }
 0x39f   : > { %v9136_v62 = vadd.f32 %v3676_v18, %v3507_v43  ;;  %7385 = vmatprep.mubr.msk.bf16.mxu1 %vm7819_vm1, %v9587_v35  ;;  %v9146_v63 = vpop.f32.mrf.mxu0  ;;  %v3260_v25 = vadd.f32 %v9078_v26, %v3087_v23 }
 0x3a0   : > { %v7191_v50 = vpop.f32.mrf.mxu1  ;;  %v3511_v30 = vadd.f32 %v8888_v47, %v3258_v44 }
 0x3a1   : > { %v7349_v18 = vpop.f32.mrf.mxu0  ;;  %v3086_v50 = vld [vmem:[#allocation2 + $0x48] sm:$0xff]  ;;  %v3513_v47 = vadd.f32 %v8900_v51, %v3260_v25  ;;  %v3925_v25 = vadd.f32 %v8919_v57, %v9102_v1 }
 0x3a2   : > { %v3679_v36 = vpop.f32.mrf.mxu1  ;;  %v3088_v18 = vld [vmem:[#allocation2 + $0x60] sm:$0xff] }
 0x3a3   : > { %v9144_v9 = vadd.f32 %v3679_v36, %v3508_v46  ;;  %v9153_v33 = vpop.f32.mrf.mxu0 }
 0x3a4   : > { %v7192_v10 = vpop.f32.mrf.mxu1 }
 0x3a5   : > { %v7350_v36 = vpop.f32.mrf.mxu0 }
 0x3a6   : > { %v3684_v43 = vpop.f32.mrf.mxu1  ;;  %7386 = vmatmul.mubr.msk.bf16.gmra.mxu1 %vm474_vm2, %v4970_v8  ;;  %v3259_v8 = vadd.f32 %v9072_v29, %v3086_v50  ;;  %v3261_v29 = vadd.f32 %v9083_v31, %v3088_v18 }
 0x3a7   : > { %v9151_v3 = vadd.f32 %v3684_v43, %v3509_v37  ;;  %v9159_v19 = vpop.f32.mrf.mxu0 }
 0x3a8   : > { %v7195_v48 = vpop.f32.mrf.mxu1  ;;  %v3512_v45 = vadd.f32 %v8893_v38, %v3259_v8 }
 0x3a9   : > { %v7353_v37 = vpop.f32.mrf.mxu0 }
 0x3aa   : > { %v3687_v46 = vpop.f32.mrf.mxu1 }
 0x3ab   : > { %v9157_v14 = vadd.f32 %v3687_v46, %v3510_v2  ;;  %v9165_v15 = vpop.f32.mrf.mxu0 }
 0x3ac   : > { %v7196_v20 = vpop.f32.mrf.mxu1 }
 0x3ad   : > { %v7354_v2 = vpop.f32.mrf.mxu0 }
 0x3ae   : > { %v3692_v10 = vpop.f32.mrf.mxu1 }
 0x3af   : > { %v9163_v43 = vadd.f32 %v3692_v10, %v3511_v30  ;;  %v3514_v30 = vadd.f32 %v8906_v7, %v3261_v29  ;;  %v9172_v10 = vpop.f32.mrf.mxu0 }
 0x3b0   : > { %v7199_v12 = vpop.f32.mrf.mxu1 }
 0x3b1   : > { %v7357_v23 = vpop.f32.mrf.mxu0  ;;  %v3541_v12 = vld [vmem:[#allocation2 + $0x40] sm:$0xf] }
 0x3b2   : > { %v3695_v48 = vpop.f32.mrf.mxu1 }
 0x3b3   : > { %v3723_v46 = vadd.f32 %v3695_v48, %v3512_v45  ;;  %v4867_v8 = vpop.f32.mrf.mxu0 }
 0x3b4   : > { %v7200_v36 = vpop.f32.mrf.mxu1 }
 0x3b5   : > { %v7358_v48 = vpop.f32.mrf.mxu0 }
 0x3b6   : > { %v3700_v44 = vpop.f32.mrf.mxu1 }
 0x3b7   : > { %v3724_v50 = vadd.f32 %v3700_v44, %v3513_v47  ;;  %v3926_v44 = vadd.f32 %v8928_v11, %v9111_v34 }
 0x3b8   : > { %v7203_v20 = vpop.f32.mrf.mxu1 }
 0x3ba   : > { %v3703_v37 = vpop.f32.mrf.mxu1 }
 0x3bb   : > { %v3725_v26 = vadd.f32 %v3703_v37, %v3514_v30 }
 0x3bc   : > { %v7204_v38 = vpop.f32.mrf.mxu1 }
 0x3bd   : > { %v3927_v38 = vadd.f32 %v8932_v17, %v9120_v58  ;;  %v3930_v17 = vadd.f32 %v8949_v32, %v9144_v9  ;;  %v3933_v32 = vadd.f32 %v8963_v49, %v9163_v43 }
 0x3be   : > { %v3708_v2 = vpop.f32.mrf.mxu1 }
 0x3bf   : > { %v3726_v45 = vadd.f32 %v3708_v2, %v3541_v12  ;;  %v3928_v12 = vadd.f32 %v8939_v6, %v9128_v56  ;;  %v3931_v6 = vadd.f32 %v8952_v61, %v9151_v3  ;;  %v3934_v61 = vadd.f32 %v8970_v41, %v3723_v46 }
 0x3c0   : > { %v7207_v36 = vpop.f32.mrf.mxu1 }
 0x3c1   : > { %3739 = vst [vmem:[#allocation2 + $0x40] sm:$0xf] %v3726_v45 }
 0x3c2   : > { %v3711_v31 = vpop.f32.mrf.mxu1 }
 0x3c4   : > { %v7208_v51 = vpop.f32.mrf.mxu1 }
 0x3c6   : > { %v4131_v18 = vpop.f32.mrf.mxu1 }
 0x3c7   : > { %v9176_v7 = vadd.f32 %v4131_v18, %v3925_v25 }
 0x3c8   : > { %v3752_v29 = vld [vmem:[#allocation2 + $0x40] sm:$0xf]  ;;  %v7243_v47 = vpop.f32.mrf.mxu1 }
 0x3c9   : > { %v3937_v20 = vadd.f32 %v8989_v53, %v3752_v29  ;;  %v3929_v53 = vadd.f32 %v8942_v55, %v9136_v62  ;;  %v3932_v55 = vadd.f32 %v8959_v59, %v9157_v14 }
 0x3ca   : > { %v4134_v30 = vpop.f32.mrf.mxu1 }
 0x3cb   : > { %3950 = vst [vmem:[#allocation2 + $0x40] sm:$0xf] %v3937_v20  ;;  %v9181_v37 = vadd.f32 %v4134_v30, %v3926_v44 }
 0x3cc   : > { %v7244_v23 = vpop.f32.mrf.mxu1 }
 0x3ce   : > { %v4139_v8 = vpop.f32.mrf.mxu1 }
 0x3cf   : > { %v9185_v57 = vadd.f32 %v4139_v8, %v3927_v38  ;;  %v3935_v38 = vadd.f32 %v8977_v24, %v3724_v50 }
 0x3d0   : > { %v7247_v1 = vpop.f32.mrf.mxu1 }
 0x3d1   : > { %v3936_v1 = vadd.f32 %v8985_v0, %v3725_v26 }
 0x3d2   : > { %v4142_v2 = vpop.f32.mrf.mxu1 }
 0x3d3   : > { %v9189_v45 = vadd.f32 %v4142_v2, %v3928_v12  ;;  %v3963_v2 = vld [vmem:[#allocation2 + $0x40] sm:$0xf] }
 0x3d4   : > { %v7248_v11 = vpop.f32.mrf.mxu1 }
 0x3d6   : > { %v4147_v34 = vpop.f32.mrf.mxu1 }
 0x3d7   : > { %v9193_v48 = vadd.f32 %v4147_v34, %v3929_v53 }
 0x3d8   : > { %v7251_v36 = vpop.f32.mrf.mxu1 }
 0x3da   : > { %v4150_v58 = vpop.f32.mrf.mxu1 }
 0x3db   : > { %v9197_v31 = vadd.f32 %v4150_v58, %v3930_v17 }
 0x3dc   : > { %v7252_v51 = vpop.f32.mrf.mxu1 }
 0x3de   : > { %v4155_v56 = vpop.f32.mrf.mxu1 }
 0x3df   : > { %v9201_v25 = vadd.f32 %v4155_v56, %v3931_v6 }
 0x3e0   : > { %v7255_v18 = vpop.f32.mrf.mxu1 }
 0x3e1   : > { %v9224_v18 = vld [vmem:[%s7951_s12 + $0x40] sm:$0xff]  }
 0x3e2   : > { %v4158_v62 = vpop.f32.mrf.mxu1  ;;  %9588 = vst [vmem:[#allocation17_spill] sm:$0xff] %v9224_v18  ;;  %5645 = vxpose.xlu1.c.b16.start [1/8] (narrow) %v9224_v18, 16 }
 0x3e3   : > { %v9205_v29 = vadd.f32 %v4158_v62, %v3932_v55  ;;  %v9230_v62 = vld [vmem:[%s7951_s12 + $0x48] sm:$0xff]  }
 0x3e4   : > { %v7256_v47 = vpop.f32.mrf.mxu1  ;;  %9589 = vst [vmem:[#allocation18_spill] sm:$0xff] %v9230_v62 }
 0x3e6   : > { %v4163_v9 = vpop.f32.mrf.mxu1  ;;  %5646 = vxpose.xlu1.c.b16.cont [2/8] (narrow) %v9230_v62, 16 }
 0x3e7   : > { %v9209_v44 = vadd.f32 %v4163_v9, %v3933_v32  ;;  %v9236_v32 = vld [vmem:[%s7951_s12 + $0x50] sm:$0xff]  }
 0x3e8   : > { %v7259_v20 = vpop.f32.mrf.mxu1  ;;  %9590 = vst [vmem:[#allocation19_spill] sm:$0xff] %v9236_v32 }
 0x3ea   : > { %v4166_v3 = vpop.f32.mrf.mxu1  ;;  %5647 = vxpose.xlu1.c.b16.cont [3/8] (narrow) %v9236_v32, 16  ;;  %v4398_v32 = vadd.f32 %v9012_v28, %v9185_v57 }
 0x3eb   : > { %v9212_v30 = vadd.f32 %v4166_v3, %v3934_v61  ;;  %v9242_v61 = vld [vmem:[%s7951_s12 + $0x58] sm:$0xff]  }
 0x3ec   : > { %v7260_v23 = vpop.f32.mrf.mxu1  ;;  %9591 = vst [vmem:[#allocation20_spill] sm:$0xff] %v9242_v61 }
 0x3ee   : > { %v4171_v59 = vpop.f32.mrf.mxu1  ;;  %5648 = vxpose.xlu1.c.b16.cont [4/8] (narrow) %v9242_v61, 16 }
 0x3ef   : > { %v9215_v14 = vadd.f32 %v4171_v59, %v3935_v38  ;;  %v9248_v38 = vld [vmem:[%s7951_s12 + $0x60] sm:$0xff]  }
 0x3f0   : > { %v7263_v8 = vpop.f32.mrf.mxu1 }
 0x3f2   : > { %v4174_v12 = vpop.f32.mrf.mxu1  ;;  %5649 = vxpose.xlu1.c.b16.cont [5/8] (narrow) %v9248_v38, 16 }
 0x3f3   : > { %v9218_v49 = vadd.f32 %v4174_v12, %v3936_v1  ;;  %v9254_v1 = vld [vmem:[%s7951_s12 + $0x68] sm:$0xff]  }
 0x3f4   : > { %v7264_v43 = vpop.f32.mrf.mxu1 }
 0x3f6   : > { %v4179_v11 = vpop.f32.mrf.mxu1  ;;  %5650 = vxpose.xlu1.c.b16.cont [6/8] (narrow) %v9254_v1, 16 }
 0x3f7   : > { %v4197_v53 = vadd.f32 %v4179_v11, %v3963_v2  ;;  %v9260_v2 = vld [vmem:[%s7951_s12 + $0x70] sm:$0xff]  }
 0x3f8   : > { %v7267_v41 = vpop.f32.mrf.mxu1 }
 0x3f9   : > { %4210 = vst [vmem:[#allocation2 + $0x40] sm:$0xf] %v4197_v53  ;;  %v9266_v41 = vld [vmem:[%s7951_s12 + $0x78] sm:$0x1f]   ;;  %s6460_s12 = sshll.u32 %s7808_s27, 4 }
 0x3fa   : > { %v4182_v46 = vpop.f32.mrf.mxu1  ;;  %5651 = vxpose.xlu1.c.b16.cont [7/8] (narrow) %v9260_v2, 16  ;;  %s5742_s15 = scalar_lea.hbm %s9563_s5, %s6460_s12 }
 0x3fb   : > { %v5207_v46 = vpop.permute.xlu0 %5206 }
 0x3fc   : > { %v7268_v34 = vpop.f32.mrf.mxu1 }
 0x3fe   : > { %v4553_v24 = vpop.f32.mrf.mxu1  ;;  %5652 = vxpose.xlu1.c.b16.end [8/8] (narrow) %v9266_v41, 16 }
 0x400   : > { %v4223_v50 = vld [vmem:[#allocation2 + $0x40] sm:$0xf]  ;;  %v7303_v36 = vpop.f32.mrf.mxu1 }
 0x401   : > { %v4408_v17 = vadd.f32 %v9076_v5, %v4223_v50 }
 0x402   : > { %v4556_v0 = vpop.f32.mrf.mxu1 }
 0x403   : > { %4421 = vst [vmem:[#allocation2 + $0x40] sm:$0xf] %v4408_v17  ;;  %v5212_v17 = vpop.permute.xlu0 %5211 }
 0x404   : > { %v7304_v26 = vpop.f32.mrf.mxu1 }
 0x406   : > { %v4561_v58 = vpop.f32.mrf.mxu1 }
 0x408   : > { %v7307_v51 = vpop.f32.mrf.mxu1 }
 0x40a   : > { %v9221_v6 = vpop.f32.mrf.mxu1  ;;  %v4434_v26 = vld [vmem:[#allocation2 + $0x40] sm:$0xf] }
 0x40c   : > { %v7308_v56 = vpop.f32.mrf.mxu1 }
 0x40d   : > { %v4396_v56 = vadd.f32 %v8998_v42, %v9176_v7 }
 0x40e   : > { %v9226_v55 = vpop.f32.mrf.mxu1 }
 0x410   : > { %v7311_v5 = vpop.f32.mrf.mxu1 }
 0x412   : > { %v9232_v47 = vpop.f32.mrf.mxu1 }
 0x414   : > { %v7312_v9 = vpop.f32.mrf.mxu1 }
 0x416   : > { %v9238_v20 = vpop.f32.mrf.mxu1 }
 0x418   : > { %v7315_v3 = vpop.f32.mrf.mxu1 }
 0x419   : > { %v4607_v3 = vadd.f32 %v4553_v24, %v4396_v56 }
 0x41a   : > { %v9244_v23 = vpop.f32.mrf.mxu1 }
 0x41b   : > { %v4870_v62 = vadd.f32 %v9087_v13, %v4607_v3  ;;  %v4399_v13 = vadd.f32 %v9019_v40, %v9189_v45 }
 0x41c   : > { %v7316_v59 = vpop.f32.mrf.mxu1 }
 0x41d   : > { %v4397_v59 = vadd.f32 %v9006_v54, %v9181_v37  ;;  %v4610_v57 = vadd.f32 %v9221_v6, %v4399_v13 }
 0x41e   : > { %v9250_v8 = vpop.f32.mrf.mxu1 }
 0x41f   : > { %v4873_v56 = vadd.f32 %v9106_v39, %v4610_v57 }
 0x420   : > { %v7319_v12 = vpop.f32.mrf.mxu1 }
 0x422   : > { %v9256_v43 = vpop.f32.mrf.mxu1 }
 0x424   : > { %v7320_v11 = vpop.f32.mrf.mxu1 }
 0x425   : > { %v5217_v11 = vpop.permute.xlu0 %5216 }
 0x426   : > { %v9262_v53 = vpop.f32.mrf.mxu1 }
 0x428   : > { %v7323_v34 = vpop.f32.mrf.mxu1 }
 0x429   : > { %v4608_v34 = vadd.f32 %v4556_v0, %v4397_v59 }
 0x42a   : > { %v9268_v50 = vpop.f32.mrf.mxu1 }
 0x42b   : > { %v4871_v42 = vadd.f32 %v9092_v27, %v4608_v34 }
 0x42c   : > { %v7324_v36 = vpop.f32.mrf.mxu1 }
 0x42e   : > { %v4601_v51 = vpop.f32.mrf.mxu1 }
 0x42f   : > { %v4619_v5 = vadd.f32 %v4601_v51, %v4434_v26  ;;  %v4609_v26 = vadd.f32 %v4561_v58, %v4398_v32  ;;  %v4400_v32 = vadd.f32 %v9025_v16, %v9193_v48 }
 0x430   : > { %v7327_v9 = vpop.f32.mrf.mxu1 }
 0x431   : > { %4632 = vst [vmem:[#allocation2 + $0x40] sm:$0xf] %v4619_v5  ;;  %v4872_v58 = vadd.f32 %v9097_v4, %v4609_v26 }
 0x432   : > { %v4604_v12 = vpop.f32.mrf.mxu1 }
 0x434   : > { %v7328_v18 = vpop.f32.mrf.mxu1 }
 0x435   : > { %v5222_v18 = vpop.permute.xlu0 %5221 }
 0x436   : > { %v5030_v36 = vpop.f32.mrf.mxu1 }
 0x437   : > { %v5084_v61 = vadd.f32 %v5030_v36, %v4870_v62 }
 0x438   : > { %v4645_v7 = vld [vmem:[#allocation2 + $0x40] sm:$0xf]  ;;  %v7363_v24 = vpop.f32.mrf.mxu1 }
 0x439   : > { %5097 = vst [vmem:[#allocation2 + $0x30] sm:$0xff] %v5084_v61  ;;  %v4882_v54 = vadd.f32 %v9172_v10, %v4645_v7  ;;  %v9280_v37 = vmul.f32 %v5207_v46, %v5084_v61  ;;  %v6480_v0 = vpack.c.bf16 %v5084_v61, %v5084_v61  ;;  %v5227_v40 = vpop.permute.xlu0 %5226  ;;  %v4611_v46 = vadd.f32 %v9226_v55, %v4400_v32 }
 0x43a   : > { %v5033_v51 = vpop.f32.mrf.mxu1 }
 0x43b   : > { %4895 = vst [vmem:[#allocation2 + $0x40] sm:$0xf] %v4882_v54  ;;  %v5085_v28 = vadd.f32 %v5033_v51, %v4871_v42  ;;  %5320 = vxpose.xlu0.b32.start [1/13] (short) %v9280_v37, 128  ;;  %6390 = vst [vmem:[%s8508_s23 + $0x34] sm:$0xf] %v6480_v0  ;;  %v4874_v59 = vadd.f32 %v9115_v21, %v4611_v46 }
 0x43c   : > { %v7364_v27 = vpop.f32.mrf.mxu1 }
 0x43d   : > { %5098 = vst [vmem:[#allocation2] sm:$0xff] %v5085_v28  ;;  %v9288_v10 = vmul.f32 %v5212_v17, %v5085_v28  ;;  %v9592_v17 = vld [vmem:[#allocation10_spill] sm:$0xff]  ;;  %v5232_v12 = vpop.permute.xlu0 %5231 }
 0x43e   : > { %v5038_v62 = vpop.f32.mrf.mxu1  ;;  %v4401_v5 = vadd.f32 %v9592_v17, %v9197_v31  ;;  %v9593_v31 = vld [vmem:[#allocation11_spill] sm:$0xff] }
 0x43f   : > { %v5086_v61 = vadd.f32 %v5038_v62, %v4872_v58  ;;  %5321 = vxpose.xlu0.b32.cont [2/13] (short) %v9288_v10, 128  ;;  %v5283_v39 = vadd.f32 %v9288_v10, %v9280_v37  ;;  %v4402_v34 = vadd.f32 %v9593_v31, %v9201_v25  ;;  %v9595_v62 = vld [vmem:[#allocation13_spill] sm:$0xff] }
 0x440   : > { %v7367_v45 = vpop.f32.mrf.mxu1  ;;  %v4612_v16 = vadd.f32 %v9232_v47, %v4401_v5  ;;  %v4404_v32 = vadd.f32 %v9595_v62, %v9209_v44  ;;  %v9596_v44 = vld [vmem:[#allocation14_spill] sm:$0xff] }
 0x441   : > { %5099 = vst [vmem:[#allocation2 + $0x58] sm:$0xff] %v5086_v61  ;;  %v9295_v6 = vmul.f32 %v5217_v11, %v5086_v61  ;;  %v6527_v4 = vpack.c.bf16 %v5086_v61, %v5085_v28  ;;  %v4613_v7 = vadd.f32 %v9238_v20, %v4402_v34  ;;  %v4405_v5 = vadd.f32 %v9596_v44, %v9212_v30 }
 0x442   : > { %v5041_v9 = vpop.f32.mrf.mxu1  ;;  %v4875_v47 = vadd.f32 %v9124_v52, %v4612_v16  ;;  %v5242_v52 = vpop.permute.xlu0 %5241  ;;  %v4615_v46 = vadd.f32 %v9250_v8, %v4404_v32 }
 0x443   : > { %v5087_v3 = vadd.f32 %v5041_v9, %v4873_v56  ;;  %5322 = vxpose.xlu0.b32.cont [3/13] (short) %v9295_v6, 128  ;;  %6554 = vst [vmem:[%s8508_s23 + $0x38] sm:$0xff] %v6527_v4   ;;  %v5284_v42 = vadd.f32 %v5283_v39, %v9295_v6  ;;  %v4876_v27 = vadd.f32 %v9131_v22, %v4613_v7  ;;  %v9597_v39 = vld [vmem:[#allocation15_spill] sm:$0xff] }
 0x444   : > { %v7368_v48 = vpop.f32.mrf.mxu1  ;;  %v4616_v8 = vadd.f32 %v9256_v43, %v4405_v5 }
 0x445   : > { %5100 = vst [vmem:[#allocation2 + $0x18] sm:$0xff] %v5087_v3  ;;  %v9305_v55 = vmul.f32 %v5222_v18, %v5087_v3  ;;  %v9594_v18 = vld [vmem:[#allocation12_spill] sm:$0xff] }
 0x446   : > { %v5046_v11 = vpop.f32.mrf.mxu1  ;;  %v4403_v25 = vadd.f32 %v9594_v18, %v9205_v29  ;;  %v5247_v4 = vpop.permute.xlu0 %5246  ;;  %v4879_v43 = vadd.f32 %v9153_v33, %v4616_v8 }
 0x447   : > { %v5088_v36 = vadd.f32 %v5046_v11, %v4874_v59  ;;  %5323 = vxpose.xlu0.b32.cont [4/13] (short) %v9305_v55, 128  ;;  %v5285_v24 = vadd.f32 %v5284_v42, %v9305_v55 }
 0x448   : > { %v7371_v21 = vpop.f32.mrf.mxu1  ;;  %v4614_v20 = vadd.f32 %v9244_v23, %v4403_v25 }
 0x449   : > { %5101 = vst [vmem:[#allocation2 + $0x50] sm:$0xff] %v5088_v36  ;;  %v9314_v26 = vmul.f32 %v5227_v40, %v5088_v36  ;;  %v6532_v54 = vpack.c.bf16 %v5088_v36, %v5087_v3  ;;  %v5237_v40 = vpop.permute.xlu1 %5236  ;;  %v9598_v21 = vld [vmem:[#allocation16_spill] sm:$0xff] }
 0x44a   : > { %v5049_v0 = vpop.f32.mrf.mxu1  ;;  %v4877_v23 = vadd.f32 %v9140_v60, %v4614_v20  ;;  %v4878_v60 = vadd.f32 %v9146_v63, %v4615_v46  ;;  %v5252_v31 = vpop.permute.xlu0 %5251  ;;  %v4407_v7 = vadd.f32 %v9598_v21, %v9218_v49 }
 0x44b   : > { %v5089_v51 = vadd.f32 %v5049_v0, %v4875_v47  ;;  %5324 = vxpose.xlu0.b32.cont [5/13] (short) %v9314_v26, 128  ;;  %6555 = vst [vmem:[%s8508_s23 + $0x40] sm:$0xff] %v6532_v54   ;;  %v5286_v13 = vadd.f32 %v5285_v24, %v9314_v26 }
 0x44c   : > { %v7372_v28 = vpop.f32.mrf.mxu1  ;;  %v4618_v0 = vadd.f32 %v9268_v50, %v4407_v7 }
 0x44d   : > { %5102 = vst [vmem:[#allocation2 + $0x20] sm:$0xff] %v5089_v51  ;;  %v9323_v57 = vmul.f32 %v5232_v12, %v5089_v51  ;;  %v4406_v12 = vadd.f32 %v9597_v39, %v9215_v14 }
 0x44e   : > { %v5054_v58 = vpop.f32.mrf.mxu1  ;;  %v5257_v33 = vpop.permute.xlu0 %5256  ;;  %v4881_v49 = vadd.f32 %v9165_v15, %v4618_v0 }
 0x44f   : > { %v5090_v29 = vadd.f32 %v5054_v58, %v4876_v27  ;;  %5325 = vxpose.xlu0.b32.cont [6/13] (short) %v9323_v57, 128  ;;  %v5287_v61 = vadd.f32 %v5286_v13, %v9323_v57  ;;  %v4617_v36 = vadd.f32 %v9262_v53, %v4406_v12 }
 0x450   : > { %v7375_v45 = vpop.f32.mrf.mxu1 }
 0x451   : > { %5103 = vst [vmem:[#allocation2 + $0x8] sm:$0xff] %v5090_v29  ;;  %v9331_v22 = vmul.f32 %v5237_v40, %v5090_v29  ;;  %v6537_v56 = vpack.c.bf16 %v5090_v29, %v5089_v51  ;;  %v4880_v18 = vadd.f32 %v9159_v19, %v4617_v36 }
 0x452   : > { %v5057_v17 = vpop.f32.mrf.mxu1  ;;  %v5262_v50 = vpop.permute.xlu0 %5261 }
 0x453   : > { %v5091_v9 = vadd.f32 %v5057_v17, %v4877_v23  ;;  %5326 = vxpose.xlu0.b32.cont [7/13] (short) %v9331_v22, 128  ;;  %6556 = vst [vmem:[%s8508_s23 + $0x48] sm:$0xff] %v6537_v56   ;;  %v5288_v3 = vadd.f32 %v5287_v61, %v9331_v22  ;;  %v4908_v61 = vld [vmem:[#allocation2 + $0x40] sm:$0xf] }
 0x454   : > { %v7376_v16 = vpop.f32.mrf.mxu1 }
 0x455   : > { %5104 = vst [vmem:[#allocation2 + $0x38] sm:$0xff] %v5091_v9  ;;  %v9340_v48 = vmul.f32 %v5242_v52, %v5091_v9 }
 0x456   : > { %v5062_v59 = vpop.f32.mrf.mxu1 }
 0x457   : > { %v5092_v30 = vadd.f32 %v5062_v59, %v4878_v60  ;;  %5327 = vxpose.xlu0.b32.cont [8/13] (short) %v9340_v48, 128  ;;  %v5289_v11 = vadd.f32 %v5288_v3, %v9340_v48 }
 0x458   : > { %v7379_v34 = vpop.f32.mrf.mxu1 }
 0x459   : > { %5105 = vst [vmem:[#allocation2 + $0x28] sm:$0xff] %v5092_v30  ;;  %v5277_v63 = vmul.f32 %v5247_v4, %v5092_v30  ;;  %v6542_v42 = vpack.c.bf16 %v5092_v30, %v5091_v9  ;;  %v5267_v4 = vpop.permute.xlu0 %5266  ;;  %v5282_v30 = vld [vmem:[%s8453_s18] sm:$0x1]  ;;  %v9602_v34 = vld [vmem:[#allocation17_spill] sm:$0xff] }
 0x45a   : > { %v5065_v47 = vpop.f32.mrf.mxu1 }
 0x45b   : > { %v5093_v24 = vadd.f32 %v5065_v47, %v4879_v43  ;;  %5328 = vxpose.xlu0.b32.cont [9/13] (short) %v5277_v63, 128  ;;  %6557 = vst [vmem:[%s8508_s23 + $0x50] sm:$0xff] %v6542_v42   ;;  %v5290_v14 = vadd.f32 %v5289_v11, %v5277_v63 }
 0x45c   : > { %v7380_v54 = vpop.f32.mrf.mxu1 }
 0x45d   : > { %5106 = vst [vmem:[#allocation2 + $0x48] sm:$0xff] %v5093_v24  ;;  %v5278_v53 = vmul.f32 %v5252_v31, %v5093_v24 }
 0x45e   : > { %v5070_v25 = vpop.f32.mrf.mxu1 }
 0x45f   : > { %v5094_v51 = vadd.f32 %v5070_v25, %v4880_v18  ;;  %5329 = vxpose.xlu0.b32.cont [10/13] (short) %v5278_v53, 128  ;;  %v5291_v13 = vadd.f32 %v5290_v14, %v5278_v53 }
 0x460   : > { %v7383_v52 = vpop.f32.mrf.mxu1 }
 0x461   : > { %5107 = vst [vmem:[#allocation2 + $0x10] sm:$0xff] %v5094_v51  ;;  %v5279_v28 = vmul.f32 %v5257_v33, %v5094_v51  ;;  %v6547_v20 = vpack.c.bf16 %v5094_v51, %v5093_v24  ;;  %v5653_v24 = vpop.trf.xlu1 }
 0x462   : > { %v5073_v27 = vpop.f32.mrf.mxu1 }
 0x463   : > { %v5095_v58 = vadd.f32 %v5073_v27, %v4881_v49  ;;  %5330 = vxpose.xlu0.b32.cont [11/13] (short) %v5279_v28, 128  ;;  %6558 = vst [vmem:[%s8508_s23 + $0x58] sm:$0xff] %v6547_v20   ;;  %v5292_v19 = vadd.f32 %v5291_v13, %v5279_v28 }
 0x464   : > { %v7384_v62 = vpop.f32.mrf.mxu1 }
 0x465   : > { %5108 = vst [vmem:[#allocation2 + $0x60] sm:$0xff] %v5095_v58  ;;  %v5280_v32 = vmul.f32 %v5262_v50, %v5095_v58  ;;  %v6491_v29 = vpack.c.bf16 %v5095_v58, %v5095_v58 }
 0x466   : > { %v5078_v40 = vpop.f32.mrf.mxu1 }
 0x467   : > { %v5096_v45 = vadd.f32 %v5078_v40, %v4908_v61  ;;  %5331 = vxpose.xlu0.b32.cont [12/13] (short) %v5280_v32, 128  ;;  %6401 = vst [vmem:[%s8508_s23 + $0x60] sm:$0xf] %v6491_v29  ;;  %v5293_v15 = vadd.f32 %v5292_v19, %v5280_v32 }
 0x468   : > { %v7387_v46 = vpop.f32.mrf.mxu1 }
 0x469   : > { %5109 = vst [vmem:[#allocation2 + $0x40] sm:$0xf] %v5096_v45 }
 0x46a   : > { %v5081_v23 = vpop.f32.mrf.mxu1 }
 0x46c   : > { %v7388_v56 = vpop.f32.mrf.mxu1 }
 0x470   : > { %v5122_v17 = vld [vmem:[#allocation2 + $0x40] sm:$0xf] }
 0x471   : > { %v5281_v44 = vmul.f32 %v5267_v4, %v5122_v17  ;;  %v6492_v5 = vpack.c.bf16 %v5122_v17, %v5122_v17 }
 0x473   : > { %5332 = vxpose.xlu0.b32.end [13/13] (short) %v5281_v44, 128  ;;  %6402 = vst [vmem:[%s8508_s23 + $0x64] sm:$0x3] %v6492_v5  ;;  %7389 = vmatprep.subr.msk.mxu0 %vm2644_vm9, %v5281_v44  ;;  %v5294_v9 = vsel %vm2644_vm9, %v5281_v44, 0.0 }
 0x474   : > { %7390 = vmatpush3.msk.msra.mxu0 %vm2644_vm9, %v5281_v44  ;;  %v5295_v3 = vadd.f32 %v5294_v9, %v5293_v15 }
 0x475   : > { %7391 = vmatprep.subr.mxu0 %v5280_v32 }
 0x476   : > { %7392 = vmatpush3.msra.mxu0 %v5280_v32  ;;  %v5296_v16 = vrot.slane %v5295_v3, 4 }
 0x477   : > { %7393 = vmatprep.subr.mxu0 %v5279_v28 }
 0x478   : > { %7394 = vmatpush3.msra.mxu0 %v5279_v28  ;;  %v5297_v8 = vadd.f32 %v5296_v16, %v5295_v3 }
 0x479   : > { %7395 = vmatprep.subr.mxu0 %v5278_v53 }
 0x47a   : > { %7396 = vmatpush3.msra.mxu0 %v5278_v53  ;;  %v5298_v60 = vrot.slane %v5297_v8, 2 }
 0x47b   : > { %7397 = vmatprep.subr.mxu0 %v5277_v63 }
 0x47c   : > { %7398 = vmatpush3.msra.mxu0 %v5277_v63  ;;  %v5299_v59 = vadd.f32 %v5298_v60, %v5297_v8 }
 0x47d   : > { %7399 = vmatprep.subr.mxu0 %v9340_v48 }
 0x47e   : > { %7400 = vmatpush3.msra.mxu0 %v9340_v48  ;;  %v5300_v39 = vrot.slane %v5299_v59, 1 }
 0x47f   : > { %7401 = vmatprep.subr.mxu0 %v9331_v22 }
 0x480   : > { %7402 = vmatpush3.msra.mxu0 %v9331_v22  ;;  %v5301_v12 = vadd.f32 %v5300_v39, %v5299_v59 }
 0x481   : > { %7403 = vmatprep.subr.mxu0 %v9323_v57 }
 0x482   : > { %7404 = vmatpush3.msra.mxu0 %v9323_v57  ;;  %v5302_v11 = vadd.f32 %v5301_v12, %v5282_v30 }
 0x483   : > { %7405 = vmatprep.subr.mxu0 %v9314_v26 }
 0x484   : > { %7406 = vmatpush3.msra.mxu0 %v9314_v26  ;;  %5303 = vst [vmem:[%s8453_s18] sm:$0x1] %v5302_v11 }
 0x485   : > { %7407 = vmatprep.subr.mxu0 %v9305_v55 }
 0x486   : > { %7408 = vmatpush3.msra.mxu0 %v9305_v55  ;;  %v5665_v55 = vsel %vm2310_vm8, %v9266_v41, 0 }
 0x487   : > { %7409 = vmatprep.subr.mxu0 %v9295_v6 }
 0x488   : > { %7410 = vmatpush3.msra.mxu0 %v9295_v6 }
 0x489   : > { %7411 = vmatprep.subr.mxu0 %v9288_v10 }
 0x48a   : > { %7412 = vmatpush3.msra.mxu0 %v9288_v10 }
 0x48b   : > { %7413 = vmatprep.subr.mxu0 %v9280_v37 }
 0x48c   : > { %7414 = vmatpush3.msra.mxu0 %v9280_v37 }
 0x48d   : > { %7439 = vmatprep.subr.bf16.mxu0 %v9587_v35 }
 0x4bf   : > { %v5336_v26 = vpop.trf.xlu0 }
 0x4c0   : > { %7415 = vmatprep.mubr.msk.f32.mxu0 %vm2703_vm10, %v5336_v26 }
 0x4c3   : > { %v5337_v57 = vpop.trf.xlu0 }
 0x4c4   : > { %7416 = vmatmul.mubr.msk.f32.vlgmr.msra.gmra.mxu0 %vm2703_vm10, %v5337_v57 }
 0x4c5   : > { %7440 = vmatpush3.bf16.msra.mxu0 %v5665_v55 }
 0x4c6   : > { %7441 = vmatprep.subr.bf16.mxu0 %v9587_v35 }
 0x4c7   : > { %v5338_v6 = vpop.trf.xlu0 }
 0x4c8   : > { %7418 = vmatprep.mubr.msk.f32.mxu0 %vm2703_vm10, %v5338_v6 }
 0x4c9   : > { %7442 = vmatpush3.bf16.msra.mxu0 %v9260_v2  ;;  %v9599_v2 = vld [vmem:[#allocation20_spill] sm:$0xff] }
 0x4ca   : > { %7443 = vmatprep.subr.bf16.mxu0 %v9587_v35 }
 0x4cb   : > { %v5339_v37 = vpop.trf.xlu0 }
 0x4cc   : > { %7419 = vmatmul.mubr.msk.f32.gmra.mxu0 %vm2703_vm10, %v5339_v37 }
 0x4cd   : > { %7444 = vmatpush3.bf16.msra.mxu0 %v9254_v1  ;;  %v9600_v1 = vld [vmem:[#allocation19_spill] sm:$0xff] }
 0x4ce   : > { %7445 = vmatprep.subr.bf16.mxu0 %v9587_v35 }
 0x4cf   : > { %v5340_v41 = vpop.trf.xlu0 }
 0x4d0   : > { %7421 = vmatprep.mubr.msk.f32.mxu0 %vm2703_vm10, %v5340_v41 }
 0x4d1   : > { %7446 = vmatpush3.bf16.msra.mxu0 %v9248_v38  ;;  %v9601_v38 = vld [vmem:[#allocation18_spill] sm:$0xff] }
 0x4d2   : > { %7447 = vmatprep.subr.bf16.mxu0 %v9587_v35 }
 0x4d3   : > { %v5341_v10 = vpop.trf.xlu0 }
 0x4d4   : > { %7422 = vmatmul.mubr.msk.f32.gmra.mxu0 %vm2703_vm10, %v5341_v10 }
 0x4d5   : > { %7448 = vmatpush3.bf16.msra.mxu0 %v9599_v2 }
 0x4d6   : > { %7449 = vmatprep.subr.bf16.mxu0 %v9587_v35 }
 0x4d7   : > { %v5342_v22 = vpop.trf.xlu0 }
 0x4d8   : > { %7424 = vmatprep.mubr.msk.f32.mxu0 %vm2703_vm10, %v5342_v22 }
 0x4d9   : > { %7450 = vmatpush3.bf16.msra.mxu0 %v9600_v1 }
 0x4da   : > { %7451 = vmatprep.subr.bf16.mxu0 %v9587_v35 }
 0x4db   : > { %v5343_v48 = vpop.trf.xlu0 }
 0x4dc   : > { %7425 = vmatmul.mubr.msk.f32.gmra.mxu0 %vm2703_vm10, %v5343_v48 }
 0x4dd   : > { %7452 = vmatpush3.bf16.msra.mxu0 %v9601_v38 }
 0x4de   : > { %7453 = vmatprep.subr.bf16.mxu0 %v9587_v35 }
 0x4df   : > { %v5344_v31 = vpop.trf.xlu0 }
 0x4e0   : > { %7427 = vmatprep.mubr.msk.f32.mxu0 %vm2703_vm10, %v5344_v31 }
 0x4e1   : > { %7454 = vmatpush3.bf16.msra.mxu0 %v9602_v34 }
 0x4e3   : > { %v5345_v36 = vpop.trf.xlu0 }
 0x4e4   : > { %7428 = vmatmul.mubr.msk.f32.gmra.mxu0 %vm2703_vm10, %v5345_v36 }
 0x4e7   : > { %v5346_v43 = vpop.trf.xlu0 }
 0x4e8   : > { %7430 = vmatprep.mubr.msk.f32.mxu0 %vm2703_vm10, %v5346_v43 }
 0x4eb   : > { %v5347_v63 = vpop.trf.xlu0 }
 0x4ec   : > { %7431 = vmatmul.mubr.msk.f32.gmra.mxu0 %vm2703_vm10, %v5347_v63 }
 0x4ef   : > { %v5348_v42 = vpop.trf.xlu0 }
 0x4f0   : > { %7433 = vmatprep.mubr.msk.f32.mxu0 %vm2703_vm10, %v5348_v42 }
 0x4f3   : > { %v5349_v47 = vpop.trf.xlu0 }
 0x4f4   : > { %7434 = vmatmul.mubr.msk.f32.gmra.mxu0 %vm2703_vm10, %v5349_v47 }
 0x4f7   : > { %v5350_v21 = vpop.trf.xlu0 }
 0x4f8   : > { %7436 = vmatprep.mubr.msk.f32.mxu0 %vm2703_vm10, %v5350_v21 }
 0x4fb   : > { %v5351_v7 = vpop.trf.xlu0 }
 0x4fc   : > { %7437 = vmatmul.mubr.msk.f32.gmra.mxu0 %vm2703_vm10, %v5351_v7 }
 0x4fd   : > { %7455 = vmatprep.mubr.msk.bf16.mxu0 %vm7819_vm1, %v9587_v35 }
 0x500   : > { %7456 = vmatmul.mubr.msk.bf16.vlgmr.msra.gmra.mxu0 %vm3013_vm11, %v5653_v24 }
 0x501   : > { %7697 = shalt.err (!%p7694_p5)
}
 0x502   : > { %s7698_s1 = scalar_lea.hbm %s5742_s15, 16  ;;  %s7702_s12 = scalar_lea.hbm %s9563_s5, 32 }
 0x503   : > { %p7699_p6 = scmp.ne.s32.totalorder %s5742_s15, %s7698_s1  ;;  %p7703_p10 = scmp.lt.s32.totalorder %s5742_s15, %s9563_s5 }
 0x504   : > { %p7704_p11 = scmp.lt.s32.totalorder %s7702_s12, %s7698_s1 }
 0x505   : > { %p7700_p7 = pnand %p7699_p6, %p7908_p4 }
 0x506   : > { %p7705_p12 = por %p7704_p11, %p7703_p10 }
 0x507   : > { %p7701_p9 = pneg %p7700_p7 }
 0x509   : > { %p7706_p13 = pnand %p7705_p12, %p7701_p9 }
 0x50b   : > { %7709 = shalt.err (!%p7706_p13)
}
 0x50c   : > { %7461 = dma.vmem_to_hbm [thread:$0]  (%p7908_p4), %s5745_s19, 16, %s5742_s15, %s5717_s22   ;;  %v5305_v35 = vld [vmem:[%s8921_s20 + $0x8] sm:$0xff]  ;;  %v5304_v0 = vld [vmem:[%s8921_s20] sm:$0xff]  ;;  %v5307_v33 = vld [vmem:[%s8921_s20 + $0x18] sm:$0xff] }
 0x50d   : > { %v5306_v13 = vld [vmem:[%s8921_s20 + $0x10] sm:$0xff]  ;;  %v5309_v28 = vld [vmem:[%s8921_s20 + $0x28] sm:$0xff]  ;;  %v5308_v58 = vld [vmem:[%s8921_s20 + $0x20] sm:$0xff]  ;;  %s9603_s0 = sadd.s32 4294967295, %s7816_s29   ;;  %s6493_s30 = sshll.u32 %s7808_s27, 11 }
 0x50e   : > { %v5311_v62 = vld [vmem:[%s8921_s20 + $0x38] sm:$0xff]  ;;  %v5310_v61 = vld [vmem:[%s8921_s20 + $0x30] sm:$0xff]  ;;  %v5313_v15 = vld [vmem:[%s8921_s20 + $0x48] sm:$0xff]  ;;  %s9462_s1 = sand.u32 1, %s9603_s0   ;;  %s5757_s8 = sshll.u32 %s8921_s20, 4  ;;  %s9476_s8 = int_to_ptr.vmem [resolvable:$true] %s5757_s8 }
 0x50f   : > { %v5312_v56 = vld [vmem:[%s8921_s20 + $0x40] sm:$0xff]  ;;  %v5315_v44 = vld [vmem:[%s8921_s20 + $0x58] sm:$0xff]  ;;  %v5314_v3 = vld [vmem:[%s8921_s20 + $0x50] sm:$0xff]  ;;  %s9470_s22 = scalar_lea.hbm %s9564_s6, %s6493_s30  ;;  %s6463_s17 = sshll.u32 %s7808_s27, 6 }
 0x510   : > { %v5317_v60 = vld [vmem:[%s8921_s20 + $0x68] sm:$0xff]  ;;  %v5316_v12 = vld [vmem:[%s8921_s20 + $0x60] sm:$0xff]  ;;  %v5319_v26 = vld [vmem:[%s8921_s20 + $0x78] sm:$0xff]  ;;  %s5773_s16 = sshll.u32 %s8808_s10, 4  ;;  %s9483_s23 = scalar_lea.hbm %s9565_s7, %s6463_s17  ;;  %s9485_s16 = int_to_ptr.vmem [resolvable:$true] %s5773_s16 }
 0x511   : > { %v5318_v6 = vld [vmem:[%s8921_s20 + $0x70] sm:$0xff]  ;;  %v5596_v10 = vld [vmem:[%s8808_s10] sm:$0xf]  ;;  %s5721_s27 = scalar_lea.sflag [#allocation6], %s9462_s1  ;;  %s7710_s21 = scalar_lea.vmem %s9476_s8, 2048 }
 0x512   : > { %p7711_p0 = scmp.ne.s32.totalorder %s9476_s8, %s7710_s21  ;;  %s7822_s0 = smov [#allocation5]  }
 0x513   : > { %s7714_s30 = sshll.u32 %s7822_s0, 4  ;;  %s7715_s30 = int_to_ptr.vmem [resolvable:$false] %s7714_s30 }
 0x514   : > { %p7712_p1 = pnand %p7711_p0, %p7908_p4  ;;  %s7716_s15 = scalar_lea.vmem %s7715_s30, 4096 }
 0x515   : > { %p7717_p3 = scmp.lt.s32.totalorder %s9476_s8, %s7715_s30  ;;  %p7718_p5 = scmp.lt.s32.totalorder %s7716_s15, %s7710_s21 }
 0x516   : > { %p7713_p2 = pneg %p7712_p1 }
 0x517   : > { %p7719_p6 = por %p7718_p5, %p7717_p3 }
 0x519   : > { %p7720_p7 = pnand %p7719_p6, %p7713_p2 }
 0x584   : > { %v7417_v14 = vpop.f32.mrf.mxu0 }
 0x585   : > { %v5549_v54 = vadd.f32 %v7417_v14, %v5305_v35 }
 0x586   : > { %v5469_v18 = vpop.f32.mrf.mxu0 }
 0x587   : > { %5565 = vst [vmem:[%s8921_s20 + $0x8] sm:$0xff] %v5549_v54  ;;  %v5548_v53 = vadd.f32 %v5469_v18, %v5304_v0 }
 0x589   : > { %5564 = vst [vmem:[%s8921_s20] sm:$0xff] %v5548_v53 }
 0x58c   : > { %v7420_v25 = vpop.f32.mrf.mxu0 }
 0x58d   : > { %v5551_v51 = vadd.f32 %v7420_v25, %v5307_v33 }
 0x58e   : > { %v5479_v52 = vpop.f32.mrf.mxu0 }
 0x58f   : > { %5567 = vst [vmem:[%s8921_s20 + $0x18] sm:$0xff] %v5551_v51  ;;  %v5550_v49 = vadd.f32 %v5479_v52, %v5306_v13 }
 0x591   : > { %5566 = vst [vmem:[%s8921_s20 + $0x10] sm:$0xff] %v5550_v49 }
 0x594   : > { %v7423_v20 = vpop.f32.mrf.mxu0 }
 0x595   : > { %v5553_v27 = vadd.f32 %v7423_v20, %v5309_v28 }
 0x596   : > { %v5489_v19 = vpop.f32.mrf.mxu0 }
 0x597   : > { %5569 = vst [vmem:[%s8921_s20 + $0x28] sm:$0xff] %v5553_v27  ;;  %v5552_v50 = vadd.f32 %v5489_v19, %v5308_v58 }
 0x599   : > { %5568 = vst [vmem:[%s8921_s20 + $0x20] sm:$0xff] %v5552_v50 }
 0x59c   : > { %v7426_v32 = vpop.f32.mrf.mxu0 }
 0x59d   : > { %v5555_v29 = vadd.f32 %v7426_v32, %v5311_v62 }
 0x59e   : > { %v5499_v40 = vpop.f32.mrf.mxu0 }
 0x59f   : > { %5571 = vst [vmem:[%s8921_s20 + $0x38] sm:$0xff] %v5555_v29  ;;  %v5554_v45 = vadd.f32 %v5499_v40, %v5310_v61 }
 0x5a1   : > { %5570 = vst [vmem:[%s8921_s20 + $0x30] sm:$0xff] %v5554_v45 }
 0x5a4   : > { %v7429_v46 = vpop.f32.mrf.mxu0 }
 0x5a5   : > { %v5557_v23 = vadd.f32 %v7429_v46, %v5313_v15 }
 0x5a6   : > { %v5509_v4 = vpop.f32.mrf.mxu0 }
 0x5a7   : > { %5573 = vst [vmem:[%s8921_s20 + $0x48] sm:$0xff] %v5557_v23  ;;  %v5556_v17 = vadd.f32 %v5509_v4, %v5312_v56 }
 0x5a9   : > { %5572 = vst [vmem:[%s8921_s20 + $0x40] sm:$0xff] %v5556_v17 }
 0x5ac   : > { %v7432_v5 = vpop.f32.mrf.mxu0 }
 0x5ad   : > { %v5559_v9 = vadd.f32 %v7432_v5, %v5315_v44 }
 0x5ae   : > { %v5519_v16 = vpop.f32.mrf.mxu0 }
 0x5af   : > { %5575 = vst [vmem:[%s8921_s20 + $0x58] sm:$0xff] %v5559_v9  ;;  %v5558_v8 = vadd.f32 %v5519_v16, %v5314_v3 }
 0x5b1   : > { %5574 = vst [vmem:[%s8921_s20 + $0x50] sm:$0xff] %v5558_v8 }
 0x5b4   : > { %v7435_v59 = vpop.f32.mrf.mxu0 }
 0x5b5   : > { %v5561_v39 = vadd.f32 %v7435_v59, %v5317_v60 }
 0x5b6   : > { %v5529_v30 = vpop.f32.mrf.mxu0 }
 0x5b7   : > { %5577 = vst [vmem:[%s8921_s20 + $0x68] sm:$0xff] %v5561_v39  ;;  %v5560_v11 = vadd.f32 %v5529_v30, %v5316_v12 }
 0x5b9   : > { %5576 = vst [vmem:[%s8921_s20 + $0x60] sm:$0xff] %v5560_v11 }
 0x5bc   : > { %v7438_v55 = vpop.f32.mrf.mxu0 }
 0x5bd   : > { %v5563_v57 = vadd.f32 %v7438_v55, %v5319_v26 }
 0x5be   : > { %v5539_v37 = vpop.f32.mrf.mxu0 }
 0x5bf   : > { %5579 = vst [vmem:[%s8921_s20 + $0x78] sm:$0xff] %v5563_v57  ;;  %v5562_v41 = vadd.f32 %v5539_v37, %v5318_v6 }
 0x5c0   : > { %v5701_v2 = vpop.f32.mrf.mxu0 }
 0x5c1   : > { %5578 = vst [vmem:[%s8921_s20 + $0x70] sm:$0xff] %v5562_v41  ;;  %v5707_v22 = vadd.f32 %v5701_v2, %v5596_v10 }
 0x5c2   : > { %v7457_v1 = vpop.f32.mrf.mxu0 }
 0x5c3   : > { %7723 = shalt.err (!%p7720_p7)
}
 0x5c4   : > { %s7724_s20 = scalar_lea.hbm %s9470_s22, 2048  ;;  %s7728_s18 = scalar_lea.hbm %s9564_s6, 4096 }
 0x5c5   : > { %p7725_p9 = scmp.ne.s32.totalorder %s9470_s22, %s7724_s20  ;;  %p7729_p12 = scmp.lt.s32.totalorder %s9470_s22, %s9564_s6 }
 0x5c6   : > { %p7730_p13 = scmp.lt.s32.totalorder %s7728_s18, %s7724_s20 }
 0x5c7   : > { %p7726_p10 = pnand %p7725_p9, %p7908_p4 }
 0x5c8   : > { %p7731_p0 = por %p7730_p13, %p7729_p12 }
 0x5c9   : > { %p7727_p11 = pneg %p7726_p10 }
 0x5cb   : > { %p7732_p1 = pnand %p7731_p0, %p7727_p11 }
 0x5cd   : > { %7735 = shalt.err (!%p7732_p1)
}
 0x5ce   : > { %s7823_s21 = smov 128   ;;  %s7824_s30 = smov 8   ;;  %5708 = vst.msk [vmem:[%s8808_s10] sm:$0xf] %vm392_vm12, %v5707_v22  ;;  %v5704_v48 = vpop.f32.mrf.mxu0 }
 0x5cf   : > { %7462 = dma.vmem_to_hbm [thread:$0]  (%p7908_p4), %s9476_s8, 2048, %s9470_s22, %s5721_s27, %s7823_s21, %s7823_s21, %s7824_s30  }
 0x5d0   : > { %s7736_s15 = scalar_lea.vmem %s9485_s16, 64  ;;  %s7825_s20 = smov [#allocation7]  }
 0x5d1   : > { %p7737_p2 = scmp.ne.s32.totalorder %s9485_s16, %s7736_s15  ;;  %s7740_s19 = sshll.u32 %s7825_s20, 4  ;;  %s7741_s19 = int_to_ptr.vmem [resolvable:$false] %s7740_s19 }
 0x5d2   : > { %s7742_s17 = scalar_lea.vmem %s7741_s19, 128  ;;  %p7743_p6 = scmp.lt.s32.totalorder %s9485_s16, %s7741_s19 }
 0x5d3   : > { %p7738_p3 = pnand %p7737_p2, %p7908_p4  ;;  %p7744_p7 = scmp.lt.s32.totalorder %s7742_s17, %s7736_s15 }
 0x5d5   : > { %p7739_p5 = pneg %p7738_p3  ;;  %p7745_p9 = por %p7744_p7, %p7743_p6 }
 0x5d7   : > { %p7746_p10 = pnand %p7745_p9, %p7739_p5 }
 0x5d9   : > { %7749 = shalt.err (!%p7746_p10)
}
 0x5da   : > { %s7750_s10 = scalar_lea.hbm %s9483_s23, 64  ;;  %s7754_s18 = scalar_lea.hbm %s9565_s7, 128 }
 0x5db   : > { %p7751_p11 = scmp.ne.s32.totalorder %s9483_s23, %s7750_s10  ;;  %p7755_p0 = scmp.lt.s32.totalorder %s9483_s23, %s9565_s7 }
 0x5dc   : > { %p7756_p1 = scmp.lt.s32.totalorder %s7754_s18, %s7750_s10 }
 0x5dd   : > { %p7752_p12 = pnand %p7751_p11, %p7908_p4 }
 0x5de   : > { %p7757_p2 = por %p7756_p1, %p7755_p0 }
 0x5df   : > { %p7753_p13 = pneg %p7752_p12 }
 0x5e1   : > { %p7758_p3 = pnand %p7757_p2, %p7753_p13 }
 0x5e3   : > { %7761 = shalt.err (!%p7758_p3)
}
 0x5e4   : > { %7463 = dma.vmem_to_hbm [thread:$0]  (%p7908_p4), %s9485_s16, 64, %s9483_s23, %s5721_s27   ;;  %v7458_v38 = vpop.f32.mrf.mxu0 }
 0x5e5 PF: > { %p7477_p5 = scmp.ge.s32.totalorder %s7816_s29, 2  ;;  %s5795_s21 = sand.u32 1, %s7796_s24  }
 0x5e6   : > { %s5796_s30 = scalar_lea.sflag [#allocation4], %s5795_s21 }
 0x5e7   : > { %p7468_p6 = pnand %p7477_p5, %p7917_p8 }
 0x5e9   : > { %p7469_p7 = pneg %p7468_p6 }
 0x5eb   : > { %7787 = dma.done.wait (%p7469_p7), %s5796_s30, 16  }
 0x5ec   : > { %7789 = vsyncadd (%p7469_p7), %s5796_s30, 4294967280  ;;  %s9604_s11 = sadd.s32 4294967294, %s7816_s29  }
 0x5ed   : > { %s5803_s15 = sand.u32 1, %s9604_s11  }
 0x5ee   : > { %s5804_s1 = scalar_lea.sflag [#allocation6], %s5803_s15 }
 0x5ef   : > { %7791 = dma.done.wait (%p7469_p7), %s5804_s1, 2112  }
 0x5f0   : > { %7793 = vsyncadd (%p7469_p7), %s5804_s1, 4294965184  ;;  %s24_s29 = sadd.s32 1, %s7816_s29   ;;  %s9605_s24 = smov %s7800_s25 }
 0x5f1   : > { %p21_p4 = scmp.ge.s32.totalorder %s24_s29, 4   ;;  %s9606_s25 = smov %s7804_s26 }
 0x5f2   : > { %s9607_s26 = smov %s7923_s14  ;;  %s9608_s27 = smov %s7812_s28 }
 0x5f3   : > { %s9609_s28 = smov %s9611_s9  ;;  %23 = sbr.rel (!%p21_p4) target bundleno = 9 (0x9), region = 133 }
 0x5f8   :  { %5818 = vsyncpa [#allocation4], 1 }
 0x5f9   :  { %5820 = vsyncpa [#allocation4 + $0x1], 1 }
 0x5fa   :  { %5821 = vsyncpa [#allocation6], 1 }
 0x5fb   :  { %5823 = vsyncpa [#allocation6 + $0x1], 1 }

</bundles_post_ra>
